<compile_context>
chip_gen: v7x
topology: tpu7x:2x2x1
jax: 0.10.0
libtpu: 0.0.40
codegen_flags: <defaults>
</compile_context>

<pallas_src>
import functools

import jax
import jax.numpy as jnp
from jax import lax
from jax.experimental import pallas as pl
from jax.experimental.pallas import tpu as pltpu


_VMEM_LIMIT = 48 * 1024 * 1024   # leave headroom under v7x's 64 MiB physical VMEM


# ---------------------------------------------------------------------------
# small helpers (wrapper-side layout plumbing)
# ---------------------------------------------------------------------------
def _round_up(x, m):
    return (x + m - 1) // m * m


def _pick_tile(n, target=128):
    """Largest multiple-of-8 divisor of n that is <= target; n itself if n <= target."""
    if n <= target:
        return n
    for t in range(target, 7, -8):
        if n % t == 0:
            return t
    return n


def _conv_geom(h, w):
    """Geometry of the padded-row flat layout used by the conv kernels."""
    wp = w + 2
    out_len = _round_up(h * wp, 128)              # lane-dense output length
    in_len = _round_up(out_len + 2 * wp + 2, 128)  # covers max tap offset + out_len
    offsets = tuple(dy * wp + dx for dy in range(3) for dx in range(3))
    return wp, out_len, in_len, offsets


def _pad_flat(x, in_len):
    """(N,C,H,W) -> reflect-pad 1 -> flatten padded spatial -> zero-pad lanes to in_len."""
    n, c, h, w = x.shape
    xp = jnp.pad(x, ((0, 0), (0, 0), (1, 1), (1, 1)), mode="reflect")   # needs H,W >= 2
    flat = xp.reshape(n, c, (h + 2) * (w + 2))
    return jnp.pad(flat, ((0, 0), (0, 0), (0, in_len - (h + 2) * (w + 2))))


def _crop_flat(y, h, w):
    """(..., L) conv output in padded-row layout -> (..., H, W)."""
    wp = w + 2
    lead = y.shape[:-1]
    y = y[..., : h * wp].reshape(*lead, h, wp)
    return y[..., :w]


def _pack_w(w):
    """(Cout, Cin, 3, 3) -> (9, Cout, Cin) with tap index = 3*dy + dx."""
    co, ci = w.shape[0], w.shape[1]
    return jnp.transpose(w, (2, 3, 0, 1)).reshape(9, co, ci)


def _group_avg_matrix(c, groups, hw):
    gs = c // groups
    ch = jnp.arange(c)
    return (ch[:, None] // gs == ch[None, :] // gs).astype(jnp.float32) / float(gs * hw)


# ---------------------------------------------------------------------------
# Pallas kernels
# ---------------------------------------------------------------------------
def _conv3x3_kernel(w_ref, b_ref, x_ref, o_ref, *, offsets, slope, mxu_dtype):
    """acc = sum_tap W[tap] @ x[:, off:off+L]; + bias; optional LeakyReLU."""
    tc, out_len = o_ref.shape
    acc = jnp.zeros((tc, out_len), jnp.float32)
    for tap, off in enumerate(offsets):
        xs = x_ref[:, off:off + out_len]                       # static lane-offset slice
        if mxu_dtype is not None:
            xs = xs.astype(mxu_dtype)
        acc = acc + jnp.dot(w_ref[tap], xs, preferred_element_type=jnp.float32)
    acc = acc + b_ref[...]                                     # (TC,1) broadcast
    if slope is not None:
        acc = jnp.where(acc >= 0.0, acc, jnp.float32(slope) * acc)
    o_ref[...] = acc.astype(o_ref.dtype)


def _dual_conv3x3_kernel(wa_ref, wb_ref, xa_ref, xb_ref, o_ref, *, offsets, mxu_dtype):
    """conv_2(h2) + conv_skip(hs) + residual add, bias-free, fused in one kernel."""
    tc, out_len = o_ref.shape
    acc = jnp.zeros((tc, out_len), jnp.float32)
    for tap, off in enumerate(offsets):
        xa = xa_ref[:, off:off + out_len]
        xb = xb_ref[:, off:off + out_len]
        if mxu_dtype is not None:
            xa = xa.astype(mxu_dtype)
            xb = xb.astype(mxu_dtype)
        acc = acc + jnp.dot(wa_ref[tap], xa, preferred_element_type=jnp.float32)
        acc = acc + jnp.dot(wb_ref[tap], xb, preferred_element_type=jnp.float32)
    o_ref[...] = acc.astype(o_ref.dtype)


def _gn_film_act_kernel(gmat_ref, gnw_ref, gnb_ref, x_ref, gamma_ref, beta_ref,
                        o_ref, *, eps, slope):
    """GroupNorm (sum-first stats) + affine + FiLM (*(1+gamma)+beta) + LeakyReLU."""
    x = x_ref[...].astype(jnp.float32)                         # (C, HW)
    gmat = gmat_ref[...]                                       # (C, C) / (gs*HW)
    mean = jnp.dot(gmat, jnp.sum(x, axis=-1, keepdims=True),
                   preferred_element_type=jnp.float32)         # (C, 1) group mean
    d = x - mean
    var = jnp.dot(gmat, jnp.sum(d * d, axis=-1, keepdims=True),
                  preferred_element_type=jnp.float32)          # (C, 1) group variance
    y = d * lax.rsqrt(var + jnp.float32(eps))
    y = y * gnw_ref[...] + gnb_ref[...]
    y = y * (1.0 + gamma_ref[...].astype(jnp.float32)) + beta_ref[...].astype(jnp.float32)
    if slope is not None:
        y = jnp.where(y >= 0.0, y, jnp.float32(slope) * y)
    o_ref[...] = y.astype(o_ref.dtype)


def _gn_act_kernel(gmat_ref, gnw_ref, gnb_ref, x_ref, o_ref, *, eps, slope):
    """condition=None path: GroupNorm + affine + activation only (no FiLM streams)."""
    x = x_ref[...].astype(jnp.float32)
    gmat = gmat_ref[...]
    mean = jnp.dot(gmat, jnp.sum(x, axis=-1, keepdims=True),
                   preferred_element_type=jnp.float32)
    d = x - mean
    var = jnp.dot(gmat, jnp.sum(d * d, axis=-1, keepdims=True),
                  preferred_element_type=jnp.float32)
    y = d * lax.rsqrt(var + jnp.float32(eps)) * gnw_ref[...] + gnb_ref[...]
    if slope is not None:
        y = jnp.where(y >= 0.0, y, jnp.float32(slope) * y)
    o_ref[...] = y.astype(o_ref.dtype)


def _resize_kernel(rh_ref, rwt_ref, x_ref, o_ref):
    """Separable resize of one plane: out = Rh @ x @ Rw^T (Rw pre-transposed)."""
    t = jnp.dot(rh_ref[...], x_ref[...].astype(jnp.float32),
                preferred_element_type=jnp.float32)            # (Hout, Win)
    y = jnp.dot(t, rwt_ref[...], preferred_element_type=jnp.float32)
    o_ref[...] = y.astype(o_ref.dtype)


# ---------------------------------------------------------------------------
# Wrappers
# ---------------------------------------------------------------------------
def conv3x3_reflect(x, w9, bias, *, slope=None, mxu_dtype=None):
    """3x3 reflect conv.  x:(N,Cin,H,W), w9:(9,Cout,Cin) packed, bias:(Cout,) or None."""
    n, cin, h, w = x.shape
    cout = w9.shape[1]
    _, out_len, in_len, offsets = _conv_geom(h, w)
    xpad = _pad_flat(x, in_len)
    b = (jnp.zeros((cout,), jnp.float32) if bias is None
         else bias.astype(jnp.float32)).reshape(cout, 1)
    if mxu_dtype is not None:
        w9 = w9.astype(mxu_dtype)
    tc = _pick_tile(cout)
    itm = x.dtype.itemsize
    out = pl.pallas_call(
        functools.partial(_conv3x3_kernel, offsets=offsets, slope=slope,
                          mxu_dtype=mxu_dtype),
        out_shape=jax.ShapeDtypeStruct((n, cout, out_len), x.dtype),
        grid_spec=pltpu.PrefetchScalarGridSpec(
            num_scalar_prefetch=0,
            grid=(n, cout // tc),
            in_specs=[
                pl.BlockSpec((9, tc, cin), lambda i, j: (0, j, 0)),
                pl.BlockSpec((tc, 1), lambda i, j: (j, 0)),
                pl.BlockSpec((None, cin, in_len), lambda i, j: (i, 0, 0)),
            ],
            out_specs=pl.BlockSpec((None, tc, out_len), lambda i, j: (i, j, 0)),
        ),
        compiler_params=pltpu.CompilerParams(
            dimension_semantics=("parallel", "parallel"),
            vmem_limit_bytes=_VMEM_LIMIT),
        cost_estimate=pl.CostEstimate(
            flops=2 * n * cout * cin * 9 * out_len,
            transcendentals=0,
            bytes_accessed=itm * n * (cin * in_len + cout * out_len)
                           + w9.dtype.itemsize * 9 * cout * cin),
    )(w9, b, xpad)
    return _crop_flat(out, h, w)                               # (N, Cout, H, W)


def gamma_beta_convs(a_all, hidden, wgb, bgb, *, mxu_dtype=None):
    """All six gamma/beta convs of the three norms in ONE pallas_call.

    a_all: (N, 3*hidden, H, W)  stacked mlp activations (norm_1|norm_2|norm_skip)
    wgb:   (3, 9, 2C, hidden)   packed [gamma_w; beta_w] per norm
    bgb:   (3, 2C, 1)           [gamma_b; beta_b] per norm (f32)
    Returns (N, 3, 2, C, H*W) FiLM parameters in flat-spatial layout.
    """
    n, _, h, w = a_all.shape
    two_c = wgb.shape[2]
    c = two_c // 2
    _, out_len, in_len, offsets = _conv_geom(h, w)
    a_pad = _pad_flat(a_all, in_len).reshape(n, 3, hidden, in_len)
    if mxu_dtype is not None:
        wgb = wgb.astype(mxu_dtype)
    itm = a_all.dtype.itemsize
    out = pl.pallas_call(
        functools.partial(_conv3x3_kernel, offsets=offsets, slope=None,
                          mxu_dtype=mxu_dtype),
        out_shape=jax.ShapeDtypeStruct((n, 3, two_c, out_len), a_all.dtype),
        grid_spec=pltpu.PrefetchScalarGridSpec(
            num_scalar_prefetch=0,
            grid=(n, 3),
            in_specs=[
                pl.BlockSpec((None, 9, two_c, hidden), lambda i, k: (k, 0, 0, 0)),
                pl.BlockSpec((None, two_c, 1), lambda i, k: (k, 0, 0)),
                pl.BlockSpec((None, None, hidden, in_len), lambda i, k: (i, k, 0, 0)),
            ],
            out_specs=pl.BlockSpec((None, None, two_c, out_len),
                                   lambda i, k: (i, k, 0, 0)),
        ),
        compiler_params=pltpu.CompilerParams(
            dimension_semantics=("parallel", "parallel"),
            vmem_limit_bytes=_VMEM_LIMIT),
        cost_estimate=pl.CostEstimate(
            flops=2 * n * 3 * two_c * hidden * 9 * out_len,
            transcendentals=0,
            bytes_accessed=itm * n * 3 * (hidden * in_len + two_c * out_len)
                           + wgb.dtype.itemsize * int(wgb.size)),
    )(wgb, bgb, a_pad)
    gb = _crop_flat(out, h, w)                                 # (N, 3, 2C, H, W)
    return gb.reshape(n, 3, 2, c, h * w)


def dual_conv3x3_add(xa, wa9, xb, wb9, *, mxu_dtype=None):
    """conv3x3_reflect(xa,wa) + conv3x3_reflect(xb,wb), bias-free, add fused on-chip."""
    n, cin, h, w = xa.shape
    cout = wa9.shape[1]
    _, out_len, in_len, offsets = _conv_geom(h, w)
    xa_p = _pad_flat(xa, in_len)
    xb_p = _pad_flat(xb, in_len)
    if mxu_dtype is not None:
        wa9 = wa9.astype(mxu_dtype)
        wb9 = wb9.astype(mxu_dtype)
    tc = _pick_tile(cout)
    itm = xa.dtype.itemsize
    out = pl.pallas_call(
        functools.partial(_dual_conv3x3_kernel, offsets=offsets, mxu_dtype=mxu_dtype),
        out_shape=jax.ShapeDtypeStruct((n, cout, out_len), xa.dtype),
        grid_spec=pltpu.PrefetchScalarGridSpec(
            num_scalar_prefetch=0,
            grid=(n, cout // tc),
            in_specs=[
                pl.BlockSpec((9, tc, cin), lambda i, j: (0, j, 0)),
                pl.BlockSpec((9, tc, cin), lambda i, j: (0, j, 0)),
                pl.BlockSpec((None, cin, in_len), lambda i, j: (i, 0, 0)),
                pl.BlockSpec((None, cin, in_len), lambda i, j: (i, 0, 0)),
            ],
            out_specs=pl.BlockSpec((None, tc, out_len), lambda i, j: (i, j, 0)),
        ),
        compiler_params=pltpu.CompilerParams(
            dimension_semantics=("parallel", "parallel"),
            vmem_limit_bytes=_VMEM_LIMIT),
        cost_estimate=pl.CostEstimate(
            flops=4 * n * cout * cin * 9 * out_len,
            transcendentals=0,
            bytes_accessed=itm * n * (2 * cin * in_len + cout * out_len)
                           + 2 * wa9.dtype.itemsize * 9 * cout * cin),
    )(wa9, wb9, xa_p, xb_p)
    return _crop_flat(out, h, w)


def group_norm_film_act(x, gb_all, norm_idx, gn_w, gn_b, *, groups, eps=1e-5, slope=None):
    """Fused GroupNorm + affine (+ FiLM if gb_all is not None) + LeakyReLU."""
    n, c, h, w = x.shape
    assert c % groups == 0
    hw = h * w
    gmat = _group_avg_matrix(c, groups, hw)
    xf = x.reshape(n, c, hw)
    gnw = gn_w.astype(jnp.float32).reshape(c, 1)
    gnb = gn_b.astype(jnp.float32).reshape(c, 1)
    itm = x.dtype.itemsize
    if gb_all is None:
        kern = functools.partial(_gn_act_kernel, eps=eps, slope=slope)
        in_specs = [
            pl.BlockSpec((c, c), lambda i: (0, 0)),
            pl.BlockSpec((c, 1), lambda i: (0, 0)),
            pl.BlockSpec((c, 1), lambda i: (0, 0)),
            pl.BlockSpec((None, c, hw), lambda i: (i, 0, 0)),
        ]
        args = (gmat, gnw, gnb, xf)
        nbytes = itm * 2 * n * c * hw
    else:
        kern = functools.partial(_gn_film_act_kernel, eps=eps, slope=slope)
        in_specs = [
            pl.BlockSpec((c, c), lambda i: (0, 0)),
            pl.BlockSpec((c, 1), lambda i: (0, 0)),
            pl.BlockSpec((c, 1), lambda i: (0, 0)),
            pl.BlockSpec((None, c, hw), lambda i: (i, 0, 0)),
            pl.BlockSpec((None, None, None, c, hw), lambda i: (i, norm_idx, 0, 0, 0)),
            pl.BlockSpec((None, None, None, c, hw), lambda i: (i, norm_idx, 1, 0, 0)),
        ]
        args = (gmat, gnw, gnb, xf, gb_all, gb_all)
        nbytes = itm * 4 * n * c * hw
    out = pl.pallas_call(
        kern,
        out_shape=jax.ShapeDtypeStruct((n, c, hw), x.dtype),
        grid_spec=pltpu.PrefetchScalarGridSpec(
            num_scalar_prefetch=0,
            grid=(n,),
            in_specs=in_specs,
            out_specs=pl.BlockSpec((None, c, hw), lambda i: (i, 0, 0)),
        ),
        compiler_params=pltpu.CompilerParams(
            dimension_semantics=("parallel",), vmem_limit_bytes=_VMEM_LIMIT),
        cost_estimate=pl.CostEstimate(
            flops=10 * n * c * hw + 4 * n * c * c,
            transcendentals=n * c,
            bytes_accessed=nbytes + 4 * (c * c + 2 * c)),
    )(*args)
    return out.reshape(n, c, h, w)


def _interp_matrix(in_size, out_size, mode):
    """M (out,in) s.t. out = M @ in.  Matches F.interpolate (align_corners=True)."""
    if mode == "nearest":
        src = jnp.floor(jnp.arange(out_size, dtype=jnp.float32)
                        * (in_size / out_size)).astype(jnp.int32)
        src = jnp.clip(src, 0, in_size - 1)
        return jax.nn.one_hot(src, in_size, dtype=jnp.float32)
    if out_size == 1:
        src = jnp.zeros((1,), jnp.float32)
    else:
        src = jnp.arange(out_size, dtype=jnp.float32) * ((in_size - 1) / (out_size - 1))
    if mode == "bilinear":
        lo = jnp.clip(jnp.floor(src).astype(jnp.int32), 0, in_size - 1)
        hi = jnp.clip(lo + 1, 0, in_size - 1)
        t = src - lo.astype(jnp.float32)
        return (jax.nn.one_hot(lo, in_size, dtype=jnp.float32) * (1.0 - t)[:, None]
                + jax.nn.one_hot(hi, in_size, dtype=jnp.float32) * t[:, None])
    if mode == "bicubic":
        a = -0.75

        def cubic(t):
            at = jnp.abs(t)
            return jnp.where(
                at <= 1.0, (a + 2.0) * at ** 3 - (a + 3.0) * at ** 2 + 1.0,
                jnp.where(at < 2.0,
                          a * at ** 3 - 5.0 * a * at ** 2 + 8.0 * a * at - 4.0 * a, 0.0))

        i0 = jnp.floor(src).astype(jnp.int32)
        t = src - i0.astype(jnp.float32)
        mat = jnp.zeros((out_size, in_size), jnp.float32)
        for k in (-1, 0, 1, 2):
            idx = jnp.clip(i0 + k, 0, in_size - 1)
            mat = mat + jax.nn.one_hot(idx, in_size, dtype=jnp.float32) * cubic(t - k)[:, None]
        return mat
    raise ValueError(f"unsupported interpolation mode: {mode}")


def resize_condition(cond, size, mode):
    """F.interpolate(cond, size, mode, align_corners=True for bilinear/bicubic)."""
    n, c, hin, win = cond.shape
    hout, wout = size
    eff = mode if mode in ("bilinear", "bicubic") else "nearest"
    rh = _interp_matrix(hin, hout, eff)                        # (Hout, Hin)
    rwt = _interp_matrix(win, wout, eff).T                     # (Win, Wout) pre-transposed
    p = n * c
    planes = cond.reshape(p, hin, win)
    out = pl.pallas_call(
        _resize_kernel,
        out_shape=jax.ShapeDtypeStruct((p, hout, wout), cond.dtype),
        grid_spec=pltpu.PrefetchScalarGridSpec(
            num_scalar_prefetch=0,
            grid=(p,),
            in_specs=[
                pl.BlockSpec((hout, hin), lambda i: (0, 0)),
                pl.BlockSpec((win, wout), lambda i: (0, 0)),
                pl.BlockSpec((None, hin, win), lambda i: (i, 0, 0)),
            ],
            out_specs=pl.BlockSpec((None, hout, wout), lambda i: (i, 0, 0)),
        ),
        compiler_params=pltpu.CompilerParams(
            dimension_semantics=("parallel",), vmem_limit_bytes=_VMEM_LIMIT),
        cost_estimate=pl.CostEstimate(
            flops=2 * p * (hout * hin * win + hout * win * wout),
            transcendentals=0,
            bytes_accessed=cond.dtype.itemsize * p * (hin * win + hout * wout)
                           + 4 * (hout * hin + win * wout)),
    )(rh, rwt, planes)
    return out.reshape(n, c, hout, wout)


# ---------------------------------------------------------------------------
# Module forward (Pallas)
# ---------------------------------------------------------------------------
def residual_conditioned_block(x, condition, params, *, groups, slope=0.2,
                               interpolation="bilinear", mxu_dtype=None):
    """Pallas forward pass of ResidualConditionedBlock."""
    act_slope = 0.0 if slope is None else float(slope)         # ReLU == LeakyReLU(0)
    n, _, h, w = x.shape
    norm_keys = ("norm_1", "norm_2", "norm_skip")
    hidden = params["norm_1"]["mlp_w"].shape[0]

    if condition is not None:
        if condition.shape[-2:] != (h, w):
            # all three ConditionedNorms resize to x's spatial size -> resize once
            condition = resize_condition(condition, (h, w), interpolation)
        # stacked mlp conv for the 3 norms: (3*hidden) output rows, one launch
        mlp_w9 = _pack_w(jnp.concatenate([params[k]["mlp_w"] for k in norm_keys], axis=0))
        mlp_b = jnp.concatenate([params[k]["mlp_b"] for k in norm_keys], axis=0)
        a_all = conv3x3_reflect(condition, mlp_w9, mlp_b, slope=act_slope,
                                mxu_dtype=mxu_dtype)           # (N, 3*hidden, H, W)
        # all six gamma/beta convs (2C rows per norm) in one launch
        gb_w = jnp.stack([_pack_w(jnp.concatenate(
            [params[k]["gamma_w"], params[k]["beta_w"]], axis=0)) for k in norm_keys])
        gb_b = jnp.stack([jnp.concatenate(
            [params[k]["gamma_b"], params[k]["beta_b"]],
            axis=0).astype(jnp.float32).reshape(-1, 1) for k in norm_keys])
        gb_all = gamma_beta_convs(a_all, hidden, gb_w, gb_b,
                                  mxu_dtype=mxu_dtype)         # (N, 3, 2, C, H*W)
    else:
        gb_all = None

    def cnorm(xin, k):
        p = params[norm_keys[k]]
        return group_norm_film_act(xin, gb_all, k, p["gn_w"], p["gn_b"],
                                   groups=groups, slope=act_slope)

    h1 = cnorm(x, 0)
    x1 = conv3x3_reflect(h1, _pack_w(params["conv_1_w"]), None, mxu_dtype=mxu_dtype)
    h2 = cnorm(x1, 1)
    hs = cnorm(x, 2)
    # conv_2(h2) + conv_skip(hs) + residual add, fused into one kernel
    return dual_conv3x3_add(h2, _pack_w(params["conv_2_w"]),
                            hs, _pack_w(params["conv_skip_w"]), mxu_dtype=mxu_dtype)


# ---------------------------------------------------------------------------
# Pure-JAX reference (for validation)
# ---------------------------------------------------------------------------
def _leaky_ref(x, slope):
    return jnp.where(x >= 0.0, x, slope * x)


def _conv3x3_reflect_ref(x, w, b=None):
    xp = jnp.pad(x, ((0, 0), (0, 0), (1, 1), (1, 1)), mode="reflect")
    y = lax.conv_general_dilated(xp, w, window_strides=(1, 1), padding="VALID",
                                 dimension_numbers=("NCHW", "OIHW", "NCHW"))
    if b is not None:
        y = y + b.reshape(1, -1, 1, 1)
    return y


def _gn_film_act_ref(x, gamma, beta, gn_w, gn_b, groups, eps, slope):
    n, c, h, w = x.shape
    xg = x.reshape(n, groups, c // groups, h, w)
    mean = jnp.mean(xg, axis=(2, 3, 4), keepdims=True)
    var = jnp.mean((xg - mean) ** 2, axis=(2, 3, 4), keepdims=True)
    xh = ((xg - mean) * lax.rsqrt(var + eps)).reshape(n, c, h, w)
    y = xh * gn_w.reshape(1, c, 1, 1) + gn_b.reshape(1, c, 1, 1)
    if gamma is not None:
        y = y * (1.0 + gamma) + beta
    return _leaky_ref(y, slope)


def _resize_ref(cond, size, mode):
    hout, wout = size
    eff = mode if mode in ("bilinear", "bicubic") else "nearest"
    rh = _interp_matrix(cond.shape[2], hout, eff)
    rw = _interp_matrix(cond.shape[3], wout, eff)
    return jnp.einsum("oh,nchw,pw->ncop", rh, cond.astype(jnp.float32), rw).astype(cond.dtype)


def _block_ref(x, condition, params, *, groups, slope, interpolation):
    s = 0.0 if slope is None else float(slope)
    if condition is not None and condition.shape[-2:] != x.shape[-2:]:
        condition = _resize_ref(condition, x.shape[-2:], interpolation)

    def cnorm(xin, p):
        if condition is None:
            return _gn_film_act_ref(xin, None, None, p["gn_w"], p["gn_b"], groups, 1e-5, s)
        a = _leaky_ref(_conv3x3_reflect_ref(condition, p["mlp_w"], p["mlp_b"]), s)
        gamma = _conv3x3_reflect_ref(a, p["gamma_w"], p["gamma_b"])
        beta = _conv3x3_reflect_ref(a, p["beta_w"], p["beta_b"])
        return _gn_film_act_ref(xin, gamma, beta, p["gn_w"], p["gn_b"], groups, 1e-5, s)

    h1 = cnorm(x, params["norm_1"])
    x1 = _conv3x3_reflect_ref(h1, params["conv_1_w"])
    h2 = cnorm(x1, params["norm_2"])
    hs = cnorm(x, params["norm_skip"])
    return (_conv3x3_reflect_ref(h2, params["conv_2_w"])
            + _conv3x3_reflect_ref(hs, params["conv_skip_w"]))


# ---------------------------------------------------------------------------
# Demo
# ---------------------------------------------------------------------------
if __name__ == "__main__":
    key = jax.random.PRNGKey(0)
    n, cin, cout = 2, 8, 8
    h, w = 16, 16
    cond_c, hidden = 3, 16          # condition_channels / opt.condition_hidden_channels
    slope = 0.2                     # opt.slope -> LeakyReLU(0.2)
    groups = cout // 2              # opt.norm_groups is None -> out_channels // 2

    keys = jax.random.split(key, 32)
    kit = iter(keys)

    def conv_w(k, co, ci):
        return jax.random.normal(k, (co, ci, 3, 3), jnp.float32) * (0.3 / (3.0 * ci ** 0.5))

    def norm_params():
        return dict(
            mlp_w=conv_w(next(kit), hidden, cond_c),
            mlp_b=jax.random.normal(next(kit), (hidden,), jnp.float32) * 0.1,
            gamma_w=conv_w(next(kit), cin, hidden),
            gamma_b=jax.random.normal(next(kit), (cin,), jnp.float32) * 0.1,
            beta_w=conv_w(next(kit), cin, hidden),
            beta_b=jax.random.normal(next(kit), (cin,), jnp.float32) * 0.1,
            gn_w=jnp.ones((cin,), jnp.float32),
            gn_b=jnp.zeros((cin,), jnp.float32),
        )

    params = dict(
        norm_1=norm_params(),
        norm_2=norm_params(),
        norm_skip=norm_params(),
        conv_1_w=conv_w(next(kit), cin, cin),
        conv_2_w=conv_w(next(kit), cout, cin),
        conv_skip_w=conv_w(next(kit), cout, cin),
    )

    x = jax.random.normal(next(kit), (n, cin, h, w), jnp.float32)
    condition = jax.random.normal(next(kit), (n, cond_c, h // 2, w // 2), jnp.float32)

    fwd = jax.jit(lambda xx, cc, pp: residual_conditioned_block(
        xx, cc, pp, groups=groups, slope=slope, interpolation="bilinear"))

    out = jax.block_until_ready(fwd(x, condition, params))
    ref = jax.block_until_ready(_block_ref(x, condition, params, groups=groups,
                                           slope=slope, interpolation="bilinear"))

    assert out.shape == (n, cout, h, w), out.shape
    assert jnp.allclose(out, ref, atol=2e-3, rtol=2e-3), float(jnp.max(jnp.abs(out - ref)))
    print("KERNEL_OK")
</pallas_src>

<mosaic_0001>
module attributes {stable_mosaic.version = 11 : i64} {
  func.func @_resize_kernel(%arg0: i32, %arg1: memref<16x8xf32, #tpu.memory_space<vmem>>, %arg2: memref<8x16xf32, #tpu.memory_space<vmem>>, %arg3: memref<1x8x8xf32, #tpu.memory_space<vmem>>, %arg4: memref<1x16x16xf32, #tpu.memory_space<vmem>>) attributes {dimension_semantics = [#tpu.dimension_semantics<parallel>], iteration_bounds = array<i64: 6>, scalar_prefetch = 0 : i64, scratch_operands = 0 : i64, tpu.core_type = #tpu.core_type<tc>, window_params = [{pipeline_mode = #tpu.pipeline_mode<synchronous>, transform_indices = @transform_0, window_bounds = array<i64: 16, 8>}, {pipeline_mode = #tpu.pipeline_mode<synchronous>, transform_indices = @transform_1, window_bounds = array<i64: 8, 16>}, {transform_indices = @transform_2, window_bounds = array<i64: 1, 8, 8>}, {transform_indices = @transform_3, window_bounds = array<i64: 1, 16, 16>}]} {
    %c0 = arith.constant 0 : index
    %c0_0 = arith.constant 0 : index
    %0 = vector.load %arg1[%c0, %c0_0] : memref<16x8xf32, #tpu.memory_space<vmem>>, vector<16x8xf32>
    %c0_1 = arith.constant 0 : index
    %c0_2 = arith.constant 0 : index
    %c0_3 = arith.constant 0 : index
    %1 = vector.load %arg3[%c0_1, %c0_2, %c0_3] : memref<1x8x8xf32, #tpu.memory_space<vmem>>, vector<1x8x8xf32>
    %2 = vector.shape_cast %1 : vector<1x8x8xf32> to vector<8x8xf32>
    %cst = arith.constant dense<0.000000e+00> : vector<16x8xf32>
    %3 = tpu.matmul %0, %2, %cst {dimension_numbers = #tpu.dot_dimension_numbers<[1], [0], [0], [1], [0, 0, 1, 1], [], []>} : vector<16x8xf32>, vector<8x8xf32>, vector<16x8xf32> -> vector<16x8xf32>
    %c0_4 = arith.constant 0 : index
    %c0_5 = arith.constant 0 : index
    %4 = vector.load %arg2[%c0_4, %c0_5] : memref<8x16xf32, #tpu.memory_space<vmem>>, vector<8x16xf32>
    %cst_6 = arith.constant dense<0.000000e+00> : vector<16x16xf32>
    %5 = tpu.matmul %3, %4, %cst_6 {dimension_numbers = #tpu.dot_dimension_numbers<[1], [0], [0], [1], [0, 0, 1, 1], [], []>} : vector<16x8xf32>, vector<8x16xf32>, vector<16x16xf32> -> vector<16x16xf32>
    %c0_7 = arith.constant 0 : index
    %c0_8 = arith.constant 0 : index
    %c0_9 = arith.constant 0 : index
    %6 = vector.load %arg4[%c0_7, %c0_8, %c0_9] : memref<1x16x16xf32, #tpu.memory_space<vmem>>, vector<1x16x16xf32>
    %7 = vector.shape_cast %6 : vector<1x16x16xf32> to vector<16x16xf32>
    %8 = vector.shape_cast %5 : vector<16x16xf32> to vector<1x16x16xf32>
    tpu.vector_store %arg4[%c0_7, %c0_8, %c0_9], %8 {strides = array<i32>} : memref<1x16x16xf32, #tpu.memory_space<vmem>>, vector<1x16x16xf32>,
    return
  }
  func.func @transform_0(%arg0: i32) -> (i32, i32) {
    %c0_i32 = arith.constant 0 : i32
    %c0_i32_0 = arith.constant 0 : i32
    %c0_i32_1 = arith.constant 0 : i32
    return %c0_i32, %c0_i32_0 : i32, i32
  }
  func.func @transform_1(%arg0: i32) -> (i32, i32) {
    %c0_i32 = arith.constant 0 : i32
    %c0_i32_0 = arith.constant 0 : i32
    %c0_i32_1 = arith.constant 0 : i32
    return %c0_i32, %c0_i32_0 : i32, i32
  }
  func.func @transform_2(%arg0: i32) -> (i32, i32, i32) {
    %c0_i32 = arith.constant 0 : i32
    %c0_i32_0 = arith.constant 0 : i32
    %c0_i32_1 = arith.constant 0 : i32
    return %arg0, %c0_i32, %c0_i32_0 : i32, i32, i32
  }
  func.func @transform_3(%arg0: i32) -> (i32, i32, i32) {
    %c0_i32 = arith.constant 0 : i32
    %c0_i32_0 = arith.constant 0 : i32
    %c0_i32_1 = arith.constant 0 : i32
    return %arg0, %c0_i32, %c0_i32_0 : i32, i32, i32
  }
}

module attributes {stable_mosaic.version = 11 : i64} {
  func.func @_conv3x3_kernel(%arg0: i32, %arg1: i32, %arg2: memref<9x48x3xf32, #tpu.memory_space<vmem>>, %arg3: memref<48x1xf32, #tpu.memory_space<vmem>>, %arg4: memref<1x3x512xf32, #tpu.memory_space<vmem>>, %arg5: memref<1x48x384xf32, #tpu.memory_space<vmem>>) attributes {dimension_semantics = [#tpu.dimension_semantics<parallel>, #tpu.dimension_semantics<parallel>], iteration_bounds = array<i64: 2, 1>, scalar_prefetch = 0 : i64, scratch_operands = 0 : i64, tpu.core_type = #tpu.core_type<tc>, window_params = [{transform_indices = @transform_0, window_bounds = array<i64: 9, 48, 3>}, {transform_indices = @transform_1, window_bounds = array<i64: 48, 1>}, {transform_indices = @transform_2, window_bounds = array<i64: 1, 3, 512>}, {transform_indices = @transform_3, window_bounds = array<i64: 1, 48, 384>}]} {
    %cst = arith.constant 0.000000e+00 : f32
    %0 = vector.broadcast %cst : f32 to vector<48x384xf32>
    %c0 = arith.constant 0 : index
    %c0_0 = arith.constant 0 : index
    %c0_1 = arith.constant 0 : index
    %1 = vector.load %arg4[%c0, %c0_0, %c0_1] : memref<1x3x512xf32, #tpu.memory_space<vmem>>, vector<1x3x384xf32>
    %2 = vector.shape_cast %1 : vector<1x3x384xf32> to vector<3x384xf32>
    %c0_2 = arith.constant 0 : index
    %c0_3 = arith.constant 0 : index
    %c0_4 = arith.constant 0 : index
    %3 = vector.load %arg2[%c0_2, %c0_3, %c0_4] : memref<9x48x3xf32, #tpu.memory_space<vmem>>, vector<1x48x3xf32>
    %4 = vector.shape_cast %3 : vector<1x48x3xf32> to vector<48x3xf32>
    %cst_5 = arith.constant dense<0.000000e+00> : vector<48x384xf32>
    %5 = tpu.matmul %4, %2, %cst_5 {dimension_numbers = #tpu.dot_dimension_numbers<[1], [0], [0], [1], [0, 0, 1, 1], [], []>} : vector<48x3xf32>, vector<3x384xf32>, vector<48x384xf32> -> vector<48x384xf32>
    %6 = arith.addf %0, %5 : vector<48x384xf32>
    %c0_6 = arith.constant 0 : index
    %c0_7 = arith.constant 0 : index
    %c1 = arith.constant 1 : index
    %7 = vector.load %arg4[%c0_6, %c0_7, %c1] : memref<1x3x512xf32, #tpu.memory_space<vmem>>, vector<1x3x384xf32>
    %8 = vector.shape_cast %7 : vector<1x3x384xf32> to vector<3x384xf32>
    %c1_8 = arith.constant 1 : index
    %c0_9 = arith.constant 0 : index
    %c0_10 = arith.constant 0 : index
    %9 = vector.load %arg2[%c1_8, %c0_9, %c0_10] : memref<9x48x3xf32, #tpu.memory_space<vmem>>, vector<1x48x3xf32>
    %10 = vector.shape_cast %9 : vector<1x48x3xf32> to vector<48x3xf32>
    %cst_11 = arith.constant dense<0.000000e+00> : vector<48x384xf32>
    %11 = tpu.matmul %10, %8, %cst_11 {dimension_numbers = #tpu.dot_dimension_numbers<[1], [0], [0], [1], [0, 0, 1, 1], [], []>} : vector<48x3xf32>, vector<3x384xf32>, vector<48x384xf32> -> vector<48x384xf32>
    %12 = arith.addf %6, %11 : vector<48x384xf32>
    %c0_12 = arith.constant 0 : index
    %c0_13 = arith.constant 0 : index
    %c2 = arith.constant 2 : index
    %13 = vector.load %arg4[%c0_12, %c0_13, %c2] : memref<1x3x512xf32, #tpu.memory_space<vmem>>, vector<1x3x384xf32>
    %14 = vector.shape_cast %13 : vector<1x3x384xf32> to vector<3x384xf32>
    %c2_14 = arith.constant 2 : index
    %c0_15 = arith.constant 0 : index
    %c0_16 = arith.constant 0 : index
    %15 = vector.load %arg2[%c2_14, %c0_15, %c0_16] : memref<9x48x3xf32, #tpu.memory_space<vmem>>, vector<1x48x3xf32>
    %16 = vector.shape_cast %15 : vector<1x48x3xf32> to vector<48x3xf32>
    %cst_17 = arith.constant dense<0.000000e+00> : vector<48x384xf32>
    %17 = tpu.matmul %16, %14, %cst_17 {dimension_numbers = #tpu.dot_dimension_numbers<[1], [0], [0], [1], [0, 0, 1, 1], [], []>} : vector<48x3xf32>, vector<3x384xf32>, vector<48x384xf32> -> vector<48x384xf32>
    %18 = arith.addf %12, %17 : vector<48x384xf32>
    %c0_18 = arith.constant 0 : index
    %c0_19 = arith.constant 0 : index
    %c18 = arith.constant 18 : index
    %19 = vector.load %arg4[%c0_18, %c0_19, %c18] : memref<1x3x512xf32, #tpu.memory_space<vmem>>, vector<1x3x384xf32>
    %20 = vector.shape_cast %19 : vector<1x3x384xf32> to vector<3x384xf32>
    %c3 = arith.constant 3 : index
    %c0_20 = arith.constant 0 : index
    %c0_21 = arith.constant 0 : index
    %21 = vector.load %arg2[%c3, %c0_20, %c0_21] : memref<9x48x3xf32, #tpu.memory_space<vmem>>, vector<1x48x3xf32>
    %22 = vector.shape_cast %21 : vector<1x48x3xf32> to vector<48x3xf32>
    %cst_22 = arith.constant dense<0.000000e+00> : vector<48x384xf32>
    %23 = tpu.matmul %22, %20, %cst_22 {dimension_numbers = #tpu.dot_dimension_numbers<[1], [0], [0], [1], [0, 0, 1, 1], [], []>} : vector<48x3xf32>, vector<3x384xf32>, vector<48x384xf32> -> vector<48x384xf32>
    %24 = arith.addf %18, %23 : vector<48x384xf32>
    %c0_23 = arith.constant 0 : index
    %c0_24 = arith.constant 0 : index
    %c19 = arith.constant 19 : index
    %25 = vector.load %arg4[%c0_23, %c0_24, %c19] : memref<1x3x512xf32, #tpu.memory_space<vmem>>, vector<1x3x384xf32>
    %26 = vector.shape_cast %25 : vector<1x3x384xf32> to vector<3x384xf32>
    %c4 = arith.constant 4 : index
    %c0_25 = arith.constant 0 : index
    %c0_26 = arith.constant 0 : index
    %27 = vector.load %arg2[%c4, %c0_25, %c0_26] : memref<9x48x3xf32, #tpu.memory_space<vmem>>, vector<1x48x3xf32>
    %28 = vector.shape_cast %27 : vector<1x48x3xf32> to vector<48x3xf32>
    %cst_27 = arith.constant dense<0.000000e+00> : vector<48x384xf32>
    %29 = tpu.matmul %28, %26, %cst_27 {dimension_numbers = #tpu.dot_dimension_numbers<[1], [0], [0], [1], [0, 0, 1, 1], [], []>} : vector<48x3xf32>, vector<3x384xf32>, vector<48x384xf32> -> vector<48x384xf32>
    %30 = arith.addf %24, %29 : vector<48x384xf32>
    %c0_28 = arith.constant 0 : index
    %c0_29 = arith.constant 0 : index
    %c20 = arith.constant 20 : index
    %31 = vector.load %arg4[%c0_28, %c0_29, %c20] : memref<1x3x512xf32, #tpu.memory_space<vmem>>, vector<1x3x384xf32>
    %32 = vector.shape_cast %31 : vector<1x3x384xf32> to vector<3x384xf32>
    %c5 = arith.constant 5 : index
    %c0_30 = arith.constant 0 : index
    %c0_31 = arith.constant 0 : index
    %33 = vector.load %arg2[%c5, %c0_30, %c0_31] : memref<9x48x3xf32, #tpu.memory_space<vmem>>, vector<1x48x3xf32>
    %34 = vector.shape_cast %33 : vector<1x48x3xf32> to vector<48x3xf32>
    %cst_32 = arith.constant dense<0.000000e+00> : vector<48x384xf32>
    %35 = tpu.matmul %34, %32, %cst_32 {dimension_numbers = #tpu.dot_dimension_numbers<[1], [0], [0], [1], [0, 0, 1, 1], [], []>} : vector<48x3xf32>, vector<3x384xf32>, vector<48x384xf32> -> vector<48x384xf32>
    %36 = arith.addf %30, %35 : vector<48x384xf32>
    %c0_33 = arith.constant 0 : index
    %c0_34 = arith.constant 0 : index
    %c36 = arith.constant 36 : index
    %37 = vector.load %arg4[%c0_33, %c0_34, %c36] : memref<1x3x512xf32, #tpu.memory_space<vmem>>, vector<1x3x384xf32>
    %38 = vector.shape_cast %37 : vector<1x3x384xf32> to vector<3x384xf32>
    %c6 = arith.constant 6 : index
    %c0_35 = arith.constant 0 : index
    %c0_36 = arith.constant 0 : index
    %39 = vector.load %arg2[%c6, %c0_35, %c0_36] : memref<9x48x3xf32, #tpu.memory_space<vmem>>, vector<1x48x3xf32>
    %40 = vector.shape_cast %39 : vector<1x48x3xf32> to vector<48x3xf32>
    %cst_37 = arith.constant dense<0.000000e+00> : vector<48x384xf32>
    %41 = tpu.matmul %40, %38, %cst_37 {dimension_numbers = #tpu.dot_dimension_numbers<[1], [0], [0], [1], [0, 0, 1, 1], [], []>} : vector<48x3xf32>, vector<3x384xf32>, vector<48x384xf32> -> vector<48x384xf32>
    %42 = arith.addf %36, %41 : vector<48x384xf32>
    %c0_38 = arith.constant 0 : index
    %c0_39 = arith.constant 0 : index
    %c37 = arith.constant 37 : index
    %43 = vector.load %arg4[%c0_38, %c0_39, %c37] : memref<1x3x512xf32, #tpu.memory_space<vmem>>, vector<1x3x384xf32>
    %44 = vector.shape_cast %43 : vector<1x3x384xf32> to vector<3x384xf32>
    %c7 = arith.constant 7 : index
    %c0_40 = arith.constant 0 : index
    %c0_41 = arith.constant 0 : index
    %45 = vector.load %arg2[%c7, %c0_40, %c0_41] : memref<9x48x3xf32, #tpu.memory_space<vmem>>, vector<1x48x3xf32>
    %46 = vector.shape_cast %45 : vector<1x48x3xf32> to vector<48x3xf32>
    %cst_42 = arith.constant dense<0.000000e+00> : vector<48x384xf32>
    %47 = tpu.matmul %46, %44, %cst_42 {dimension_numbers = #tpu.dot_dimension_numbers<[1], [0], [0], [1], [0, 0, 1, 1], [], []>} : vector<48x3xf32>, vector<3x384xf32>, vector<48x384xf32> -> vector<48x384xf32>
    %48 = arith.addf %42, %47 : vector<48x384xf32>
    %c0_43 = arith.constant 0 : index
    %c0_44 = arith.constant 0 : index
    %c38 = arith.constant 38 : index
    %49 = vector.load %arg4[%c0_43, %c0_44, %c38] : memref<1x3x512xf32, #tpu.memory_space<vmem>>, vector<1x3x384xf32>
    %50 = vector.shape_cast %49 : vector<1x3x384xf32> to vector<3x384xf32>
    %c8 = arith.constant 8 : index
    %c0_45 = arith.constant 0 : index
    %c0_46 = arith.constant 0 : index
    %51 = vector.load %arg2[%c8, %c0_45, %c0_46] : memref<9x48x3xf32, #tpu.memory_space<vmem>>, vector<1x48x3xf32>
    %52 = vector.shape_cast %51 : vector<1x48x3xf32> to vector<48x3xf32>
    %cst_47 = arith.constant dense<0.000000e+00> : vector<48x384xf32>
    %53 = tpu.matmul %52, %50, %cst_47 {dimension_numbers = #tpu.dot_dimension_numbers<[1], [0], [0], [1], [0, 0, 1, 1], [], []>} : vector<48x3xf32>, vector<3x384xf32>, vector<48x384xf32> -> vector<48x384xf32>
    %54 = arith.addf %48, %53 : vector<48x384xf32>
    %c0_48 = arith.constant 0 : index
    %c0_49 = arith.constant 0 : index
    %55 = vector.load %arg3[%c0_48, %c0_49] : memref<48x1xf32, #tpu.memory_space<vmem>>, vector<48x1xf32>
    %56 = vector.broadcast %55 : vector<48x1xf32> to vector<48x384xf32>
    %57 = arith.addf %54, %56 : vector<48x384xf32>
    %cst_50 = arith.constant 0.000000e+00 : f32
    %58 = vector.broadcast %cst_50 : f32 to vector<48x384xf32>
    %59 = arith.cmpf oge, %57, %58 : vector<48x384xf32>
    %cst_51 = arith.constant 2.000000e-01 : f32
    %60 = vector.broadcast %cst_51 : f32 to vector<48x384xf32>
    %61 = arith.mulf %60, %57 : vector<48x384xf32>
    %62 = arith.select %59, %57, %61 : vector<48x384xi1>, vector<48x384xf32>
    %c0_52 = arith.constant 0 : index
    %c0_53 = arith.constant 0 : index
    %c0_54 = arith.constant 0 : index
    %63 = vector.load %arg5[%c0_52, %c0_53, %c0_54] : memref<1x48x384xf32, #tpu.memory_space<vmem>>, vector<1x48x384xf32>
    %64 = vector.shape_cast %63 : vector<1x48x384xf32> to vector<48x384xf32>
    %65 = vector.shape_cast %62 : vector<48x384xf32> to vector<1x48x384xf32>
    tpu.vector_store %arg5[%c0_52, %c0_53, %c0_54], %65 {strides = array<i32>} : memref<1x48x384xf32, #tpu.memory_space<vmem>>, vector<1x48x384xf32>,
    return
  }
  func.func @transform_0(%arg0: i32, %arg1: i32) -> (i32, i32, i32) {
    %c0_i32 = arith.constant 0 : i32
    %c0_i32_0 = arith.constant 0 : i32
    %c0_i32_1 = arith.constant 0 : i32
    return %c0_i32, %arg1, %c0_i32_0 : i32, i32, i32
  }
  func.func @transform_1(%arg0: i32, %arg1: i32) -> (i32, i32) {
    %c0_i32 = arith.constant 0 : i32
    %c0_i32_0 = arith.constant 0 : i32
    return %arg1, %c0_i32 : i32, i32
  }
  func.func @transform_2(%arg0: i32, %arg1: i32) -> (i32, i32, i32) {
    %c0_i32 = arith.constant 0 : i32
    %c0_i32_0 = arith.constant 0 : i32
    %c0_i32_1 = arith.constant 0 : i32
    return %arg0, %c0_i32, %c0_i32_0 : i32, i32, i32
  }
  func.func @transform_3(%arg0: i32, %arg1: i32) -> (i32, i32, i32) {
    %c0_i32 = arith.constant 0 : i32
    %c0_i32_0 = arith.constant 0 : i32
    return %arg0, %arg1, %c0_i32 : i32, i32, i32
  }
}

module attributes {stable_mosaic.version = 11 : i64} {
  func.func @_conv3x3_kernel(%arg0: i32, %arg1: i32, %arg2: memref<1x9x16x16xf32, #tpu.memory_space<vmem>>, %arg3: memref<1x16x1xf32, #tpu.memory_space<vmem>>, %arg4: memref<1x1x16x512xf32, #tpu.memory_space<vmem>>, %arg5: memref<1x1x16x384xf32, #tpu.memory_space<vmem>>) attributes {dimension_semantics = [#tpu.dimension_semantics<parallel>, #tpu.dimension_semantics<parallel>], iteration_bounds = array<i64: 2, 3>, scalar_prefetch = 0 : i64, scratch_operands = 0 : i64, tpu.core_type = #tpu.core_type<tc>, window_params = [{transform_indices = @transform_0, window_bounds = array<i64: 1, 9, 16, 16>}, {transform_indices = @transform_1, window_bounds = array<i64: 1, 16, 1>}, {transform_indices = @transform_2, window_bounds = array<i64: 1, 1, 16, 512>}, {transform_indices = @transform_3, window_bounds = array<i64: 1, 1, 16, 384>}]} {
    %cst = arith.constant 0.000000e+00 : f32
    %0 = vector.broadcast %cst : f32 to vector<16x384xf32>
    %c0 = arith.constant 0 : index
    %c0_0 = arith.constant 0 : index
    %c0_1 = arith.constant 0 : index
    %c0_2 = arith.constant 0 : index
    %1 = vector.load %arg4[%c0, %c0_0, %c0_1, %c0_2] : memref<1x1x16x512xf32, #tpu.memory_space<vmem>>, vector<1x1x16x384xf32>
    %2 = vector.shape_cast %1 : vector<1x1x16x384xf32> to vector<16x384xf32>
    %c0_3 = arith.constant 0 : index
    %c0_4 = arith.constant 0 : index
    %c0_5 = arith.constant 0 : index
    %c0_6 = arith.constant 0 : index
    %3 = vector.load %arg2[%c0_3, %c0_4, %c0_5, %c0_6] : memref<1x9x16x16xf32, #tpu.memory_space<vmem>>, vector<1x1x16x16xf32>
    %4 = vector.shape_cast %3 : vector<1x1x16x16xf32> to vector<16x16xf32>
    %cst_7 = arith.constant dense<0.000000e+00> : vector<16x384xf32>
    %5 = tpu.matmul %4, %2, %cst_7 {dimension_numbers = #tpu.dot_dimension_numbers<[1], [0], [0], [1], [0, 0, 1, 1], [], []>} : vector<16x16xf32>, vector<16x384xf32>, vector<16x384xf32> -> vector<16x384xf32>
    %6 = arith.addf %0, %5 : vector<16x384xf32>
    %c0_8 = arith.constant 0 : index
    %c0_9 = arith.constant 0 : index
    %c0_10 = arith.constant 0 : index
    %c1 = arith.constant 1 : index
    %7 = vector.load %arg4[%c0_8, %c0_9, %c0_10, %c1] : memref<1x1x16x512xf32, #tpu.memory_space<vmem>>, vector<1x1x16x384xf32>
    %8 = vector.shape_cast %7 : vector<1x1x16x384xf32> to vector<16x384xf32>
    %c0_11 = arith.constant 0 : index
    %c1_12 = arith.constant 1 : index
    %c0_13 = arith.constant 0 : index
    %c0_14 = arith.constant 0 : index
    %9 = vector.load %arg2[%c0_11, %c1_12, %c0_13, %c0_14] : memref<1x9x16x16xf32, #tpu.memory_space<vmem>>, vector<1x1x16x16xf32>
    %10 = vector.shape_cast %9 : vector<1x1x16x16xf32> to vector<16x16xf32>
    %cst_15 = arith.constant dense<0.000000e+00> : vector<16x384xf32>
    %11 = tpu.matmul %10, %8, %cst_15 {dimension_numbers = #tpu.dot_dimension_numbers<[1], [0], [0], [1], [0, 0, 1, 1], [], []>} : vector<16x16xf32>, vector<16x384xf32>, vector<16x384xf32> -> vector<16x384xf32>
    %12 = arith.addf %6, %11 : vector<16x384xf32>
    %c0_16 = arith.constant 0 : index
    %c0_17 = arith.constant 0 : index
    %c0_18 = arith.constant 0 : index
    %c2 = arith.constant 2 : index
    %13 = vector.load %arg4[%c0_16, %c0_17, %c0_18, %c2] : memref<1x1x16x512xf32, #tpu.memory_space<vmem>>, vector<1x1x16x384xf32>
    %14 = vector.shape_cast %13 : vector<1x1x16x384xf32> to vector<16x384xf32>
    %c0_19 = arith.constant 0 : index
    %c2_20 = arith.constant 2 : index
    %c0_21 = arith.constant 0 : index
    %c0_22 = arith.constant 0 : index
    %15 = vector.load %arg2[%c0_19, %c2_20, %c0_21, %c0_22] : memref<1x9x16x16xf32, #tpu.memory_space<vmem>>, vector<1x1x16x16xf32>
    %16 = vector.shape_cast %15 : vector<1x1x16x16xf32> to vector<16x16xf32>
    %cst_23 = arith.constant dense<0.000000e+00> : vector<16x384xf32>
    %17 = tpu.matmul %16, %14, %cst_23 {dimension_numbers = #tpu.dot_dimension_numbers<[1], [0], [0], [1], [0, 0, 1, 1], [], []>} : vector<16x16xf32>, vector<16x384xf32>, vector<16x384xf32> -> vector<16x384xf32>
    %18 = arith.addf %12, %17 : vector<16x384xf32>
    %c0_24 = arith.constant 0 : index
    %c0_25 = arith.constant 0 : index
    %c0_26 = arith.constant 0 : index
    %c18 = arith.constant 18 : index
    %19 = vector.load %arg4[%c0_24, %c0_25, %c0_26, %c18] : memref<1x1x16x512xf32, #tpu.memory_space<vmem>>, vector<1x1x16x384xf32>
    %20 = vector.shape_cast %19 : vector<1x1x16x384xf32> to vector<16x384xf32>
    %c0_27 = arith.constant 0 : index
    %c3 = arith.constant 3 : index
    %c0_28 = arith.constant 0 : index
    %c0_29 = arith.constant 0 : index
    %21 = vector.load %arg2[%c0_27, %c3, %c0_28, %c0_29] : memref<1x9x16x16xf32, #tpu.memory_space<vmem>>, vector<1x1x16x16xf32>
    %22 = vector.shape_cast %21 : vector<1x1x16x16xf32> to vector<16x16xf32>
    %cst_30 = arith.constant dense<0.000000e+00> : vector<16x384xf32>
    %23 = tpu.matmul %22, %20, %cst_30 {dimension_numbers = #tpu.dot_dimension_numbers<[1], [0], [0], [1], [0, 0, 1, 1], [], []>} : vector<16x16xf32>, vector<16x384xf32>, vector<16x384xf32> -> vector<16x384xf32>
    %24 = arith.addf %18, %23 : vector<16x384xf32>
    %c0_31 = arith.constant 0 : index
    %c0_32 = arith.constant 0 : index
    %c0_33 = arith.constant 0 : index
    %c19 = arith.constant 19 : index
    %25 = vector.load %arg4[%c0_31, %c0_32, %c0_33, %c19] : memref<1x1x16x512xf32, #tpu.memory_space<vmem>>, vector<1x1x16x384xf32>
    %26 = vector.shape_cast %25 : vector<1x1x16x384xf32> to vector<16x384xf32>
    %c0_34 = arith.constant 0 : index
    %c4 = arith.constant 4 : index
    %c0_35 = arith.constant 0 : index
    %c0_36 = arith.constant 0 : index
    %27 = vector.load %arg2[%c0_34, %c4, %c0_35, %c0_36] : memref<1x9x16x16xf32, #tpu.memory_space<vmem>>, vector<1x1x16x16xf32>
    %28 = vector.shape_cast %27 : vector<1x1x16x16xf32> to vector<16x16xf32>
    %cst_37 = arith.constant dense<0.000000e+00> : vector<16x384xf32>
    %29 = tpu.matmul %28, %26, %cst_37 {dimension_numbers = #tpu.dot_dimension_numbers<[1], [0], [0], [1], [0, 0, 1, 1], [], []>} : vector<16x16xf32>, vector<16x384xf32>, vector<16x384xf32> -> vector<16x384xf32>
    %30 = arith.addf %24, %29 : vector<16x384xf32>
    %c0_38 = arith.constant 0 : index
    %c0_39 = arith.constant 0 : index
    %c0_40 = arith.constant 0 : index
    %c20 = arith.constant 20 : index
    %31 = vector.load %arg4[%c0_38, %c0_39, %c0_40, %c20] : memref<1x1x16x512xf32, #tpu.memory_space<vmem>>, vector<1x1x16x384xf32>
    %32 = vector.shape_cast %31 : vector<1x1x16x384xf32> to vector<16x384xf32>
    %c0_41 = arith.constant 0 : index
    %c5 = arith.constant 5 : index
    %c0_42 = arith.constant 0 : index
    %c0_43 = arith.constant 0 : index
    %33 = vector.load %arg2[%c0_41, %c5, %c0_42, %c0_43] : memref<1x9x16x16xf32, #tpu.memory_space<vmem>>, vector<1x1x16x16xf32>
    %34 = vector.shape_cast %33 : vector<1x1x16x16xf32> to vector<16x16xf32>
    %cst_44 = arith.constant dense<0.000000e+00> : vector<16x384xf32>
    %35 = tpu.matmul %34, %32, %cst_44 {dimension_numbers = #tpu.dot_dimension_numbers<[1], [0], [0], [1], [0, 0, 1, 1], [], []>} : vector<16x16xf32>, vector<16x384xf32>, vector<16x384xf32> -> vector<16x384xf32>
    %36 = arith.addf %30, %35 : vector<16x384xf32>
    %c0_45 = arith.constant 0 : index
    %c0_46 = arith.constant 0 : index
    %c0_47 = arith.constant 0 : index
    %c36 = arith.constant 36 : index
    %37 = vector.load %arg4[%c0_45, %c0_46, %c0_47, %c36] : memref<1x1x16x512xf32, #tpu.memory_space<vmem>>, vector<1x1x16x384xf32>
    %38 = vector.shape_cast %37 : vector<1x1x16x384xf32> to vector<16x384xf32>
    %c0_48 = arith.constant 0 : index
    %c6 = arith.constant 6 : index
    %c0_49 = arith.constant 0 : index
    %c0_50 = arith.constant 0 : index
    %39 = vector.load %arg2[%c0_48, %c6, %c0_49, %c0_50] : memref<1x9x16x16xf32, #tpu.memory_space<vmem>>, vector<1x1x16x16xf32>
    %40 = vector.shape_cast %39 : vector<1x1x16x16xf32> to vector<16x16xf32>
    %cst_51 = arith.constant dense<0.000000e+00> : vector<16x384xf32>
    %41 = tpu.matmul %40, %38, %cst_51 {dimension_numbers = #tpu.dot_dimension_numbers<[1], [0], [0], [1], [0, 0, 1, 1], [], []>} : vector<16x16xf32>, vector<16x384xf32>, vector<16x384xf32> -> vector<16x384xf32>
    %42 = arith.addf %36, %41 : vector<16x384xf32>
    %c0_52 = arith.constant 0 : index
    %c0_53 = arith.constant 0 : index
    %c0_54 = arith.constant 0 : index
    %c37 = arith.constant 37 : index
    %43 = vector.load %arg4[%c0_52, %c0_53, %c0_54, %c37] : memref<1x1x16x512xf32, #tpu.memory_space<vmem>>, vector<1x1x16x384xf32>
    %44 = vector.shape_cast %43 : vector<1x1x16x384xf32> to vector<16x384xf32>
    %c0_55 = arith.constant 0 : index
    %c7 = arith.constant 7 : index
    %c0_56 = arith.constant 0 : index
    %c0_57 = arith.constant 0 : index
    %45 = vector.load %arg2[%c0_55, %c7, %c0_56, %c0_57] : memref<1x9x16x16xf32, #tpu.memory_space<vmem>>, vector<1x1x16x16xf32>
    %46 = vector.shape_cast %45 : vector<1x1x16x16xf32> to vector<16x16xf32>
    %cst_58 = arith.constant dense<0.000000e+00> : vector<16x384xf32>
    %47 = tpu.matmul %46, %44, %cst_58 {dimension_numbers = #tpu.dot_dimension_numbers<[1], [0], [0], [1], [0, 0, 1, 1], [], []>} : vector<16x16xf32>, vector<16x384xf32>, vector<16x384xf32> -> vector<16x384xf32>
    %48 = arith.addf %42, %47 : vector<16x384xf32>
    %c0_59 = arith.constant 0 : index
    %c0_60 = arith.constant 0 : index
    %c0_61 = arith.constant 0 : index
    %c38 = arith.constant 38 : index
    %49 = vector.load %arg4[%c0_59, %c0_60, %c0_61, %c38] : memref<1x1x16x512xf32, #tpu.memory_space<vmem>>, vector<1x1x16x384xf32>
    %50 = vector.shape_cast %49 : vector<1x1x16x384xf32> to vector<16x384xf32>
    %c0_62 = arith.constant 0 : index
    %c8 = arith.constant 8 : index
    %c0_63 = arith.constant 0 : index
    %c0_64 = arith.constant 0 : index
    %51 = vector.load %arg2[%c0_62, %c8, %c0_63, %c0_64] : memref<1x9x16x16xf32, #tpu.memory_space<vmem>>, vector<1x1x16x16xf32>
    %52 = vector.shape_cast %51 : vector<1x1x16x16xf32> to vector<16x16xf32>
    %cst_65 = arith.constant dense<0.000000e+00> : vector<16x384xf32>
    %53 = tpu.matmul %52, %50, %cst_65 {dimension_numbers = #tpu.dot_dimension_numbers<[1], [0], [0], [1], [0, 0, 1, 1], [], []>} : vector<16x16xf32>, vector<16x384xf32>, vector<16x384xf32> -> vector<16x384xf32>
    %54 = arith.addf %48, %53 : vector<16x384xf32>
    %c0_66 = arith.constant 0 : index
    %c0_67 = arith.constant 0 : index
    %c0_68 = arith.constant 0 : index
    %55 = vector.load %arg3[%c0_66, %c0_67, %c0_68] : memref<1x16x1xf32, #tpu.memory_space<vmem>>, vector<1x16x1xf32>
    %56 = vector.shape_cast %55 : vector<1x16x1xf32> to vector<16x1xf32>
    %57 = vector.broadcast %56 : vector<16x1xf32> to vector<16x384xf32>
    %58 = arith.addf %54, %57 : vector<16x384xf32>
    %c0_69 = arith.constant 0 : index
    %c0_70 = arith.constant 0 : index
    %c0_71 = arith.constant 0 : index
    %c0_72 = arith.constant 0 : index
    %59 = vector.load %arg5[%c0_69, %c0_70, %c0_71, %c0_72] : memref<1x1x16x384xf32, #tpu.memory_space<vmem>>, vector<1x1x16x384xf32>
    %60 = vector.shape_cast %59 : vector<1x1x16x384xf32> to vector<16x384xf32>
    %61 = vector.shape_cast %58 : vector<16x384xf32> to vector<1x1x16x384xf32>
    tpu.vector_store %arg5[%c0_69, %c0_70, %c0_71, %c0_72], %61 {strides = array<i32>} : memref<1x1x16x384xf32, #tpu.memory_space<vmem>>, vector<1x1x16x384xf32>,
    return
  }
  func.func @transform_0(%arg0: i32, %arg1: i32) -> (i32, i32, i32, i32) {
    %c0_i32 = arith.constant 0 : i32
    %c0_i32_0 = arith.constant 0 : i32
    %c0_i32_1 = arith.constant 0 : i32
    %c0_i32_2 = arith.constant 0 : i32
    return %arg1, %c0_i32, %c0_i32_0, %c0_i32_1 : i32, i32, i32, i32
  }
  func.func @transform_1(%arg0: i32, %arg1: i32) -> (i32, i32, i32) {
    %c0_i32 = arith.constant 0 : i32
    %c0_i32_0 = arith.constant 0 : i32
    %c0_i32_1 = arith.constant 0 : i32
    return %arg1, %c0_i32, %c0_i32_0 : i32, i32, i32
  }
  func.func @transform_2(%arg0: i32, %arg1: i32) -> (i32, i32, i32, i32) {
    %c0_i32 = arith.constant 0 : i32
    %c0_i32_0 = arith.constant 0 : i32
    %c0_i32_1 = arith.constant 0 : i32
    return %arg0, %arg1, %c0_i32, %c0_i32_0 : i32, i32, i32, i32
  }
  func.func @transform_3(%arg0: i32, %arg1: i32) -> (i32, i32, i32, i32) {
    %c0_i32 = arith.constant 0 : i32
    %c0_i32_0 = arith.constant 0 : i32
    %c0_i32_1 = arith.constant 0 : i32
    return %arg0, %arg1, %c0_i32, %c0_i32_0 : i32, i32, i32, i32
  }
}

module attributes {stable_mosaic.version = 11 : i64} {
  func.func @_gn_film_act_kernel(%arg0: i32, %arg1: memref<8x8xf32, #tpu.memory_space<vmem>>, %arg2: memref<8x1xf32, #tpu.memory_space<vmem>>, %arg3: memref<8x1xf32, #tpu.memory_space<vmem>>, %arg4: memref<1x8x256xf32, #tpu.memory_space<vmem>>, %arg5: memref<1x1x1x8x256xf32, #tpu.memory_space<vmem>>, %arg6: memref<1x1x1x8x256xf32, #tpu.memory_space<vmem>>, %arg7: memref<1x8x256xf32, #tpu.memory_space<vmem>>) attributes {dimension_semantics = [#tpu.dimension_semantics<parallel>], iteration_bounds = array<i64: 2>, scalar_prefetch = 0 : i64, scratch_operands = 0 : i64, tpu.core_type = #tpu.core_type<tc>, window_params = [{pipeline_mode = #tpu.pipeline_mode<synchronous>, transform_indices = @transform_0, window_bounds = array<i64: 8, 8>}, {pipeline_mode = #tpu.pipeline_mode<synchronous>, transform_indices = @transform_1, window_bounds = array<i64: 8, 1>}, {pipeline_mode = #tpu.pipeline_mode<synchronous>, transform_indices = @transform_2, window_bounds = array<i64: 8, 1>}, {transform_indices = @transform_3, window_bounds = array<i64: 1, 8, 256>}, {transform_indices = @transform_4, window_bounds = array<i64: 1, 1, 1, 8, 256>}, {transform_indices = @transform_5, window_bounds = array<i64: 1, 1, 1, 8, 256>}, {transform_indices = @transform_6, window_bounds = array<i64: 1, 8, 256>}]} {
    %c0 = arith.constant 0 : index
    %c0_0 = arith.constant 0 : index
    %c0_1 = arith.constant 0 : index
    %0 = vector.load %arg4[%c0, %c0_0, %c0_1] : memref<1x8x256xf32, #tpu.memory_space<vmem>>, vector<1x8x256xf32>
    %1 = vector.shape_cast %0 : vector<1x8x256xf32> to vector<8x256xf32>
    %c0_2 = arith.constant 0 : index
    %c0_3 = arith.constant 0 : index
    %2 = vector.load %arg1[%c0_2, %c0_3] : memref<8x8xf32, #tpu.memory_space<vmem>>, vector<8x8xf32>
    %cst = arith.constant dense<0.000000e+00> : vector<8xf32>
    %3 = vector.multi_reduction <add>, %1, %cst [1] : vector<8x256xf32> to vector<8xf32>
    %4 = vector.shape_cast %3 : vector<8xf32> to vector<8x1xf32>
    %cst_4 = arith.constant dense<0.000000e+00> : vector<8x1xf32>
    %5 = tpu.matmul %2, %4, %cst_4 {dimension_numbers = #tpu.dot_dimension_numbers<[1], [0], [0], [1], [0, 0, 1, 1], [], []>} : vector<8x8xf32>, vector<8x1xf32>, vector<8x1xf32> -> vector<8x1xf32>
    %6 = vector.broadcast %5 : vector<8x1xf32> to vector<8x256xf32>
    %7 = arith.subf %1, %6 : vector<8x256xf32>
    %8 = arith.mulf %7, %7 : vector<8x256xf32>
    %cst_5 = arith.constant dense<0.000000e+00> : vector<8xf32>
    %9 = vector.multi_reduction <add>, %8, %cst_5 [1] : vector<8x256xf32> to vector<8xf32>
    %10 = vector.shape_cast %9 : vector<8xf32> to vector<8x1xf32>
    %cst_6 = arith.constant dense<0.000000e+00> : vector<8x1xf32>
    %11 = tpu.matmul %2, %10, %cst_6 {dimension_numbers = #tpu.dot_dimension_numbers<[1], [0], [0], [1], [0, 0, 1, 1], [], []>} : vector<8x8xf32>, vector<8x1xf32>, vector<8x1xf32> -> vector<8x1xf32>
    %cst_7 = arith.constant 9.99999974E-6 : f32
    %12 = vector.broadcast %cst_7 : f32 to vector<8x1xf32>
    %13 = arith.addf %11, %12 : vector<8x1xf32>
    %14 = math.rsqrt %13 : vector<8x1xf32>
    %15 = vector.broadcast %14 : vector<8x1xf32> to vector<8x256xf32>
    %16 = arith.mulf %7, %15 : vector<8x256xf32>
    %c0_8 = arith.constant 0 : index
    %c0_9 = arith.constant 0 : index
    %17 = vector.load %arg2[%c0_8, %c0_9] : memref<8x1xf32, #tpu.memory_space<vmem>>, vector<8x1xf32>
    %18 = vector.broadcast %17 : vector<8x1xf32> to vector<8x256xf32>
    %19 = arith.mulf %16, %18 : vector<8x256xf32>
    %c0_10 = arith.constant 0 : index
    %c0_11 = arith.constant 0 : index
    %20 = vector.load %arg3[%c0_10, %c0_11] : memref<8x1xf32, #tpu.memory_space<vmem>>, vector<8x1xf32>
    %21 = vector.broadcast %20 : vector<8x1xf32> to vector<8x256xf32>
    %22 = arith.addf %19, %21 : vector<8x256xf32>
    %c0_12 = arith.constant 0 : index
    %c0_13 = arith.constant 0 : index
    %c0_14 = arith.constant 0 : index
    %c0_15 = arith.constant 0 : index
    %c0_16 = arith.constant 0 : index
    %23 = vector.load %arg5[%c0_12, %c0_13, %c0_14, %c0_15, %c0_16] : memref<1x1x1x8x256xf32, #tpu.memory_space<vmem>>, vector<1x1x1x8x256xf32>
    %24 = vector.shape_cast %23 : vector<1x1x1x8x256xf32> to vector<8x256xf32>
    %cst_17 = arith.constant 1.000000e+00 : f32
    %25 = vector.broadcast %cst_17 : f32 to vector<8x256xf32>
    %26 = arith.addf %25, %24 : vector<8x256xf32>
    %27 = arith.mulf %22, %26 : vector<8x256xf32>
    %c0_18 = arith.constant 0 : index
    %c0_19 = arith.constant 0 : index
    %c0_20 = arith.constant 0 : index
    %c0_21 = arith.constant 0 : index
    %c0_22 = arith.constant 0 : index
    %28 = vector.load %arg6[%c0_18, %c0_19, %c0_20, %c0_21, %c0_22] : memref<1x1x1x8x256xf32, #tpu.memory_space<vmem>>, vector<1x1x1x8x256xf32>
    %29 = vector.shape_cast %28 : vector<1x1x1x8x256xf32> to vector<8x256xf32>
    %30 = arith.addf %27, %29 : vector<8x256xf32>
    %cst_23 = arith.constant 0.000000e+00 : f32
    %31 = vector.broadcast %cst_23 : f32 to vector<8x256xf32>
    %32 = arith.cmpf oge, %30, %31 : vector<8x256xf32>
    %cst_24 = arith.constant 2.000000e-01 : f32
    %33 = vector.broadcast %cst_24 : f32 to vector<8x256xf32>
    %34 = arith.mulf %33, %30 : vector<8x256xf32>
    %35 = arith.select %32, %30, %34 : vector<8x256xi1>, vector<8x256xf32>
    %c0_25 = arith.constant 0 : index
    %c0_26 = arith.constant 0 : index
    %c0_27 = arith.constant 0 : index
    %36 = vector.load %arg7[%c0_25, %c0_26, %c0_27] : memref<1x8x256xf32, #tpu.memory_space<vmem>>, vector<1x8x256xf32>
    %37 = vector.shape_cast %36 : vector<1x8x256xf32> to vector<8x256xf32>
    %38 = vector.shape_cast %35 : vector<8x256xf32> to vector<1x8x256xf32>
    tpu.vector_store %arg7[%c0_25, %c0_26, %c0_27], %38 {strides = array<i32>} : memref<1x8x256xf32, #tpu.memory_space<vmem>>, vector<1x8x256xf32>,
    return
  }
  func.func @transform_0(%arg0: i32) -> (i32, i32) {
    %c0_i32 = arith.constant 0 : i32
    %c0_i32_0 = arith.constant 0 : i32
    %c0_i32_1 = arith.constant 0 : i32
    return %c0_i32, %c0_i32_0 : i32, i32
  }
  func.func @transform_1(%arg0: i32) -> (i32, i32) {
    %c0_i32 = arith.constant 0 : i32
    %c0_i32_0 = arith.constant 0 : i32
    %c0_i32_1 = arith.constant 0 : i32
    return %c0_i32, %c0_i32_0 : i32, i32
  }
  func.func @transform_2(%arg0: i32) -> (i32, i32) {
    %c0_i32 = arith.constant 0 : i32
    %c0_i32_0 = arith.constant 0 : i32
    %c0_i32_1 = arith.constant 0 : i32
    return %c0_i32, %c0_i32_0 : i32, i32
  }
  func.func @transform_3(%arg0: i32) -> (i32, i32, i32) {
    %c0_i32 = arith.constant 0 : i32
    %c0_i32_0 = arith.constant 0 : i32
    %c0_i32_1 = arith.constant 0 : i32
    return %arg0, %c0_i32, %c0_i32_0 : i32, i32, i32
  }
  func.func @transform_4(%arg0: i32) -> (i32, i32, i32, i32, i32) {
    %c2_i32 = arith.constant 2 : i32
    %c0_i32 = arith.constant 0 : i32
    %c0_i32_0 = arith.constant 0 : i32
    %c0_i32_1 = arith.constant 0 : i32
    %c0_i32_2 = arith.constant 0 : i32
    return %arg0, %c2_i32, %c0_i32, %c0_i32_0, %c0_i32_1 : i32, i32, i32, i32, i32
  }
  func.func @transform_5(%arg0: i32) -> (i32, i32, i32, i32, i32) {
    %c2_i32 = arith.constant 2 : i32
    %c1_i32 = arith.constant 1 : i32
    %c0_i32 = arith.constant 0 : i32
    %c0_i32_0 = arith.constant 0 : i32
    %c0_i32_1 = arith.constant 0 : i32
    return %arg0, %c2_i32, %c1_i32, %c0_i32, %c0_i32_0 : i32, i32, i32, i32, i32
  }
  func.func @transform_6(%arg0: i32) -> (i32, i32, i32) {
    %c0_i32 = arith.constant 0 : i32
    %c0_i32_0 = arith.constant 0 : i32
    %c0_i32_1 = arith.constant 0 : i32
    return %arg0, %c0_i32, %c0_i32_0 : i32, i32, i32
  }
}

module attributes {stable_mosaic.version = 11 : i64} {
  func.func @_gn_film_act_kernel(%arg0: i32, %arg1: memref<8x8xf32, #tpu.memory_space<vmem>>, %arg2: memref<8x1xf32, #tpu.memory_space<vmem>>, %arg3: memref<8x1xf32, #tpu.memory_space<vmem>>, %arg4: memref<1x8x256xf32, #tpu.memory_space<vmem>>, %arg5: memref<1x1x1x8x256xf32, #tpu.memory_space<vmem>>, %arg6: memref<1x1x1x8x256xf32, #tpu.memory_space<vmem>>, %arg7: memref<1x8x256xf32, #tpu.memory_space<vmem>>) attributes {dimension_semantics = [#tpu.dimension_semantics<parallel>], iteration_bounds = array<i64: 2>, scalar_prefetch = 0 : i64, scratch_operands = 0 : i64, tpu.core_type = #tpu.core_type<tc>, window_params = [{pipeline_mode = #tpu.pipeline_mode<synchronous>, transform_indices = @transform_0, window_bounds = array<i64: 8, 8>}, {pipeline_mode = #tpu.pipeline_mode<synchronous>, transform_indices = @transform_1, window_bounds = array<i64: 8, 1>}, {pipeline_mode = #tpu.pipeline_mode<synchronous>, transform_indices = @transform_2, window_bounds = array<i64: 8, 1>}, {transform_indices = @transform_3, window_bounds = array<i64: 1, 8, 256>}, {transform_indices = @transform_4, window_bounds = array<i64: 1, 1, 1, 8, 256>}, {transform_indices = @transform_5, window_bounds = array<i64: 1, 1, 1, 8, 256>}, {transform_indices = @transform_6, window_bounds = array<i64: 1, 8, 256>}]} {
    %c0 = arith.constant 0 : index
    %c0_0 = arith.constant 0 : index
    %c0_1 = arith.constant 0 : index
    %0 = vector.load %arg4[%c0, %c0_0, %c0_1] : memref<1x8x256xf32, #tpu.memory_space<vmem>>, vector<1x8x256xf32>
    %1 = vector.shape_cast %0 : vector<1x8x256xf32> to vector<8x256xf32>
    %c0_2 = arith.constant 0 : index
    %c0_3 = arith.constant 0 : index
    %2 = vector.load %arg1[%c0_2, %c0_3] : memref<8x8xf32, #tpu.memory_space<vmem>>, vector<8x8xf32>
    %cst = arith.constant dense<0.000000e+00> : vector<8xf32>
    %3 = vector.multi_reduction <add>, %1, %cst [1] : vector<8x256xf32> to vector<8xf32>
    %4 = vector.shape_cast %3 : vector<8xf32> to vector<8x1xf32>
    %cst_4 = arith.constant dense<0.000000e+00> : vector<8x1xf32>
    %5 = tpu.matmul %2, %4, %cst_4 {dimension_numbers = #tpu.dot_dimension_numbers<[1], [0], [0], [1], [0, 0, 1, 1], [], []>} : vector<8x8xf32>, vector<8x1xf32>, vector<8x1xf32> -> vector<8x1xf32>
    %6 = vector.broadcast %5 : vector<8x1xf32> to vector<8x256xf32>
    %7 = arith.subf %1, %6 : vector<8x256xf32>
    %8 = arith.mulf %7, %7 : vector<8x256xf32>
    %cst_5 = arith.constant dense<0.000000e+00> : vector<8xf32>
    %9 = vector.multi_reduction <add>, %8, %cst_5 [1] : vector<8x256xf32> to vector<8xf32>
    %10 = vector.shape_cast %9 : vector<8xf32> to vector<8x1xf32>
    %cst_6 = arith.constant dense<0.000000e+00> : vector<8x1xf32>
    %11 = tpu.matmul %2, %10, %cst_6 {dimension_numbers = #tpu.dot_dimension_numbers<[1], [0], [0], [1], [0, 0, 1, 1], [], []>} : vector<8x8xf32>, vector<8x1xf32>, vector<8x1xf32> -> vector<8x1xf32>
    %cst_7 = arith.constant 9.99999974E-6 : f32
    %12 = vector.broadcast %cst_7 : f32 to vector<8x1xf32>
    %13 = arith.addf %11, %12 : vector<8x1xf32>
    %14 = math.rsqrt %13 : vector<8x1xf32>
    %15 = vector.broadcast %14 : vector<8x1xf32> to vector<8x256xf32>
    %16 = arith.mulf %7, %15 : vector<8x256xf32>
    %c0_8 = arith.constant 0 : index
    %c0_9 = arith.constant 0 : index
    %17 = vector.load %arg2[%c0_8, %c0_9] : memref<8x1xf32, #tpu.memory_space<vmem>>, vector<8x1xf32>
    %18 = vector.broadcast %17 : vector<8x1xf32> to vector<8x256xf32>
    %19 = arith.mulf %16, %18 : vector<8x256xf32>
    %c0_10 = arith.constant 0 : index
    %c0_11 = arith.constant 0 : index
    %20 = vector.load %arg3[%c0_10, %c0_11] : memref<8x1xf32, #tpu.memory_space<vmem>>, vector<8x1xf32>
    %21 = vector.broadcast %20 : vector<8x1xf32> to vector<8x256xf32>
    %22 = arith.addf %19, %21 : vector<8x256xf32>
    %c0_12 = arith.constant 0 : index
    %c0_13 = arith.constant 0 : index
    %c0_14 = arith.constant 0 : index
    %c0_15 = arith.constant 0 : index
    %c0_16 = arith.constant 0 : index
    %23 = vector.load %arg5[%c0_12, %c0_13, %c0_14, %c0_15, %c0_16] : memref<1x1x1x8x256xf32, #tpu.memory_space<vmem>>, vector<1x1x1x8x256xf32>
    %24 = vector.shape_cast %23 : vector<1x1x1x8x256xf32> to vector<8x256xf32>
    %cst_17 = arith.constant 1.000000e+00 : f32
    %25 = vector.broadcast %cst_17 : f32 to vector<8x256xf32>
    %26 = arith.addf %25, %24 : vector<8x256xf32>
    %27 = arith.mulf %22, %26 : vector<8x256xf32>
    %c0_18 = arith.constant 0 : index
    %c0_19 = arith.constant 0 : index
    %c0_20 = arith.constant 0 : index
    %c0_21 = arith.constant 0 : index
    %c0_22 = arith.constant 0 : index
    %28 = vector.load %arg6[%c0_18, %c0_19, %c0_20, %c0_21, %c0_22] : memref<1x1x1x8x256xf32, #tpu.memory_space<vmem>>, vector<1x1x1x8x256xf32>
    %29 = vector.shape_cast %28 : vector<1x1x1x8x256xf32> to vector<8x256xf32>
    %30 = arith.addf %27, %29 : vector<8x256xf32>
    %cst_23 = arith.constant 0.000000e+00 : f32
    %31 = vector.broadcast %cst_23 : f32 to vector<8x256xf32>
    %32 = arith.cmpf oge, %30, %31 : vector<8x256xf32>
    %cst_24 = arith.constant 2.000000e-01 : f32
    %33 = vector.broadcast %cst_24 : f32 to vector<8x256xf32>
    %34 = arith.mulf %33, %30 : vector<8x256xf32>
    %35 = arith.select %32, %30, %34 : vector<8x256xi1>, vector<8x256xf32>
    %c0_25 = arith.constant 0 : index
    %c0_26 = arith.constant 0 : index
    %c0_27 = arith.constant 0 : index
    %36 = vector.load %arg7[%c0_25, %c0_26, %c0_27] : memref<1x8x256xf32, #tpu.memory_space<vmem>>, vector<1x8x256xf32>
    %37 = vector.shape_cast %36 : vector<1x8x256xf32> to vector<8x256xf32>
    %38 = vector.shape_cast %35 : vector<8x256xf32> to vector<1x8x256xf32>
    tpu.vector_store %arg7[%c0_25, %c0_26, %c0_27], %38 {strides = array<i32>} : memref<1x8x256xf32, #tpu.memory_space<vmem>>, vector<1x8x256xf32>,
    return
  }
  func.func @transform_0(%arg0: i32) -> (i32, i32) {
    %c0_i32 = arith.constant 0 : i32
    %c0_i32_0 = arith.constant 0 : i32
    %c0_i32_1 = arith.constant 0 : i32
    return %c0_i32, %c0_i32_0 : i32, i32
  }
  func.func @transform_1(%arg0: i32) -> (i32, i32) {
    %c0_i32 = arith.constant 0 : i32
    %c0_i32_0 = arith.constant 0 : i32
    %c0_i32_1 = arith.constant 0 : i32
    return %c0_i32, %c0_i32_0 : i32, i32
  }
  func.func @transform_2(%arg0: i32) -> (i32, i32) {
    %c0_i32 = arith.constant 0 : i32
    %c0_i32_0 = arith.constant 0 : i32
    %c0_i32_1 = arith.constant 0 : i32
    return %c0_i32, %c0_i32_0 : i32, i32
  }
  func.func @transform_3(%arg0: i32) -> (i32, i32, i32) {
    %c0_i32 = arith.constant 0 : i32
    %c0_i32_0 = arith.constant 0 : i32
    %c0_i32_1 = arith.constant 0 : i32
    return %arg0, %c0_i32, %c0_i32_0 : i32, i32, i32
  }
  func.func @transform_4(%arg0: i32) -> (i32, i32, i32, i32, i32) {
    %c0_i32 = arith.constant 0 : i32
    %c0_i32_0 = arith.constant 0 : i32
    %c0_i32_1 = arith.constant 0 : i32
    %c0_i32_2 = arith.constant 0 : i32
    %c0_i32_3 = arith.constant 0 : i32
    return %arg0, %c0_i32, %c0_i32_0, %c0_i32_1, %c0_i32_2 : i32, i32, i32, i32, i32
  }
  func.func @transform_5(%arg0: i32) -> (i32, i32, i32, i32, i32) {
    %c0_i32 = arith.constant 0 : i32
    %c1_i32 = arith.constant 1 : i32
    %c0_i32_0 = arith.constant 0 : i32
    %c0_i32_1 = arith.constant 0 : i32
    %c0_i32_2 = arith.constant 0 : i32
    return %arg0, %c0_i32, %c1_i32, %c0_i32_0, %c0_i32_1 : i32, i32, i32, i32, i32
  }
  func.func @transform_6(%arg0: i32) -> (i32, i32, i32) {
    %c0_i32 = arith.constant 0 : i32
    %c0_i32_0 = arith.constant 0 : i32
    %c0_i32_1 = arith.constant 0 : i32
    return %arg0, %c0_i32, %c0_i32_0 : i32, i32, i32
  }
}

module attributes {stable_mosaic.version = 11 : i64} {
  func.func @_conv3x3_kernel(%arg0: i32, %arg1: i32, %arg2: memref<9x8x8xf32, #tpu.memory_space<vmem>>, %arg3: memref<8x1xf32, #tpu.memory_space<vmem>>, %arg4: memref<1x8x512xf32, #tpu.memory_space<vmem>>, %arg5: memref<1x8x384xf32, #tpu.memory_space<vmem>>) attributes {dimension_semantics = [#tpu.dimension_semantics<parallel>, #tpu.dimension_semantics<parallel>], iteration_bounds = array<i64: 2, 1>, scalar_prefetch = 0 : i64, scratch_operands = 0 : i64, tpu.core_type = #tpu.core_type<tc>, window_params = [{transform_indices = @transform_0, window_bounds = array<i64: 9, 8, 8>}, {transform_indices = @transform_1, window_bounds = array<i64: 8, 1>}, {transform_indices = @transform_2, window_bounds = array<i64: 1, 8, 512>}, {transform_indices = @transform_3, window_bounds = array<i64: 1, 8, 384>}]} {
    %cst = arith.constant 0.000000e+00 : f32
    %0 = vector.broadcast %cst : f32 to vector<8x384xf32>
    %c0 = arith.constant 0 : index
    %c0_0 = arith.constant 0 : index
    %c0_1 = arith.constant 0 : index
    %1 = vector.load %arg4[%c0, %c0_0, %c0_1] : memref<1x8x512xf32, #tpu.memory_space<vmem>>, vector<1x8x384xf32>
    %2 = vector.shape_cast %1 : vector<1x8x384xf32> to vector<8x384xf32>
    %c0_2 = arith.constant 0 : index
    %c0_3 = arith.constant 0 : index
    %c0_4 = arith.constant 0 : index
    %3 = vector.load %arg2[%c0_2, %c0_3, %c0_4] : memref<9x8x8xf32, #tpu.memory_space<vmem>>, vector<1x8x8xf32>
    %4 = vector.shape_cast %3 : vector<1x8x8xf32> to vector<8x8xf32>
    %cst_5 = arith.constant dense<0.000000e+00> : vector<8x384xf32>
    %5 = tpu.matmul %4, %2, %cst_5 {dimension_numbers = #tpu.dot_dimension_numbers<[1], [0], [0], [1], [0, 0, 1, 1], [], []>} : vector<8x8xf32>, vector<8x384xf32>, vector<8x384xf32> -> vector<8x384xf32>
    %6 = arith.addf %0, %5 : vector<8x384xf32>
    %c0_6 = arith.constant 0 : index
    %c0_7 = arith.constant 0 : index
    %c1 = arith.constant 1 : index
    %7 = vector.load %arg4[%c0_6, %c0_7, %c1] : memref<1x8x512xf32, #tpu.memory_space<vmem>>, vector<1x8x384xf32>
    %8 = vector.shape_cast %7 : vector<1x8x384xf32> to vector<8x384xf32>
    %c1_8 = arith.constant 1 : index
    %c0_9 = arith.constant 0 : index
    %c0_10 = arith.constant 0 : index
    %9 = vector.load %arg2[%c1_8, %c0_9, %c0_10] : memref<9x8x8xf32, #tpu.memory_space<vmem>>, vector<1x8x8xf32>
    %10 = vector.shape_cast %9 : vector<1x8x8xf32> to vector<8x8xf32>
    %cst_11 = arith.constant dense<0.000000e+00> : vector<8x384xf32>
    %11 = tpu.matmul %10, %8, %cst_11 {dimension_numbers = #tpu.dot_dimension_numbers<[1], [0], [0], [1], [0, 0, 1, 1], [], []>} : vector<8x8xf32>, vector<8x384xf32>, vector<8x384xf32> -> vector<8x384xf32>
    %12 = arith.addf %6, %11 : vector<8x384xf32>
    %c0_12 = arith.constant 0 : index
    %c0_13 = arith.constant 0 : index
    %c2 = arith.constant 2 : index
    %13 = vector.load %arg4[%c0_12, %c0_13, %c2] : memref<1x8x512xf32, #tpu.memory_space<vmem>>, vector<1x8x384xf32>
    %14 = vector.shape_cast %13 : vector<1x8x384xf32> to vector<8x384xf32>
    %c2_14 = arith.constant 2 : index
    %c0_15 = arith.constant 0 : index
    %c0_16 = arith.constant 0 : index
    %15 = vector.load %arg2[%c2_14, %c0_15, %c0_16] : memref<9x8x8xf32, #tpu.memory_space<vmem>>, vector<1x8x8xf32>
    %16 = vector.shape_cast %15 : vector<1x8x8xf32> to vector<8x8xf32>
    %cst_17 = arith.constant dense<0.000000e+00> : vector<8x384xf32>
    %17 = tpu.matmul %16, %14, %cst_17 {dimension_numbers = #tpu.dot_dimension_numbers<[1], [0], [0], [1], [0, 0, 1, 1], [], []>} : vector<8x8xf32>, vector<8x384xf32>, vector<8x384xf32> -> vector<8x384xf32>
    %18 = arith.addf %12, %17 : vector<8x384xf32>
    %c0_18 = arith.constant 0 : index
    %c0_19 = arith.constant 0 : index
    %c18 = arith.constant 18 : index
    %19 = vector.load %arg4[%c0_18, %c0_19, %c18] : memref<1x8x512xf32, #tpu.memory_space<vmem>>, vector<1x8x384xf32>
    %20 = vector.shape_cast %19 : vector<1x8x384xf32> to vector<8x384xf32>
    %c3 = arith.constant 3 : index
    %c0_20 = arith.constant 0 : index
    %c0_21 = arith.constant 0 : index
    %21 = vector.load %arg2[%c3, %c0_20, %c0_21] : memref<9x8x8xf32, #tpu.memory_space<vmem>>, vector<1x8x8xf32>
    %22 = vector.shape_cast %21 : vector<1x8x8xf32> to vector<8x8xf32>
    %cst_22 = arith.constant dense<0.000000e+00> : vector<8x384xf32>
    %23 = tpu.matmul %22, %20, %cst_22 {dimension_numbers = #tpu.dot_dimension_numbers<[1], [0], [0], [1], [0, 0, 1, 1], [], []>} : vector<8x8xf32>, vector<8x384xf32>, vector<8x384xf32> -> vector<8x384xf32>
    %24 = arith.addf %18, %23 : vector<8x384xf32>
    %c0_23 = arith.constant 0 : index
    %c0_24 = arith.constant 0 : index
    %c19 = arith.constant 19 : index
    %25 = vector.load %arg4[%c0_23, %c0_24, %c19] : memref<1x8x512xf32, #tpu.memory_space<vmem>>, vector<1x8x384xf32>
    %26 = vector.shape_cast %25 : vector<1x8x384xf32> to vector<8x384xf32>
    %c4 = arith.constant 4 : index
    %c0_25 = arith.constant 0 : index
    %c0_26 = arith.constant 0 : index
    %27 = vector.load %arg2[%c4, %c0_25, %c0_26] : memref<9x8x8xf32, #tpu.memory_space<vmem>>, vector<1x8x8xf32>
    %28 = vector.shape_cast %27 : vector<1x8x8xf32> to vector<8x8xf32>
    %cst_27 = arith.constant dense<0.000000e+00> : vector<8x384xf32>
    %29 = tpu.matmul %28, %26, %cst_27 {dimension_numbers = #tpu.dot_dimension_numbers<[1], [0], [0], [1], [0, 0, 1, 1], [], []>} : vector<8x8xf32>, vector<8x384xf32>, vector<8x384xf32> -> vector<8x384xf32>
    %30 = arith.addf %24, %29 : vector<8x384xf32>
    %c0_28 = arith.constant 0 : index
    %c0_29 = arith.constant 0 : index
    %c20 = arith.constant 20 : index
    %31 = vector.load %arg4[%c0_28, %c0_29, %c20] : memref<1x8x512xf32, #tpu.memory_space<vmem>>, vector<1x8x384xf32>
    %32 = vector.shape_cast %31 : vector<1x8x384xf32> to vector<8x384xf32>
    %c5 = arith.constant 5 : index
    %c0_30 = arith.constant 0 : index
    %c0_31 = arith.constant 0 : index
    %33 = vector.load %arg2[%c5, %c0_30, %c0_31] : memref<9x8x8xf32, #tpu.memory_space<vmem>>, vector<1x8x8xf32>
    %34 = vector.shape_cast %33 : vector<1x8x8xf32> to vector<8x8xf32>
    %cst_32 = arith.constant dense<0.000000e+00> : vector<8x384xf32>
    %35 = tpu.matmul %34, %32, %cst_32 {dimension_numbers = #tpu.dot_dimension_numbers<[1], [0], [0], [1], [0, 0, 1, 1], [], []>} : vector<8x8xf32>, vector<8x384xf32>, vector<8x384xf32> -> vector<8x384xf32>
    %36 = arith.addf %30, %35 : vector<8x384xf32>
    %c0_33 = arith.constant 0 : index
    %c0_34 = arith.constant 0 : index
    %c36 = arith.constant 36 : index
    %37 = vector.load %arg4[%c0_33, %c0_34, %c36] : memref<1x8x512xf32, #tpu.memory_space<vmem>>, vector<1x8x384xf32>
    %38 = vector.shape_cast %37 : vector<1x8x384xf32> to vector<8x384xf32>
    %c6 = arith.constant 6 : index
    %c0_35 = arith.constant 0 : index
    %c0_36 = arith.constant 0 : index
    %39 = vector.load %arg2[%c6, %c0_35, %c0_36] : memref<9x8x8xf32, #tpu.memory_space<vmem>>, vector<1x8x8xf32>
    %40 = vector.shape_cast %39 : vector<1x8x8xf32> to vector<8x8xf32>
    %cst_37 = arith.constant dense<0.000000e+00> : vector<8x384xf32>
    %41 = tpu.matmul %40, %38, %cst_37 {dimension_numbers = #tpu.dot_dimension_numbers<[1], [0], [0], [1], [0, 0, 1, 1], [], []>} : vector<8x8xf32>, vector<8x384xf32>, vector<8x384xf32> -> vector<8x384xf32>
    %42 = arith.addf %36, %41 : vector<8x384xf32>
    %c0_38 = arith.constant 0 : index
    %c0_39 = arith.constant 0 : index
    %c37 = arith.constant 37 : index
    %43 = vector.load %arg4[%c0_38, %c0_39, %c37] : memref<1x8x512xf32, #tpu.memory_space<vmem>>, vector<1x8x384xf32>
    %44 = vector.shape_cast %43 : vector<1x8x384xf32> to vector<8x384xf32>
    %c7 = arith.constant 7 : index
    %c0_40 = arith.constant 0 : index
    %c0_41 = arith.constant 0 : index
    %45 = vector.load %arg2[%c7, %c0_40, %c0_41] : memref<9x8x8xf32, #tpu.memory_space<vmem>>, vector<1x8x8xf32>
    %46 = vector.shape_cast %45 : vector<1x8x8xf32> to vector<8x8xf32>
    %cst_42 = arith.constant dense<0.000000e+00> : vector<8x384xf32>
    %47 = tpu.matmul %46, %44, %cst_42 {dimension_numbers = #tpu.dot_dimension_numbers<[1], [0], [0], [1], [0, 0, 1, 1], [], []>} : vector<8x8xf32>, vector<8x384xf32>, vector<8x384xf32> -> vector<8x384xf32>
    %48 = arith.addf %42, %47 : vector<8x384xf32>
    %c0_43 = arith.constant 0 : index
    %c0_44 = arith.constant 0 : index
    %c38 = arith.constant 38 : index
    %49 = vector.load %arg4[%c0_43, %c0_44, %c38] : memref<1x8x512xf32, #tpu.memory_space<vmem>>, vector<1x8x384xf32>
    %50 = vector.shape_cast %49 : vector<1x8x384xf32> to vector<8x384xf32>
    %c8 = arith.constant 8 : index
    %c0_45 = arith.constant 0 : index
    %c0_46 = arith.constant 0 : index
    %51 = vector.load %arg2[%c8, %c0_45, %c0_46] : memref<9x8x8xf32, #tpu.memory_space<vmem>>, vector<1x8x8xf32>
    %52 = vector.shape_cast %51 : vector<1x8x8xf32> to vector<8x8xf32>
    %cst_47 = arith.constant dense<0.000000e+00> : vector<8x384xf32>
    %53 = tpu.matmul %52, %50, %cst_47 {dimension_numbers = #tpu.dot_dimension_numbers<[1], [0], [0], [1], [0, 0, 1, 1], [], []>} : vector<8x8xf32>, vector<8x384xf32>, vector<8x384xf32> -> vector<8x384xf32>
    %54 = arith.addf %48, %53 : vector<8x384xf32>
    %c0_48 = arith.constant 0 : index
    %c0_49 = arith.constant 0 : index
    %55 = vector.load %arg3[%c0_48, %c0_49] : memref<8x1xf32, #tpu.memory_space<vmem>>, vector<8x1xf32>
    %56 = vector.broadcast %55 : vector<8x1xf32> to vector<8x384xf32>
    %57 = arith.addf %54, %56 : vector<8x384xf32>
    %c0_50 = arith.constant 0 : index
    %c0_51 = arith.constant 0 : index
    %c0_52 = arith.constant 0 : index
    %58 = vector.load %arg5[%c0_50, %c0_51, %c0_52] : memref<1x8x384xf32, #tpu.memory_space<vmem>>, vector<1x8x384xf32>
    %59 = vector.shape_cast %58 : vector<1x8x384xf32> to vector<8x384xf32>
    %60 = vector.shape_cast %57 : vector<8x384xf32> to vector<1x8x384xf32>
    tpu.vector_store %arg5[%c0_50, %c0_51, %c0_52], %60 {strides = array<i32>} : memref<1x8x384xf32, #tpu.memory_space<vmem>>, vector<1x8x384xf32>,
    return
  }
  func.func @transform_0(%arg0: i32, %arg1: i32) -> (i32, i32, i32) {
    %c0_i32 = arith.constant 0 : i32
    %c0_i32_0 = arith.constant 0 : i32
    %c0_i32_1 = arith.constant 0 : i32
    return %c0_i32, %arg1, %c0_i32_0 : i32, i32, i32
  }
  func.func @transform_1(%arg0: i32, %arg1: i32) -> (i32, i32) {
    %c0_i32 = arith.constant 0 : i32
    %c0_i32_0 = arith.constant 0 : i32
    return %arg1, %c0_i32 : i32, i32
  }
  func.func @transform_2(%arg0: i32, %arg1: i32) -> (i32, i32, i32) {
    %c0_i32 = arith.constant 0 : i32
    %c0_i32_0 = arith.constant 0 : i32
    %c0_i32_1 = arith.constant 0 : i32
    return %arg0, %c0_i32, %c0_i32_0 : i32, i32, i32
  }
  func.func @transform_3(%arg0: i32, %arg1: i32) -> (i32, i32, i32) {
    %c0_i32 = arith.constant 0 : i32
    %c0_i32_0 = arith.constant 0 : i32
    return %arg0, %arg1, %c0_i32 : i32, i32, i32
  }
}

module attributes {stable_mosaic.version = 11 : i64} {
  func.func @_gn_film_act_kernel(%arg0: i32, %arg1: memref<8x8xf32, #tpu.memory_space<vmem>>, %arg2: memref<8x1xf32, #tpu.memory_space<vmem>>, %arg3: memref<8x1xf32, #tpu.memory_space<vmem>>, %arg4: memref<1x8x256xf32, #tpu.memory_space<vmem>>, %arg5: memref<1x1x1x8x256xf32, #tpu.memory_space<vmem>>, %arg6: memref<1x1x1x8x256xf32, #tpu.memory_space<vmem>>, %arg7: memref<1x8x256xf32, #tpu.memory_space<vmem>>) attributes {dimension_semantics = [#tpu.dimension_semantics<parallel>], iteration_bounds = array<i64: 2>, scalar_prefetch = 0 : i64, scratch_operands = 0 : i64, tpu.core_type = #tpu.core_type<tc>, window_params = [{pipeline_mode = #tpu.pipeline_mode<synchronous>, transform_indices = @transform_0, window_bounds = array<i64: 8, 8>}, {pipeline_mode = #tpu.pipeline_mode<synchronous>, transform_indices = @transform_1, window_bounds = array<i64: 8, 1>}, {pipeline_mode = #tpu.pipeline_mode<synchronous>, transform_indices = @transform_2, window_bounds = array<i64: 8, 1>}, {transform_indices = @transform_3, window_bounds = array<i64: 1, 8, 256>}, {transform_indices = @transform_4, window_bounds = array<i64: 1, 1, 1, 8, 256>}, {transform_indices = @transform_5, window_bounds = array<i64: 1, 1, 1, 8, 256>}, {transform_indices = @transform_6, window_bounds = array<i64: 1, 8, 256>}]} {
    %c0 = arith.constant 0 : index
    %c0_0 = arith.constant 0 : index
    %c0_1 = arith.constant 0 : index
    %0 = vector.load %arg4[%c0, %c0_0, %c0_1] : memref<1x8x256xf32, #tpu.memory_space<vmem>>, vector<1x8x256xf32>
    %1 = vector.shape_cast %0 : vector<1x8x256xf32> to vector<8x256xf32>
    %c0_2 = arith.constant 0 : index
    %c0_3 = arith.constant 0 : index
    %2 = vector.load %arg1[%c0_2, %c0_3] : memref<8x8xf32, #tpu.memory_space<vmem>>, vector<8x8xf32>
    %cst = arith.constant dense<0.000000e+00> : vector<8xf32>
    %3 = vector.multi_reduction <add>, %1, %cst [1] : vector<8x256xf32> to vector<8xf32>
    %4 = vector.shape_cast %3 : vector<8xf32> to vector<8x1xf32>
    %cst_4 = arith.constant dense<0.000000e+00> : vector<8x1xf32>
    %5 = tpu.matmul %2, %4, %cst_4 {dimension_numbers = #tpu.dot_dimension_numbers<[1], [0], [0], [1], [0, 0, 1, 1], [], []>} : vector<8x8xf32>, vector<8x1xf32>, vector<8x1xf32> -> vector<8x1xf32>
    %6 = vector.broadcast %5 : vector<8x1xf32> to vector<8x256xf32>
    %7 = arith.subf %1, %6 : vector<8x256xf32>
    %8 = arith.mulf %7, %7 : vector<8x256xf32>
    %cst_5 = arith.constant dense<0.000000e+00> : vector<8xf32>
    %9 = vector.multi_reduction <add>, %8, %cst_5 [1] : vector<8x256xf32> to vector<8xf32>
    %10 = vector.shape_cast %9 : vector<8xf32> to vector<8x1xf32>
    %cst_6 = arith.constant dense<0.000000e+00> : vector<8x1xf32>
    %11 = tpu.matmul %2, %10, %cst_6 {dimension_numbers = #tpu.dot_dimension_numbers<[1], [0], [0], [1], [0, 0, 1, 1], [], []>} : vector<8x8xf32>, vector<8x1xf32>, vector<8x1xf32> -> vector<8x1xf32>
    %cst_7 = arith.constant 9.99999974E-6 : f32
    %12 = vector.broadcast %cst_7 : f32 to vector<8x1xf32>
    %13 = arith.addf %11, %12 : vector<8x1xf32>
    %14 = math.rsqrt %13 : vector<8x1xf32>
    %15 = vector.broadcast %14 : vector<8x1xf32> to vector<8x256xf32>
    %16 = arith.mulf %7, %15 : vector<8x256xf32>
    %c0_8 = arith.constant 0 : index
    %c0_9 = arith.constant 0 : index
    %17 = vector.load %arg2[%c0_8, %c0_9] : memref<8x1xf32, #tpu.memory_space<vmem>>, vector<8x1xf32>
    %18 = vector.broadcast %17 : vector<8x1xf32> to vector<8x256xf32>
    %19 = arith.mulf %16, %18 : vector<8x256xf32>
    %c0_10 = arith.constant 0 : index
    %c0_11 = arith.constant 0 : index
    %20 = vector.load %arg3[%c0_10, %c0_11] : memref<8x1xf32, #tpu.memory_space<vmem>>, vector<8x1xf32>
    %21 = vector.broadcast %20 : vector<8x1xf32> to vector<8x256xf32>
    %22 = arith.addf %19, %21 : vector<8x256xf32>
    %c0_12 = arith.constant 0 : index
    %c0_13 = arith.constant 0 : index
    %c0_14 = arith.constant 0 : index
    %c0_15 = arith.constant 0 : index
    %c0_16 = arith.constant 0 : index
    %23 = vector.load %arg5[%c0_12, %c0_13, %c0_14, %c0_15, %c0_16] : memref<1x1x1x8x256xf32, #tpu.memory_space<vmem>>, vector<1x1x1x8x256xf32>
    %24 = vector.shape_cast %23 : vector<1x1x1x8x256xf32> to vector<8x256xf32>
    %cst_17 = arith.constant 1.000000e+00 : f32
    %25 = vector.broadcast %cst_17 : f32 to vector<8x256xf32>
    %26 = arith.addf %25, %24 : vector<8x256xf32>
    %27 = arith.mulf %22, %26 : vector<8x256xf32>
    %c0_18 = arith.constant 0 : index
    %c0_19 = arith.constant 0 : index
    %c0_20 = arith.constant 0 : index
    %c0_21 = arith.constant 0 : index
    %c0_22 = arith.constant 0 : index
    %28 = vector.load %arg6[%c0_18, %c0_19, %c0_20, %c0_21, %c0_22] : memref<1x1x1x8x256xf32, #tpu.memory_space<vmem>>, vector<1x1x1x8x256xf32>
    %29 = vector.shape_cast %28 : vector<1x1x1x8x256xf32> to vector<8x256xf32>
    %30 = arith.addf %27, %29 : vector<8x256xf32>
    %cst_23 = arith.constant 0.000000e+00 : f32
    %31 = vector.broadcast %cst_23 : f32 to vector<8x256xf32>
    %32 = arith.cmpf oge, %30, %31 : vector<8x256xf32>
    %cst_24 = arith.constant 2.000000e-01 : f32
    %33 = vector.broadcast %cst_24 : f32 to vector<8x256xf32>
    %34 = arith.mulf %33, %30 : vector<8x256xf32>
    %35 = arith.select %32, %30, %34 : vector<8x256xi1>, vector<8x256xf32>
    %c0_25 = arith.constant 0 : index
    %c0_26 = arith.constant 0 : index
    %c0_27 = arith.constant 0 : index
    %36 = vector.load %arg7[%c0_25, %c0_26, %c0_27] : memref<1x8x256xf32, #tpu.memory_space<vmem>>, vector<1x8x256xf32>
    %37 = vector.shape_cast %36 : vector<1x8x256xf32> to vector<8x256xf32>
    %38 = vector.shape_cast %35 : vector<8x256xf32> to vector<1x8x256xf32>
    tpu.vector_store %arg7[%c0_25, %c0_26, %c0_27], %38 {strides = array<i32>} : memref<1x8x256xf32, #tpu.memory_space<vmem>>, vector<1x8x256xf32>,
    return
  }
  func.func @transform_0(%arg0: i32) -> (i32, i32) {
    %c0_i32 = arith.constant 0 : i32
    %c0_i32_0 = arith.constant 0 : i32
    %c0_i32_1 = arith.constant 0 : i32
    return %c0_i32, %c0_i32_0 : i32, i32
  }
  func.func @transform_1(%arg0: i32) -> (i32, i32) {
    %c0_i32 = arith.constant 0 : i32
    %c0_i32_0 = arith.constant 0 : i32
    %c0_i32_1 = arith.constant 0 : i32
    return %c0_i32, %c0_i32_0 : i32, i32
  }
  func.func @transform_2(%arg0: i32) -> (i32, i32) {
    %c0_i32 = arith.constant 0 : i32
    %c0_i32_0 = arith.constant 0 : i32
    %c0_i32_1 = arith.constant 0 : i32
    return %c0_i32, %c0_i32_0 : i32, i32
  }
  func.func @transform_3(%arg0: i32) -> (i32, i32, i32) {
    %c0_i32 = arith.constant 0 : i32
    %c0_i32_0 = arith.constant 0 : i32
    %c0_i32_1 = arith.constant 0 : i32
    return %arg0, %c0_i32, %c0_i32_0 : i32, i32, i32
  }
  func.func @transform_4(%arg0: i32) -> (i32, i32, i32, i32, i32) {
    %c1_i32 = arith.constant 1 : i32
    %c0_i32 = arith.constant 0 : i32
    %c0_i32_0 = arith.constant 0 : i32
    %c0_i32_1 = arith.constant 0 : i32
    %c0_i32_2 = arith.constant 0 : i32
    return %arg0, %c1_i32, %c0_i32, %c0_i32_0, %c0_i32_1 : i32, i32, i32, i32, i32
  }
  func.func @transform_5(%arg0: i32) -> (i32, i32, i32, i32, i32) {
    %c1_i32 = arith.constant 1 : i32
    %c1_i32_0 = arith.constant 1 : i32
    %c0_i32 = arith.constant 0 : i32
    %c0_i32_1 = arith.constant 0 : i32
    %c0_i32_2 = arith.constant 0 : i32
    return %arg0, %c1_i32, %c1_i32_0, %c0_i32, %c0_i32_1 : i32, i32, i32, i32, i32
  }
  func.func @transform_6(%arg0: i32) -> (i32, i32, i32) {
    %c0_i32 = arith.constant 0 : i32
    %c0_i32_0 = arith.constant 0 : i32
    %c0_i32_1 = arith.constant 0 : i32
    return %arg0, %c0_i32, %c0_i32_0 : i32, i32, i32
  }
}

module attributes {stable_mosaic.version = 11 : i64} {
  func.func @_dual_conv3x3_kernel(%arg0: i32, %arg1: i32, %arg2: memref<9x8x8xf32, #tpu.memory_space<vmem>>, %arg3: memref<9x8x8xf32, #tpu.memory_space<vmem>>, %arg4: memref<1x8x512xf32, #tpu.memory_space<vmem>>, %arg5: memref<1x8x512xf32, #tpu.memory_space<vmem>>, %arg6: memref<1x8x384xf32, #tpu.memory_space<vmem>>) attributes {dimension_semantics = [#tpu.dimension_semantics<parallel>, #tpu.dimension_semantics<parallel>], iteration_bounds = array<i64: 2, 1>, scalar_prefetch = 0 : i64, scratch_operands = 0 : i64, tpu.core_type = #tpu.core_type<tc>, window_params = [{transform_indices = @transform_0, window_bounds = array<i64: 9, 8, 8>}, {transform_indices = @transform_1, window_bounds = array<i64: 9, 8, 8>}, {transform_indices = @transform_2, window_bounds = array<i64: 1, 8, 512>}, {transform_indices = @transform_3, window_bounds = array<i64: 1, 8, 512>}, {transform_indices = @transform_4, window_bounds = array<i64: 1, 8, 384>}]} {
    %cst = arith.constant 0.000000e+00 : f32
    %0 = vector.broadcast %cst : f32 to vector<8x384xf32>
    %c0 = arith.constant 0 : index
    %c0_0 = arith.constant 0 : index
    %c0_1 = arith.constant 0 : index
    %1 = vector.load %arg4[%c0, %c0_0, %c0_1] : memref<1x8x512xf32, #tpu.memory_space<vmem>>, vector<1x8x384xf32>
    %2 = vector.shape_cast %1 : vector<1x8x384xf32> to vector<8x384xf32>
    %c0_2 = arith.constant 0 : index
    %c0_3 = arith.constant 0 : index
    %c0_4 = arith.constant 0 : index
    %3 = vector.load %arg5[%c0_2, %c0_3, %c0_4] : memref<1x8x512xf32, #tpu.memory_space<vmem>>, vector<1x8x384xf32>
    %4 = vector.shape_cast %3 : vector<1x8x384xf32> to vector<8x384xf32>
    %c0_5 = arith.constant 0 : index
    %c0_6 = arith.constant 0 : index
    %c0_7 = arith.constant 0 : index
    %5 = vector.load %arg2[%c0_5, %c0_6, %c0_7] : memref<9x8x8xf32, #tpu.memory_space<vmem>>, vector<1x8x8xf32>
    %6 = vector.shape_cast %5 : vector<1x8x8xf32> to vector<8x8xf32>
    %cst_8 = arith.constant dense<0.000000e+00> : vector<8x384xf32>
    %7 = tpu.matmul %6, %2, %cst_8 {dimension_numbers = #tpu.dot_dimension_numbers<[1], [0], [0], [1], [0, 0, 1, 1], [], []>} : vector<8x8xf32>, vector<8x384xf32>, vector<8x384xf32> -> vector<8x384xf32>
    %8 = arith.addf %0, %7 : vector<8x384xf32>
    %c0_9 = arith.constant 0 : index
    %c0_10 = arith.constant 0 : index
    %c0_11 = arith.constant 0 : index
    %9 = vector.load %arg3[%c0_9, %c0_10, %c0_11] : memref<9x8x8xf32, #tpu.memory_space<vmem>>, vector<1x8x8xf32>
    %10 = vector.shape_cast %9 : vector<1x8x8xf32> to vector<8x8xf32>
    %cst_12 = arith.constant dense<0.000000e+00> : vector<8x384xf32>
    %11 = tpu.matmul %10, %4, %cst_12 {dimension_numbers = #tpu.dot_dimension_numbers<[1], [0], [0], [1], [0, 0, 1, 1], [], []>} : vector<8x8xf32>, vector<8x384xf32>, vector<8x384xf32> -> vector<8x384xf32>
    %12 = arith.addf %8, %11 : vector<8x384xf32>
    %c0_13 = arith.constant 0 : index
    %c0_14 = arith.constant 0 : index
    %c1 = arith.constant 1 : index
    %13 = vector.load %arg4[%c0_13, %c0_14, %c1] : memref<1x8x512xf32, #tpu.memory_space<vmem>>, vector<1x8x384xf32>
    %14 = vector.shape_cast %13 : vector<1x8x384xf32> to vector<8x384xf32>
    %c0_15 = arith.constant 0 : index
    %c0_16 = arith.constant 0 : index
    %c1_17 = arith.constant 1 : index
    %15 = vector.load %arg5[%c0_15, %c0_16, %c1_17] : memref<1x8x512xf32, #tpu.memory_space<vmem>>, vector<1x8x384xf32>
    %16 = vector.shape_cast %15 : vector<1x8x384xf32> to vector<8x384xf32>
    %c1_18 = arith.constant 1 : index
    %c0_19 = arith.constant 0 : index
    %c0_20 = arith.constant 0 : index
    %17 = vector.load %arg2[%c1_18, %c0_19, %c0_20] : memref<9x8x8xf32, #tpu.memory_space<vmem>>, vector<1x8x8xf32>
    %18 = vector.shape_cast %17 : vector<1x8x8xf32> to vector<8x8xf32>
    %cst_21 = arith.constant dense<0.000000e+00> : vector<8x384xf32>
    %19 = tpu.matmul %18, %14, %cst_21 {dimension_numbers = #tpu.dot_dimension_numbers<[1], [0], [0], [1], [0, 0, 1, 1], [], []>} : vector<8x8xf32>, vector<8x384xf32>, vector<8x384xf32> -> vector<8x384xf32>
    %20 = arith.addf %12, %19 : vector<8x384xf32>
    %c1_22 = arith.constant 1 : index
    %c0_23 = arith.constant 0 : index
    %c0_24 = arith.constant 0 : index
    %21 = vector.load %arg3[%c1_22, %c0_23, %c0_24] : memref<9x8x8xf32, #tpu.memory_space<vmem>>, vector<1x8x8xf32>
    %22 = vector.shape_cast %21 : vector<1x8x8xf32> to vector<8x8xf32>
    %cst_25 = arith.constant dense<0.000000e+00> : vector<8x384xf32>
    %23 = tpu.matmul %22, %16, %cst_25 {dimension_numbers = #tpu.dot_dimension_numbers<[1], [0], [0], [1], [0, 0, 1, 1], [], []>} : vector<8x8xf32>, vector<8x384xf32>, vector<8x384xf32> -> vector<8x384xf32>
    %24 = arith.addf %20, %23 : vector<8x384xf32>
    %c0_26 = arith.constant 0 : index
    %c0_27 = arith.constant 0 : index
    %c2 = arith.constant 2 : index
    %25 = vector.load %arg4[%c0_26, %c0_27, %c2] : memref<1x8x512xf32, #tpu.memory_space<vmem>>, vector<1x8x384xf32>
    %26 = vector.shape_cast %25 : vector<1x8x384xf32> to vector<8x384xf32>
    %c0_28 = arith.constant 0 : index
    %c0_29 = arith.constant 0 : index
    %c2_30 = arith.constant 2 : index
    %27 = vector.load %arg5[%c0_28, %c0_29, %c2_30] : memref<1x8x512xf32, #tpu.memory_space<vmem>>, vector<1x8x384xf32>
    %28 = vector.shape_cast %27 : vector<1x8x384xf32> to vector<8x384xf32>
    %c2_31 = arith.constant 2 : index
    %c0_32 = arith.constant 0 : index
    %c0_33 = arith.constant 0 : index
    %29 = vector.load %arg2[%c2_31, %c0_32, %c0_33] : memref<9x8x8xf32, #tpu.memory_space<vmem>>, vector<1x8x8xf32>
    %30 = vector.shape_cast %29 : vector<1x8x8xf32> to vector<8x8xf32>
    %cst_34 = arith.constant dense<0.000000e+00> : vector<8x384xf32>
    %31 = tpu.matmul %30, %26, %cst_34 {dimension_numbers = #tpu.dot_dimension_numbers<[1], [0], [0], [1], [0, 0, 1, 1], [], []>} : vector<8x8xf32>, vector<8x384xf32>, vector<8x384xf32> -> vector<8x384xf32>
    %32 = arith.addf %24, %31 : vector<8x384xf32>
    %c2_35 = arith.constant 2 : index
    %c0_36 = arith.constant 0 : index
    %c0_37 = arith.constant 0 : index
    %33 = vector.load %arg3[%c2_35, %c0_36, %c0_37] : memref<9x8x8xf32, #tpu.memory_space<vmem>>, vector<1x8x8xf32>
    %34 = vector.shape_cast %33 : vector<1x8x8xf32> to vector<8x8xf32>
    %cst_38 = arith.constant dense<0.000000e+00> : vector<8x384xf32>
    %35 = tpu.matmul %34, %28, %cst_38 {dimension_numbers = #tpu.dot_dimension_numbers<[1], [0], [0], [1], [0, 0, 1, 1], [], []>} : vector<8x8xf32>, vector<8x384xf32>, vector<8x384xf32> -> vector<8x384xf32>
    %36 = arith.addf %32, %35 : vector<8x384xf32>
    %c0_39 = arith.constant 0 : index
    %c0_40 = arith.constant 0 : index
    %c18 = arith.constant 18 : index
    %37 = vector.load %arg4[%c0_39, %c0_40, %c18] : memref<1x8x512xf32, #tpu.memory_space<vmem>>, vector<1x8x384xf32>
    %38 = vector.shape_cast %37 : vector<1x8x384xf32> to vector<8x384xf32>
    %c0_41 = arith.constant 0 : index
    %c0_42 = arith.constant 0 : index
    %c18_43 = arith.constant 18 : index
    %39 = vector.load %arg5[%c0_41, %c0_42, %c18_43] : memref<1x8x512xf32, #tpu.memory_space<vmem>>, vector<1x8x384xf32>
    %40 = vector.shape_cast %39 : vector<1x8x384xf32> to vector<8x384xf32>
    %c3 = arith.constant 3 : index
    %c0_44 = arith.constant 0 : index
    %c0_45 = arith.constant 0 : index
    %41 = vector.load %arg2[%c3, %c0_44, %c0_45] : memref<9x8x8xf32, #tpu.memory_space<vmem>>, vector<1x8x8xf32>
    %42 = vector.shape_cast %41 : vector<1x8x8xf32> to vector<8x8xf32>
    %cst_46 = arith.constant dense<0.000000e+00> : vector<8x384xf32>
    %43 = tpu.matmul %42, %38, %cst_46 {dimension_numbers = #tpu.dot_dimension_numbers<[1], [0], [0], [1], [0, 0, 1, 1], [], []>} : vector<8x8xf32>, vector<8x384xf32>, vector<8x384xf32> -> vector<8x384xf32>
    %44 = arith.addf %36, %43 : vector<8x384xf32>
    %c3_47 = arith.constant 3 : index
    %c0_48 = arith.constant 0 : index
    %c0_49 = arith.constant 0 : index
    %45 = vector.load %arg3[%c3_47, %c0_48, %c0_49] : memref<9x8x8xf32, #tpu.memory_space<vmem>>, vector<1x8x8xf32>
    %46 = vector.shape_cast %45 : vector<1x8x8xf32> to vector<8x8xf32>
    %cst_50 = arith.constant dense<0.000000e+00> : vector<8x384xf32>
    %47 = tpu.matmul %46, %40, %cst_50 {dimension_numbers = #tpu.dot_dimension_numbers<[1], [0], [0], [1], [0, 0, 1, 1], [], []>} : vector<8x8xf32>, vector<8x384xf32>, vector<8x384xf32> -> vector<8x384xf32>
    %48 = arith.addf %44, %47 : vector<8x384xf32>
    %c0_51 = arith.constant 0 : index
    %c0_52 = arith.constant 0 : index
    %c19 = arith.constant 19 : index
    %49 = vector.load %arg4[%c0_51, %c0_52, %c19] : memref<1x8x512xf32, #tpu.memory_space<vmem>>, vector<1x8x384xf32>
    %50 = vector.shape_cast %49 : vector<1x8x384xf32> to vector<8x384xf32>
    %c0_53 = arith.constant 0 : index
    %c0_54 = arith.constant 0 : index
    %c19_55 = arith.constant 19 : index
    %51 = vector.load %arg5[%c0_53, %c0_54, %c19_55] : memref<1x8x512xf32, #tpu.memory_space<vmem>>, vector<1x8x384xf32>
    %52 = vector.shape_cast %51 : vector<1x8x384xf32> to vector<8x384xf32>
    %c4 = arith.constant 4 : index
    %c0_56 = arith.constant 0 : index
    %c0_57 = arith.constant 0 : index
    %53 = vector.load %arg2[%c4, %c0_56, %c0_57] : memref<9x8x8xf32, #tpu.memory_space<vmem>>, vector<1x8x8xf32>
    %54 = vector.shape_cast %53 : vector<1x8x8xf32> to vector<8x8xf32>
    %cst_58 = arith.constant dense<0.000000e+00> : vector<8x384xf32>
    %55 = tpu.matmul %54, %50, %cst_58 {dimension_numbers = #tpu.dot_dimension_numbers<[1], [0], [0], [1], [0, 0, 1, 1], [], []>} : vector<8x8xf32>, vector<8x384xf32>, vector<8x384xf32> -> vector<8x384xf32>
    %56 = arith.addf %48, %55 : vector<8x384xf32>
    %c4_59 = arith.constant 4 : index
    %c0_60 = arith.constant 0 : index
    %c0_61 = arith.constant 0 : index
    %57 = vector.load %arg3[%c4_59, %c0_60, %c0_61] : memref<9x8x8xf32, #tpu.memory_space<vmem>>, vector<1x8x8xf32>
    %58 = vector.shape_cast %57 : vector<1x8x8xf32> to vector<8x8xf32>
    %cst_62 = arith.constant dense<0.000000e+00> : vector<8x384xf32>
    %59 = tpu.matmul %58, %52, %cst_62 {dimension_numbers = #tpu.dot_dimension_numbers<[1], [0], [0], [1], [0, 0, 1, 1], [], []>} : vector<8x8xf32>, vector<8x384xf32>, vector<8x384xf32> -> vector<8x384xf32>
    %60 = arith.addf %56, %59 : vector<8x384xf32>
    %c0_63 = arith.constant 0 : index
    %c0_64 = arith.constant 0 : index
    %c20 = arith.constant 20 : index
    %61 = vector.load %arg4[%c0_63, %c0_64, %c20] : memref<1x8x512xf32, #tpu.memory_space<vmem>>, vector<1x8x384xf32>
    %62 = vector.shape_cast %61 : vector<1x8x384xf32> to vector<8x384xf32>
    %c0_65 = arith.constant 0 : index
    %c0_66 = arith.constant 0 : index
    %c20_67 = arith.constant 20 : index
    %63 = vector.load %arg5[%c0_65, %c0_66, %c20_67] : memref<1x8x512xf32, #tpu.memory_space<vmem>>, vector<1x8x384xf32>
    %64 = vector.shape_cast %63 : vector<1x8x384xf32> to vector<8x384xf32>
    %c5 = arith.constant 5 : index
    %c0_68 = arith.constant 0 : index
    %c0_69 = arith.constant 0 : index
    %65 = vector.load %arg2[%c5, %c0_68, %c0_69] : memref<9x8x8xf32, #tpu.memory_space<vmem>>, vector<1x8x8xf32>
    %66 = vector.shape_cast %65 : vector<1x8x8xf32> to vector<8x8xf32>
    %cst_70 = arith.constant dense<0.000000e+00> : vector<8x384xf32>
    %67 = tpu.matmul %66, %62, %cst_70 {dimension_numbers = #tpu.dot_dimension_numbers<[1], [0], [0], [1], [0, 0, 1, 1], [], []>} : vector<8x8xf32>, vector<8x384xf32>, vector<8x384xf32> -> vector<8x384xf32>
    %68 = arith.addf %60, %67 : vector<8x384xf32>
    %c5_71 = arith.constant 5 : index
    %c0_72 = arith.constant 0 : index
    %c0_73 = arith.constant 0 : index
    %69 = vector.load %arg3[%c5_71, %c0_72, %c0_73] : memref<9x8x8xf32, #tpu.memory_space<vmem>>, vector<1x8x8xf32>
    %70 = vector.shape_cast %69 : vector<1x8x8xf32> to vector<8x8xf32>
    %cst_74 = arith.constant dense<0.000000e+00> : vector<8x384xf32>
    %71 = tpu.matmul %70, %64, %cst_74 {dimension_numbers = #tpu.dot_dimension_numbers<[1], [0], [0], [1], [0, 0, 1, 1], [], []>} : vector<8x8xf32>, vector<8x384xf32>, vector<8x384xf32> -> vector<8x384xf32>
    %72 = arith.addf %68, %71 : vector<8x384xf32>
    %c0_75 = arith.constant 0 : index
    %c0_76 = arith.constant 0 : index
    %c36 = arith.constant 36 : index
    %73 = vector.load %arg4[%c0_75, %c0_76, %c36] : memref<1x8x512xf32, #tpu.memory_space<vmem>>, vector<1x8x384xf32>
    %74 = vector.shape_cast %73 : vector<1x8x384xf32> to vector<8x384xf32>
    %c0_77 = arith.constant 0 : index
    %c0_78 = arith.constant 0 : index
    %c36_79 = arith.constant 36 : index
    %75 = vector.load %arg5[%c0_77, %c0_78, %c36_79] : memref<1x8x512xf32, #tpu.memory_space<vmem>>, vector<1x8x384xf32>
    %76 = vector.shape_cast %75 : vector<1x8x384xf32> to vector<8x384xf32>
    %c6 = arith.constant 6 : index
    %c0_80 = arith.constant 0 : index
    %c0_81 = arith.constant 0 : index
    %77 = vector.load %arg2[%c6, %c0_80, %c0_81] : memref<9x8x8xf32, #tpu.memory_space<vmem>>, vector<1x8x8xf32>
    %78 = vector.shape_cast %77 : vector<1x8x8xf32> to vector<8x8xf32>
    %cst_82 = arith.constant dense<0.000000e+00> : vector<8x384xf32>
    %79 = tpu.matmul %78, %74, %cst_82 {dimension_numbers = #tpu.dot_dimension_numbers<[1], [0], [0], [1], [0, 0, 1, 1], [], []>} : vector<8x8xf32>, vector<8x384xf32>, vector<8x384xf32> -> vector<8x384xf32>
    %80 = arith.addf %72, %79 : vector<8x384xf32>
    %c6_83 = arith.constant 6 : index
    %c0_84 = arith.constant 0 : index
    %c0_85 = arith.constant 0 : index
    %81 = vector.load %arg3[%c6_83, %c0_84, %c0_85] : memref<9x8x8xf32, #tpu.memory_space<vmem>>, vector<1x8x8xf32>
    %82 = vector.shape_cast %81 : vector<1x8x8xf32> to vector<8x8xf32>
    %cst_86 = arith.constant dense<0.000000e+00> : vector<8x384xf32>
    %83 = tpu.matmul %82, %76, %cst_86 {dimension_numbers = #tpu.dot_dimension_numbers<[1], [0], [0], [1], [0, 0, 1, 1], [], []>} : vector<8x8xf32>, vector<8x384xf32>, vector<8x384xf32> -> vector<8x384xf32>
    %84 = arith.addf %80, %83 : vector<8x384xf32>
    %c0_87 = arith.constant 0 : index
    %c0_88 = arith.constant 0 : index
    %c37 = arith.constant 37 : index
    %85 = vector.load %arg4[%c0_87, %c0_88, %c37] : memref<1x8x512xf32, #tpu.memory_space<vmem>>, vector<1x8x384xf32>
    %86 = vector.shape_cast %85 : vector<1x8x384xf32> to vector<8x384xf32>
    %c0_89 = arith.constant 0 : index
    %c0_90 = arith.constant 0 : index
    %c37_91 = arith.constant 37 : index
    %87 = vector.load %arg5[%c0_89, %c0_90, %c37_91] : memref<1x8x512xf32, #tpu.memory_space<vmem>>, vector<1x8x384xf32>
    %88 = vector.shape_cast %87 : vector<1x8x384xf32> to vector<8x384xf32>
    %c7 = arith.constant 7 : index
    %c0_92 = arith.constant 0 : index
    %c0_93 = arith.constant 0 : index
    %89 = vector.load %arg2[%c7, %c0_92, %c0_93] : memref<9x8x8xf32, #tpu.memory_space<vmem>>, vector<1x8x8xf32>
    %90 = vector.shape_cast %89 : vector<1x8x8xf32> to vector<8x8xf32>
    %cst_94 = arith.constant dense<0.000000e+00> : vector<8x384xf32>
    %91 = tpu.matmul %90, %86, %cst_94 {dimension_numbers = #tpu.dot_dimension_numbers<[1], [0], [0], [1], [0, 0, 1, 1], [], []>} : vector<8x8xf32>, vector<8x384xf32>, vector<8x384xf32> -> vector<8x384xf32>
    %92 = arith.addf %84, %91 : vector<8x384xf32>
    %c7_95 = arith.constant 7 : index
    %c0_96 = arith.constant 0 : index
    %c0_97 = arith.constant 0 : index
    %93 = vector.load %arg3[%c7_95, %c0_96, %c0_97] : memref<9x8x8xf32, #tpu.memory_space<vmem>>, vector<1x8x8xf32>
    %94 = vector.shape_cast %93 : vector<1x8x8xf32> to vector<8x8xf32>
    %cst_98 = arith.constant dense<0.000000e+00> : vector<8x384xf32>
    %95 = tpu.matmul %94, %88, %cst_98 {dimension_numbers = #tpu.dot_dimension_numbers<[1], [0], [0], [1], [0, 0, 1, 1], [], []>} : vector<8x8xf32>, vector<8x384xf32>, vector<8x384xf32> -> vector<8x384xf32>
    %96 = arith.addf %92, %95 : vector<8x384xf32>
    %c0_99 = arith.constant 0 : index
    %c0_100 = arith.constant 0 : index
    %c38 = arith.constant 38 : index
    %97 = vector.load %arg4[%c0_99, %c0_100, %c38] : memref<1x8x512xf32, #tpu.memory_space<vmem>>, vector<1x8x384xf32>
    %98 = vector.shape_cast %97 : vector<1x8x384xf32> to vector<8x384xf32>
    %c0_101 = arith.constant 0 : index
    %c0_102 = arith.constant 0 : index
    %c38_103 = arith.constant 38 : index
    %99 = vector.load %arg5[%c0_101, %c0_102, %c38_103] : memref<1x8x512xf32, #tpu.memory_space<vmem>>, vector<1x8x384xf32>
    %100 = vector.shape_cast %99 : vector<1x8x384xf32> to vector<8x384xf32>
    %c8 = arith.constant 8 : index
    %c0_104 = arith.constant 0 : index
    %c0_105 = arith.constant 0 : index
    %101 = vector.load %arg2[%c8, %c0_104, %c0_105] : memref<9x8x8xf32, #tpu.memory_space<vmem>>, vector<1x8x8xf32>
    %102 = vector.shape_cast %101 : vector<1x8x8xf32> to vector<8x8xf32>
    %cst_106 = arith.constant dense<0.000000e+00> : vector<8x384xf32>
    %103 = tpu.matmul %102, %98, %cst_106 {dimension_numbers = #tpu.dot_dimension_numbers<[1], [0], [0], [1], [0, 0, 1, 1], [], []>} : vector<8x8xf32>, vector<8x384xf32>, vector<8x384xf32> -> vector<8x384xf32>
    %104 = arith.addf %96, %103 : vector<8x384xf32>
    %c8_107 = arith.constant 8 : index
    %c0_108 = arith.constant 0 : index
    %c0_109 = arith.constant 0 : index
    %105 = vector.load %arg3[%c8_107, %c0_108, %c0_109] : memref<9x8x8xf32, #tpu.memory_space<vmem>>, vector<1x8x8xf32>
    %106 = vector.shape_cast %105 : vector<1x8x8xf32> to vector<8x8xf32>
    %cst_110 = arith.constant dense<0.000000e+00> : vector<8x384xf32>
    %107 = tpu.matmul %106, %100, %cst_110 {dimension_numbers = #tpu.dot_dimension_numbers<[1], [0], [0], [1], [0, 0, 1, 1], [], []>} : vector<8x8xf32>, vector<8x384xf32>, vector<8x384xf32> -> vector<8x384xf32>
    %108 = arith.addf %104, %107 : vector<8x384xf32>
    %c0_111 = arith.constant 0 : index
    %c0_112 = arith.constant 0 : index
    %c0_113 = arith.constant 0 : index
    %109 = vector.load %arg6[%c0_111, %c0_112, %c0_113] : memref<1x8x384xf32, #tpu.memory_space<vmem>>, vector<1x8x384xf32>
    %110 = vector.shape_cast %109 : vector<1x8x384xf32> to vector<8x384xf32>
    %111 = vector.shape_cast %108 : vector<8x384xf32> to vector<1x8x384xf32>
    tpu.vector_store %arg6[%c0_111, %c0_112, %c0_113], %111 {strides = array<i32>} : memref<1x8x384xf32, #tpu.memory_space<vmem>>, vector<1x8x384xf32>,
    return
  }
  func.func @transform_0(%arg0: i32, %arg1: i32) -> (i32, i32, i32) {
    %c0_i32 = arith.constant 0 : i32
    %c0_i32_0 = arith.constant 0 : i32
    %c0_i32_1 = arith.constant 0 : i32
    return %c0_i32, %arg1, %c0_i32_0 : i32, i32, i32
  }
  func.func @transform_1(%arg0: i32, %arg1: i32) -> (i32, i32, i32) {
    %c0_i32 = arith.constant 0 : i32
    %c0_i32_0 = arith.constant 0 : i32
    %c0_i32_1 = arith.constant 0 : i32
    return %c0_i32, %arg1, %c0_i32_0 : i32, i32, i32
  }
  func.func @transform_2(%arg0: i32, %arg1: i32) -> (i32, i32, i32) {
    %c0_i32 = arith.constant 0 : i32
    %c0_i32_0 = arith.constant 0 : i32
    %c0_i32_1 = arith.constant 0 : i32
    return %arg0, %c0_i32, %c0_i32_0 : i32, i32, i32
  }
  func.func @transform_3(%arg0: i32, %arg1: i32) -> (i32, i32, i32) {
    %c0_i32 = arith.constant 0 : i32
    %c0_i32_0 = arith.constant 0 : i32
    %c0_i32_1 = arith.constant 0 : i32
    return %arg0, %c0_i32, %c0_i32_0 : i32, i32, i32
  }
  func.func @transform_4(%arg0: i32, %arg1: i32) -> (i32, i32, i32) {
    %c0_i32 = arith.constant 0 : i32
    %c0_i32_0 = arith.constant 0 : i32
    return %arg0, %arg1, %c0_i32 : i32, i32, i32
  }
}

</mosaic_0001>

<bundles_post_ra>
// kernel: _lambda_.8
= control target key start
LH: loop header
LB: loop body
LE: loop exit
PB: predicated region body
PF: predicated region fallthrough
CT: control target
= control target key end

     0   :  { %s460_s12 = smov 0   ;;  %s490_s0 = inlined_call_operand.vmem [shape: f32[16,8], index: 0, kind: input, shape index: {}]   ;;  %s491_s1 = inlined_call_operand.vmem [shape: f32[8,16], index: 1, kind: input, shape index: {}]   ;;  %s492_s2 = inlined_call_operand.vmem [shape: f32[6,8,8], index: 2, kind: input, shape index: {}]   ;;  %s493_s3 = inlined_call_operand.vmem [shape: f32[6,16,16], index: 3, kind: output, shape index: {}]  }
   0x1 LB: > { %s393_s13 = sadd.s32 4294967295, %s438_s12   ;;  %p397_p0 = scmp.ge.s32.totalorder %s438_s12, 1  ;;  %s438_s12 = sphi %s460_s12, %s13_s12  }
   0x2   : > { %p136_p1 = scmp.lt.s32.totalorder %s438_s12, 7 }
   0x4   : > { %p137_p2 = pnand %p397_p0, %p136_p1 }
   0x5   : > { %p159_p3 = scmp.lt.s32.totalorder (!%p137_p2), %s393_s13, 5  ;;  %v168_v0 = vld [vmem:[%s490_s0] sm:$0xff] (!%p137_p2)  ;;  %vm171_vm0 = vcmask (!%p137_p2), 64512   ;;  %v169_v2 = vld [vmem:[%s490_s0 + $0x8] sm:$0xff] (!%p137_p2)  ;;  %vm335_vm1 = vcmask (!%p137_p2), 130048  }
   0x6   : > { %140 = sbr.rel (%p137_p2) target bundleno = 447 (0x1bf), region = 32  ;;  %416 = vmatprep.mubr.msk.f32.mxu0 (!%p137_p2), %vm171_vm0, %v168_v0  ;;  %v253_v3 = vld [vmem:[%s491_s1] sm:$0xff] (!%p137_p2) }
   0x7   : > { %419 = vmatprep.subr.mxu1 (!%p137_p2), %v253_v3 }
   0x8   : > { %420 = vmatpush3.msra.mxu1 (!%p137_p2), %v253_v3 }
   0xd   : > { %s495_s13 = smov (!%p159_p3, %s393_s13), 5 }
   0xe   : > { %s398_s16 = sshll.u32 %s495_s13, 3  ;;  %s407_s24 = sshll.u32 %s495_s13, 4 }
   0xf   : > { %s162_s19 = scalar_lea.vmem %s492_s2, %s398_s16  ;;  %s167_s27 = scalar_lea.vmem %s493_s3, %s407_s24 }
  0x10   : > { %v170_v1 = vld [vmem:[%s162_s19] sm:$0xff] }
  0x11   : > { %414 = vmatprep.subr.mxu0 %v170_v1 }
  0x12   : > { %415 = vmatpush3.msra.mxu0 %v170_v1 }
  0x13   : > { %417 = vmatmul.mubr.msk.f32.vlgmr.msra.gmra.mrb[0].mxu0 %vm171_vm0, %v169_v2 }
  0xe6   : > { %v418_v4 = vpop.f32.mrb[0].mxu0 }
  0xe7   : > { %v244_v5 = vpop.f32.mrb[1].mxu0 }
  0xe8   : > { %421 = vmatprep.mubr.msk.f32.mxu1 %vm171_vm0, %v244_v5 }
  0xe9   : > { %422 = vmatmul.mubr.msk.f32.vlgmr.msra.gmra.mrb[0].mxu1 %vm171_vm0, %v418_v4 }
 0x1bc   : > { %v423_v6 = vpop.f32.mrb[0].mxu1 }
 0x1bd   : > { %337 = vst.msk [vmem:[%s167_s27 + $0x8] sm:$0xff] %vm335_vm1, %v423_v6  ;;  %v326_v7 = vpop.f32.mrb[1].mxu1 }
 0x1be   : > { %336 = vst.msk [vmem:[%s167_s27] sm:$0xff] %vm335_vm1, %v326_v7 }
 0x1bf PF: > { %s13_s12 = sadd.s32 1, %s438_s12  }
 0x1c0   : > { %p10_p4 = scmp.ge.s32.totalorder %s13_s12, 8  }
 0x1c2   :  { %12 = sbr.rel (!%p10_p4) target bundleno = 1 (0x1), region = 62 }

// kernel: _lambda_.9
= control target key start
LH: loop header
LB: loop body
LE: loop exit
PB: predicated region body
PF: predicated region fallthrough
CT: control target
= control target key end

     0   :  { %s3410_s12 = smov 0   ;;  %s3412_s13 = smov 0   ;;  %s4074_s0 = inlined_call_operand.vmem [shape: f32[9,48,3], index: 0, kind: input, shape index: {}]   ;;  %s4075_s1 = inlined_call_operand.vmem [shape: f32[48,1], index: 1, kind: input, shape index: {}]   ;;  %s4076_s2 = inlined_call_operand.vmem [shape: f32[2,3,512], index: 2, kind: input, shape index: {}]   ;;  %s4077_s3 = inlined_call_operand.vmem [shape: f32[2,48,384], index: 3, kind: output, shape index: {}]  }
   0x1   :  { %s3414_s14 = smov 0  }
   0x2 LB: > { %s25_s15 = sadd.s32 1, %s3374_s13  ;;  %p2805_p0 = scmp.ge.s32.totalorder %s3378_s14, 1  ;;  %s3378_s14 = sphi %s3414_s14, %s13_s14   ;;  %s3374_s13 = sphi %s3412_s13, %s4079_s13   ;;  %s3370_s12 = sphi %s3410_s12, %s4078_s12  }
   0x3   : > { %p27_p1 = scmp.ge.s32.totalorder %s25_s15, 2  ;;  %p173_p2 = scmp.lt.s32.totalorder %s3378_s14, 3 }
   0x5   : > { %s4081_s15 = smov (%p27_p1, %s25_s15), 0  ;;  %p174_p3 = pnand %p2805_p0, %p173_p2 }
   0x6   : > { %p224_p4 = scmp.lt.s32.totalorder (!%p174_p3), %s3370_s12, 1  ;;  %v3380_v0 = vmov (!%p174_p3), 0.0   ;;  %s3381_s20 = smov (!%p174_p3), 126   ;;  %vm291_vm0 = vcmask (!%p174_p3), 1042432   ;;  %vm736_vm1 = vcmask (!%p174_p3), 1031168   ;;  %vm272_vm2 = vcmask (!%p174_p3), 23552  }
   0x7   : > { %177 = sbr.rel (%p174_p3) target bundleno = 525 (0x20d), region = 32  ;;  %828 = vmatprep.mubr.f32.mxu0 (!%p174_p3), %v3380_v0  ;;  %362 = vmatprep.mubr.f32.mxu1 (!%p174_p3), %v3380_v0  ;;  %s3382_s21 = smov (!%p174_p3), 127   ;;  %v3479_v38 = vld [vmem:[%s4074_s0 + $0x60] sm:$0xff] (!%p174_p3)  ;;  %vm268_vm3 = vcmask (!%p174_p3), 1039360   ;;  %v3495_v43 = vld [vmem:[%s4074_s0 + $0x68] sm:$0xff] (!%p174_p3)  ;;  %v3500_v44 = vld [vmem:[%s4074_s0 + $0x30] sm:$0xff] (!%p174_p3) }
   0x8   : > { %s3383_s22 = smov (!%p174_p3), 110   ;;  %s3384_s23 = smov (!%p174_p3), 109   ;;  %vm999_vm4 = vcmask (!%p174_p3), 900096   ;;  %v3518_v49 = vld [vmem:[%s4074_s0 + $0x70] sm:$0xff] (!%p174_p3)  ;;  %v2810_v50 = vld [vmem:[%s4074_s0 + $0x38] sm:$0xff] (!%p174_p3)  ;;  %v2811_v56 = vld [vmem:[%s4074_s0 + $0x40] sm:$0xff] (!%p174_p3) }
   0x9   : > { %s3385_s24 = smov (!%p174_p3), 108   ;;  %s3386_s25 = smov (!%p174_p3), 92   ;;  %v3534_v55 = vld [vmem:[%s4074_s0 + $0x78] sm:$0xff] (!%p174_p3)  ;;  %vm1262_vm5 = vcmask (!%p174_p3), 891904   ;;  %v3553_v60 = vld [vmem:[%s4074_s0 + $0x80] sm:$0xff] (!%p174_p3)  ;;  %v2812_v61 = vld [vmem:[%s4074_s0 + $0x48] sm:$0xff] (!%p174_p3) }
   0xa   : > { %s3387_s26 = smov (!%p174_p3), 91   ;;  %s3388_s27 = smov (!%p174_p3), 90   ;;  %vm1525_vm6 = vcmask (!%p174_p3), 883712   ;;  %vm1788_vm7 = vcmask (!%p174_p3), 752640   ;;  %vm2051_vm8 = vcmask (!%p174_p3), 744448   ;;  %vm2314_vm9 = vcmask (!%p174_p3), 736256  }
   0xe   : > { %s4083_s12 = smov (!%p224_p4, %s3370_s12), 1 }
   0xf   : > { %s2994_s16 = sshll.u32 %s4083_s12, 4  ;;  %s3303_s7 = smul.u32 144, %s4083_s12 }
  0x10   : > { %s3436_s19 = scalar_lea.vmem %s4076_s2, %s2994_s16 }
  0x11   : > { %v715_v1 = vld [vmem:[%s3436_s19] sm:$0x77]  ;;  %v716_v5 = vld [vmem:[%s3436_s19 + $0x8] sm:$0x77]  ;;  %s4041_s9 = scalar_lea.vmem %s4077_s3, %s3303_s7 }
  0x12   : > { %v3440_v2 = vld [vmem:[%s3436_s19] sm:$0x77]  ;;  %728 = vrot.lane.b32.xlu1 %v715_v1, %s3381_s20  ;;  %v726_v3 = vcombine.high %v715_v1, %v715_v1  ;;  %v248_v6 = vld [vmem:[%s3436_s19 + $0x8] sm:$0x77]  ;;  %v727_v19 = vcombine.high %v716_v5, %v716_v5  ;;  %v2813_v1 = vld [vmem:[%s4074_s0 + $0x50] sm:$0xff] }
  0x13   : > { %v3445_v4 = vcombine.high %v3440_v2, %v3440_v2  ;;  %v978_v7 = vld [vmem:[%s3436_s19] sm:$0x77]  ;;  %v979_v8 = vld [vmem:[%s3436_s19 + $0x8] sm:$0x77]  ;;  %v259_v10 = vcombine.high %v248_v6, %v248_v6 }
  0x14   : > { %730 = vrot.lane.b32.xlu0 %v726_v3, %s3381_s20  ;;  %v989_v9 = vcombine.high %v978_v7, %v978_v7  ;;  %v1241_v11 = vld [vmem:[%s3436_s19] sm:$0x77]  ;;  %v1242_v12 = vld [vmem:[%s3436_s19 + $0x8] sm:$0x77]  ;;  %v990_v22 = vcombine.high %v979_v8, %v979_v8  ;;  %v3572_v3 = vld [vmem:[%s4074_s0 + $0x90] sm:$0xff] }
  0x15   : > { %v1504_v13 = vld [vmem:[%s3436_s19] sm:$0x77]  ;;  %v1252_v14 = vcombine.high %v1241_v11, %v1241_v11  ;;  %v1505_v17 = vld [vmem:[%s3436_s19 + $0x8] sm:$0x77]  ;;  %v1253_v21 = vcombine.high %v1242_v12, %v1242_v12 }
  0x16   : > { %262 = vrot.lane.b32.xlu1 %v3445_v4, %s3382_s21  ;;  %v1515_v15 = vcombine.high %v1504_v13, %v1504_v13  ;;  %v1767_v16 = vld [vmem:[%s3436_s19] sm:$0x77]  ;;  %v1768_v20 = vld [vmem:[%s3436_s19 + $0x8] sm:$0x77]  ;;  %v1516_v26 = vcombine.high %v1505_v17, %v1505_v17 }
  0x17   : > { %v1778_v18 = vcombine.high %v1767_v16, %v1767_v16  ;;  %v2030_v23 = vld [vmem:[%s3436_s19] sm:$0x77]  ;;  %v2031_v24 = vld [vmem:[%s3436_s19 + $0x8] sm:$0x77]  ;;  %v1779_v29 = vcombine.high %v1768_v20, %v1768_v20 }
  0x18   : > { %732 = vrot.lane.b32.xlu0 %v716_v5, %s3381_s20  ;;  %v2041_v25 = vcombine.high %v2030_v23, %v2030_v23  ;;  %v2293_v27 = vld [vmem:[%s3436_s19] sm:$0x77]  ;;  %v2294_v30 = vld [vmem:[%s3436_s19 + $0x8] sm:$0x77]  ;;  %v2042_v32 = vcombine.high %v2031_v24, %v2031_v24 }
  0x19   : > { %v2304_v28 = vcombine.high %v2293_v27, %v2293_v27  ;;  %v2305_v31 = vcombine.high %v2294_v30, %v2294_v30 }
  0x1a   : > { %260 = vrot.lane.b32.xlu1 %v3440_v2, %s3382_s21 }
  0x1c   : > { %264 = vrot.lane.b32.xlu0 %v248_v6, %s3382_s21 }
  0x1e   : > { %995 = vrot.lane.b32.xlu1 %v979_v8, %s3383_s22  ;;  %v2814_v8 = vld [vmem:[%s4074_s0 + $0x58] sm:$0xff] }
  0x20   : > { %993 = vrot.lane.b32.xlu0 %v989_v9, %s3383_s22  ;;  %v3590_v9 = vld [vmem:[%s4074_s0 + $0x98] sm:$0xff] }
  0x22   : > { %266 = vrot.lane.b32.xlu1 %v259_v10, %s3382_s21 }
  0x24   : > { %991 = vrot.lane.b32.xlu0 %v978_v7, %s3383_s22 }
  0x26   : > { %1258 = vrot.lane.b32.xlu1 %v1242_v12, %s3384_s23 }
  0x28   : > { %1256 = vrot.lane.b32.xlu0 %v1252_v14, %s3384_s23 }
  0x2a   : > { %1519 = vrot.lane.b32.xlu1 %v1515_v15, %s3385_s24 }
  0x2c   : > { %1254 = vrot.lane.b32.xlu0 %v1241_v11, %s3384_s23 }
  0x2e   : > { %1517 = vrot.lane.b32.xlu1 %v1504_v13, %s3385_s24  ;;  %v3609_v13 = vld [vmem:[%s4074_s0 + $0xa0] sm:$0xff] }
  0x30   : > { %1521 = vrot.lane.b32.xlu0 %v1505_v17, %s3385_s24  ;;  %v3624_v17 = vld [vmem:[%s4074_s0 + $0xa8] sm:$0xff] }
  0x32   : > { %1782 = vrot.lane.b32.xlu1 %v1778_v18, %s3386_s25 }
  0x34   : > { %734 = vrot.lane.b32.xlu0 %v727_v19, %s3381_s20 }
  0x36   : > { %1780 = vrot.lane.b32.xlu1 %v1767_v16, %s3386_s25  ;;  %v241_v16 = vld [vmem:[%s3436_s19 + $0x8] sm:$0x7] }
  0x38   : > { %1784 = vrot.lane.b32.xlu0 %v1768_v20, %s3386_s25 }
  0x3a   : > { %1260 = vrot.lane.b32.xlu1 %v1253_v21, %s3384_s23  ;;  %v2556_v21 = vld [vmem:[%s4075_s1] sm:$0xff] }
  0x3c   : > { %997 = vrot.lane.b32.xlu0 %v990_v22, %s3383_s22  ;;  %v2557_v22 = vld [vmem:[%s4075_s1 + $0x8] sm:$0xff] }
  0x3e   : > { %2047 = vrot.lane.b32.xlu1 %v2031_v24, %s3387_s26 }
  0x40   : > { %2045 = vrot.lane.b32.xlu0 %v2041_v25, %s3387_s26  ;;  %v3389_v25 = vmov 0  }
  0x41   : > { %3338 = vset.pattern.permute.xlu0 %v3389_v25  ;;  %3339 = vset.pattern.permute.xlu1 %v3389_v25 }
  0x42   : > { %1523 = vrot.lane.b32.xlu1 %v1516_v26, %s3385_s24  ;;  %v2558_v26 = vld [vmem:[%s4075_s1 + $0x10] sm:$0xff] }
  0x44   : > { %2043 = vrot.lane.b32.xlu0 %v2030_v23, %s3387_s26  ;;  %v3650_v23 = vld [vmem:[%s4074_s0 + $0xb0] sm:$0xff] }
  0x46   : > { %2308 = vrot.lane.b32.xlu1 %v2304_v28, %s3388_s27  ;;  %v242_v28 = vld [vmem:[%s4074_s0] sm:$0xff] }
  0x48   : > { %1786 = vrot.lane.b32.xlu0 %v1779_v29, %s3386_s25  ;;  %v3671_v29 = vld [vmem:[%s4074_s0 + $0xb8] sm:$0xff] }
  0x4a   : > { %2306 = vrot.lane.b32.xlu1 %v2293_v27, %s3388_s27  ;;  %v2559_v27 = vld [vmem:[%s4075_s1 + $0x18] sm:$0xff] }
  0x4c   : > { %2310 = vrot.lane.b32.xlu0 %v2294_v30, %s3388_s27 }
  0x4e   : > { %2312 = vrot.lane.b32.xlu1 %v2305_v31, %s3388_s27 }
  0x50   : > { %2049 = vrot.lane.b32.xlu0 %v2042_v32, %s3387_s26  ;;  %v2560_v32 = vld [vmem:[%s4075_s1 + $0x20] sm:$0xff] }
  0x52   : > { %2569 = vperm.xlu1 %3339, %v2557_v22   ;;  %v2973_v22 = vld [vmem:[%s4074_s0 + $0x190] sm:$0xff] }
  0x54   : > { %2564 = vperm.xlu0 %3338, %v2556_v21   ;;  %v2972_v21 = vld [vmem:[%s4074_s0 + $0x188] sm:$0xff] }
  0x56   : > { %2574 = vperm.xlu1 %3339, %v2558_v26  }
  0x58   : > { %2579 = vperm.xlu0 %3338, %v2559_v27  }
  0x5a   : > { %2584 = vperm.xlu1 %3339, %v2560_v32  }
  0x84   : > { %v729_v33 = vpop.permute.xlu1 %728 }
  0x86   : > { %v731_v34 = vpop.permute.xlu0 %730 }
  0x87   : > { %v3484_v40 = vsel %vm736_vm1, %v729_v33, %v731_v34  ;;  %v2561_v33 = vld [vmem:[%s4075_s1 + $0x28] sm:$0xff] }
  0x88   : > { %v263_v35 = vpop.permute.xlu1 %262  ;;  %2589 = vperm.xlu0 %3338, %v2561_v33  }
  0x8a   : > { %v3470_v36 = vpop.permute.xlu0 %732 }
  0x8b   : > { %v3474_v37 = vsel %vm736_vm1, %v731_v34, %v3470_v36  ;;  %v243_v34 = vld [vmem:[%s4074_s0 + $0x8] sm:$0xff] }
  0x8c   : > { %2851 = vmatprep.subr.msk.mxu0 %vm291_vm0, %v3474_v37  ;;  %v261_v39 = vpop.permute.xlu1 %260 }
  0x8d   : > { %2852 = vmatpush1.msk.msra.mxu0 %vm291_vm0, %v3484_v40  ;;  %v269_v46 = vsel %vm268_vm3, %v261_v39, %v263_v35 }
  0x8e   : > { %2853 = vmatmul.mubr.msk.f32.vlgmr.msra.gmra.mrb[0].mxu0 %vm272_vm2, %v3479_v38  ;;  %v265_v41 = vpop.permute.xlu0 %264 }
  0x8f   : > { %v270_v42 = vsel %vm268_vm3, %v263_v35, %v265_v41  ;;  %834 = vmatprep.mubr.f32.mxu0 %v3380_v0  ;;  %v3693_v35 = vld [vmem:[%s4074_s0 + $0xc0] sm:$0xff] }
  0x90   : > { %2815 = vmatprep.subr.msk.mxu1 %vm291_vm0, %v270_v42  ;;  %v3503_v45 = vpop.permute.xlu1 %995  ;;  %v245_v42 = vld [vmem:[%s4074_s0 + $0x18] sm:$0xff] }
  0x91   : > { %2816 = vmatpush1.msk.msra.mxu1 %vm291_vm0, %v269_v46  ;;  %v3743_v46 = vld [vmem:[%s4074_s0 + $0xd8] sm:$0xff] }
  0x92   : > { %2854 = vmatmul.mubr.msk.f32.gmra.mrb[2].mxu0 %vm272_vm2, %v3495_v43  ;;  %v994_v47 = vpop.permute.xlu0 %993  ;;  %2817 = vmatmul.mubr.msk.f32.vlgmr.msra.gmra.mrb[0].mxu1 %vm272_vm2, %v3500_v44 }
  0x93   : > { %v1001_v48 = vsel %vm999_vm4, %v994_v47, %v3503_v45  ;;  %368 = vmatprep.mubr.f32.mxu1 %v3380_v0  ;;  %840 = vmatprep.mubr.f32.mxu0 %v3380_v0 }
  0x94   : > { %2872 = vmatprep.subr.msk.mxu0 %vm291_vm0, %v1001_v48  ;;  %v267_v51 = vpop.permute.xlu1 %266  ;;  %v3756_v48 = vld [vmem:[%s4074_s0 + $0xe0] sm:$0xff] }
  0x95   : > { %v271_v52 = vsel %vm268_vm3, %v265_v41, %v267_v51  ;;  %v3715_v41 = vld [vmem:[%s4074_s0 + $0xc8] sm:$0xff]  ;;  %v3777_v51 = vld [vmem:[%s4074_s0 + $0xf0] sm:$0xff] }
  0x96   : > { %2855 = vmatmul.mubr.msk.f32.gmra.mrb[4].mxu0 %vm272_vm2, %v3518_v49  ;;  %v992_v53 = vpop.permute.xlu0 %991  ;;  %2818 = vmatmul.mubr.msk.f32.gmra.mrb[2].mxu1 %vm272_vm2, %v2810_v50 }
  0x97   : > { %v1000_v54 = vsel %vm999_vm4, %v992_v53, %v994_v47  ;;  %3058 = vmatprep.subr.msk.mxu1 %vm291_vm0, %v271_v52  ;;  %374 = vmatprep.mubr.f32.mxu1 %v3380_v0  ;;  %v247_v47 = vld [vmem:[%s4074_s0 + $0x28] sm:$0xff] }
  0x98   : > { %3059 = vmatpush3.msk.msra.mxu1 %vm291_vm0, %v271_v52  ;;  %2873 = vmatpush1.msk.msra.mxu0 %vm291_vm0, %v1000_v54  ;;  %v1259_v57 = vpop.permute.xlu1 %1258  ;;  %v3795_v54 = vld [vmem:[%s4074_s0 + $0xf8] sm:$0xff] }
  0x99   : > { %846 = vmatprep.mubr.f32.mxu0 %v3380_v0  ;;  %2830 = vmatprep.subr.msk.mxu1 %vm291_vm0, %v3445_v4 }
  0x9a   : > { %2856 = vmatmul.mubr.msk.f32.gmra.mrb[6].mxu0 %vm272_vm2, %v3534_v55  ;;  %v1257_v58 = vpop.permute.xlu0 %1256  ;;  %2819 = vmatmul.mubr.msk.f32.gmra.mrb[4].mxu1 %vm272_vm2, %v2811_v56 }
  0x9b   : > { %v1264_v59 = vsel %vm1262_vm5, %v1257_v58, %v1259_v57  ;;  %380 = vmatprep.mubr.f32.mxu1 %v3380_v0  ;;  %852 = vmatprep.mubr.f32.mxu0 %v3380_v0 }
  0x9c   : > { %v3558_v62 = vpop.permute.xlu1 %1519  ;;  %2893 = vmatprep.subr.msk.mxu0 %vm291_vm0, %v1264_v59 }
  0x9e   : > { %2857 = vmatmul.mubr.msk.f32.gmra.mrb[8].mxu0 %vm272_vm2, %v3553_v60  ;;  %v1255_v63 = vpop.permute.xlu0 %1254  ;;  %2820 = vmatmul.mubr.msk.f32.gmra.mrb[6].mxu1 %vm272_vm2, %v2812_v61 }
  0x9f   : > { %386 = vmatprep.mubr.f32.mxu1 %v3380_v0  ;;  %1091 = vmatprep.mubr.f32.mxu0 %v3380_v0  ;;  %v1263_v5 = vsel %vm1262_vm5, %v1255_v63, %v1257_v58  ;;  %v3822_v58 = vld [vmem:[%s4074_s0 + $0x108] sm:$0xff] }
  0xa0   : > { %v3574_v4 = vpop.permute.xlu1 %1517 }
  0xa2   : > { %v1522_v6 = vpop.permute.xlu0 %1521  ;;  %2821 = vmatmul.mubr.msk.f32.gmra.mrb[8].mxu1 %vm272_vm2, %v2813_v1  ;;  %2874 = vmatmul.mubr.msk.f32.vlgmr.msra.gmra.mrb[0].mxu0 %vm272_vm2, %v3572_v3 }
  0xa3   : > { %v1527_v7 = vsel %vm1525_vm6, %v3558_v62, %v1522_v6  ;;  %392 = vmatprep.mubr.f32.mxu1 %v3380_v0  ;;  %1097 = vmatprep.mubr.f32.mxu0 %v3380_v0 }
  0xa4   : > { %v3592_v10 = vpop.permute.xlu1 %1782  ;;  %2894 = vmatpush1.msk.msra.mxu0 %vm291_vm0, %v1263_v5 }
  0xa5   : > { %2914 = vmatprep.subr.msk.mxu0 %vm291_vm0, %v1527_v7  ;;  %v2934_v7 = vld [vmem:[%s4074_s0 + $0x148] sm:$0xff] }
  0xa6   : > { %v735_v11 = vpop.permute.xlu0 %734  ;;  %2822 = vmatmul.mubr.msk.f32.gmra.mrb[10].mxu1 %vm272_vm2, %v2814_v8  ;;  %2875 = vmatmul.mubr.msk.f32.gmra.mrb[2].mxu0 %vm272_vm2, %v3590_v9 }
  0xa7   : > { %v3601_v12 = vsel %vm736_vm1, %v3470_v36, %v735_v11  ;;  %3060 = vmatprep.mubr.msk.f32.mxu1 %vm272_vm2, %v3500_v44  ;;  %1103 = vmatprep.mubr.f32.mxu0 %v3380_v0  ;;  %v1526_v36 = vsel %vm1525_vm6, %v3574_v4, %v3558_v62  ;;  %v3730_v44 = vld [vmem:[%s4074_s0 + $0xd0] sm:$0xff]  ;;  %v2932_v4 = vld [vmem:[%s4074_s0 + $0x138] sm:$0xff] }
  0xa8   : > { %v3611_v14 = vpop.permute.xlu1 %1780 }
  0xa9   : > { %v1789_v52 = vsel %vm1788_vm7, %v3611_v14, %v3592_v10  ;;  %v2952_v14 = vld [vmem:[%s4074_s0 + $0x160] sm:$0xff] }
  0xaa   : > { %v3613_v15 = vpop.permute.xlu0 %1784  ;;  %3061 = vmatmul.mubr.msk.f32.vlgmr.msra.gmra.mrb[12].mxu1 %vm272_vm2, %v2810_v50  ;;  %2876 = vmatmul.mubr.msk.f32.gmra.mrb[4].mxu0 %vm272_vm2, %v3609_v13  ;;  %v3766_v50 = vld [vmem:[%s4074_s0 + $0xe8] sm:$0xff] }
  0xab   : > { %3063 = vmatprep.mubr.msk.f32.mxu1 %vm272_vm2, %v2811_v56  ;;  %1109 = vmatprep.mubr.f32.mxu0 %v3380_v0  ;;  %v1790_v39 = vsel %vm1788_vm7, %v3592_v10, %v3613_v15  ;;  %v2850_v56 = vld [vmem:[%s4074_s0 + $0x88] sm:$0xff] }
  0xac   : > { %v1261_v18 = vpop.permute.xlu1 %1260  ;;  %2831 = vmatpush1.msk.msra.mxu1 %vm291_vm0, %v3440_v2 }
  0xad   : > { %v3629_v19 = vsel %vm1262_vm5, %v1259_v57, %v1261_v18  ;;  %3069 = vmatprep.subr.msk.mxu1 %vm291_vm0, %v241_v16  ;;  %v3810_v57 = vld [vmem:[%s4074_s0 + $0x100] sm:$0xff]  ;;  %v2954_v18 = vld [vmem:[%s4074_s0 + $0x170] sm:$0xff] }
  0xae   : > { %v998_v20 = vpop.permute.xlu0 %997  ;;  %3064 = vmatmul.mubr.msk.f32.gmra.mrb[14].mxu1 %vm272_vm2, %v2812_v61  ;;  %2877 = vmatmul.mubr.msk.f32.gmra.mrb[6].mxu0 %vm272_vm2, %v3624_v17  ;;  %v2930_v61 = vld [vmem:[%s4074_s0 + $0x128] sm:$0xff] }
  0xaf   : > { %v3643_v2 = vsel %vm999_vm4, %v3503_v45, %v998_v20  ;;  %3066 = vmatprep.mubr.msk.f32.mxu1 %vm272_vm2, %v2813_v1  ;;  %1115 = vmatprep.mubr.f32.mxu0 %v3380_v0  ;;  %v246_v45 = vld [vmem:[%s4074_s0 + $0x20] sm:$0xff] }
  0xb0   : > { %v3652_v24 = vpop.permute.xlu1 %2047  ;;  %v2971_v20 = vld [vmem:[%s4074_s0 + $0x180] sm:$0xff] }
  0xb2   : > { %3067 = vmatmul.mubr.msk.f32.gmra.mrb[16].mxu1 %vm272_vm2, %v2814_v8  ;;  %2878 = vmatmul.mubr.msk.f32.gmra.mrb[8].mxu0 %vm272_vm2, %v3650_v23  ;;  %v2046_v53 = vpop.permute.xlu0 %2045  ;;  %v2950_v8 = vld [vmem:[%s4074_s0 + $0x150] sm:$0xff] }
  0xb3   : > { %583 = vmatprep.mubr.f32.mxu1 %v3380_v0  ;;  %1121 = vmatprep.mubr.f32.mxu0 %v3380_v0 }
  0xb4   : > { %v1524_v30 = vpop.permute.xlu1 %1523 }
  0xb5   : > { %v3674_v31 = vsel %vm1525_vm6, %v1522_v6, %v1524_v30  ;;  %v2933_v6 = vld [vmem:[%s4074_s0 + $0x140] sm:$0xff] }
  0xb6   : > { %2832 = vmatmul.mubr.msk.f32.vlgmr.msra.gmra.mrb[0].mxu1 %vm272_vm2, %v242_v28  ;;  %2879 = vmatmul.mubr.msk.f32.gmra.mrb[10].mxu0 %vm272_vm2, %v3671_v29 }
  0xb7   : > { %3070 = vmatpush3.msk.msra.mxu1 %vm291_vm0, %v241_v16  ;;  %589 = vmatprep.mubr.f32.mxu1 %v3380_v0  ;;  %v2953_v16 = vld [vmem:[%s4074_s0 + $0x168] sm:$0xff] }
  0xb8   : > { %3157 = vmatprep.subr.msk.mxu1 %vm291_vm0, %v3474_v37  ;;  %1354 = vmatprep.mubr.f32.mxu0 %v3380_v0  ;;  %v244_v37 = vld [vmem:[%s4074_s0 + $0x10] sm:$0xff]  ;;  %v2309_v63 = vpop.permute.xlu1 %2308 }
  0xba   : > { %2833 = vmatmul.mubr.msk.f32.gmra.mrb[2].mxu1 %vm272_vm2, %v243_v34  ;;  %2895 = vmatmul.mubr.msk.f32.vlgmr.msra.gmra.mrb[0].mxu0 %vm272_vm2, %v3693_v35 }
  0xbb   : > { %595 = vmatprep.mubr.f32.mxu1 %v3380_v0  ;;  %1360 = vmatprep.mubr.f32.mxu0 %v3380_v0 }
  0xbc   : > { %2915 = vmatpush1.msk.msra.mxu0 %vm291_vm0, %v1526_v36  ;;  %v2307_v10 = vpop.permute.xlu1 %2306 }
  0xbd   : > { %2935 = vmatprep.subr.msk.mxu0 %vm291_vm0, %v1790_v39  ;;  %v2315_v11 = vsel %vm2314_vm9, %v2307_v10, %v2309_v63 }
  0xbe   : > { %2834 = vmatmul.mubr.msk.f32.gmra.mrb[4].mxu1 %vm272_vm2, %v244_v37  ;;  %2896 = vmatmul.mubr.msk.f32.gmra.mrb[2].mxu0 %vm272_vm2, %v3715_v41 }
  0xbf   : > { %601 = vmatprep.mubr.f32.mxu1 %v3380_v0  ;;  %1366 = vmatprep.mubr.f32.mxu0 %v3380_v0 }
  0xc2   : > { %2835 = vmatmul.mubr.msk.f32.gmra.mrb[6].mxu1 %vm272_vm2, %v245_v42  ;;  %2897 = vmatmul.mubr.msk.f32.gmra.mrb[4].mxu0 %vm272_vm2, %v3730_v44 }
  0xc3   : > { %607 = vmatprep.mubr.f32.mxu1 %v3380_v0  ;;  %1372 = vmatprep.mubr.f32.mxu0 %v3380_v0 }
  0xc6   : > { %2836 = vmatmul.mubr.msk.f32.gmra.mrb[8].mxu1 %vm272_vm2, %v246_v45  ;;  %2898 = vmatmul.mubr.msk.f32.gmra.mrb[6].mxu0 %vm272_vm2, %v3743_v46 }
  0xc7   : > { %613 = vmatprep.mubr.f32.mxu1 %v3380_v0  ;;  %1378 = vmatprep.mubr.f32.mxu0 %v3380_v0 }
  0xca   : > { %2837 = vmatmul.mubr.msk.f32.gmra.mrb[10].mxu1 %vm272_vm2, %v247_v47  ;;  %2899 = vmatmul.mubr.msk.f32.gmra.mrb[8].mxu0 %vm272_vm2, %v3756_v48 }
  0xcb   : > { %3071 = vmatprep.mubr.msk.f32.mxu1 %vm272_vm2, %v242_v28  ;;  %1384 = vmatprep.mubr.f32.mxu0 %v3380_v0 }
  0xce   : > { %3072 = vmatmul.mubr.msk.f32.vlgmr.msra.gmra.mrb[12].mxu1 %vm272_vm2, %v243_v34  ;;  %2900 = vmatmul.mubr.msk.f32.gmra.mrb[10].mxu0 %vm272_vm2, %v3766_v50 }
  0xcf   : > { %3158 = vmatpush1.msk.msra.mxu1 %vm291_vm0, %v3484_v40  ;;  %3074 = vmatprep.mubr.msk.f32.mxu1 %vm272_vm2, %v244_v37  ;;  %v2053_v40 = vsel %vm2051_vm8, %v2046_v53, %v3652_v24 }
  0xd0   : > { %3080 = vmatprep.subr.msk.mxu1 %vm291_vm0, %v3601_v12  ;;  %1617 = vmatprep.mubr.f32.mxu0 %v3380_v0 }
  0xd2   : > { %3075 = vmatmul.mubr.msk.f32.gmra.mrb[14].mxu1 %vm272_vm2, %v245_v42  ;;  %2916 = vmatmul.mubr.msk.f32.vlgmr.msra.gmra.mrb[0].mxu0 %vm272_vm2, %v3777_v51 }
  0xd3   : > { %3077 = vmatprep.mubr.msk.f32.mxu1 %vm272_vm2, %v246_v45  ;;  %1623 = vmatprep.mubr.f32.mxu0 %v3380_v0 }
  0xd4   : > { %2936 = vmatpush1.msk.msra.mxu0 %vm291_vm0, %v1789_v52 }
  0xd5   : > { %2956 = vmatprep.subr.msk.mxu0 %vm291_vm0, %v2053_v40 }
  0xd6   : > { %3078 = vmatmul.mubr.msk.f32.gmra.mrb[16].mxu1 %vm272_vm2, %v247_v47  ;;  %2917 = vmatmul.mubr.msk.f32.gmra.mrb[2].mxu0 %vm272_vm2, %v3795_v54 }
  0xd7   : > { %858 = vmatprep.mubr.f32.mxu1 %v3380_v0  ;;  %1629 = vmatprep.mubr.f32.mxu0 %v3380_v0 }
  0xda   : > { %2858 = vmatmul.mubr.msk.f32.vlgmr.msra.gmra.mrb[10].mxu1 %vm272_vm2, %v2850_v56  ;;  %2918 = vmatmul.mubr.msk.f32.gmra.mrb[4].mxu0 %vm272_vm2, %v3810_v57 }
  0xdb   : > { %3081 = vmatpush3.msk.msra.mxu1 %vm291_vm0, %v3601_v12  ;;  %3082 = vmatprep.mubr.msk.f32.mxu1 %vm272_vm2, %v3479_v38  ;;  %v3838_v38 = vld [vmem:[%s4074_s0 + $0x110] sm:$0xff] }
  0xdc   : > { %3091 = vmatprep.subr.msk.mxu1 %vm291_vm0, %v3643_v2  ;;  %1635 = vmatprep.mubr.f32.mxu0 %v3380_v0 }
  0xde   : > { %3083 = vmatmul.mubr.msk.f32.vlgmr.msra.gmra.mrb[12].mxu1 %vm272_vm2, %v3495_v43  ;;  %2919 = vmatmul.mubr.msk.f32.gmra.mrb[6].mxu0 %vm272_vm2, %v3822_v58  ;;  %v2044_v43 = vpop.permute.xlu0 %2043 }
  0xdf   : > { %3092 = vmatpush3.msk.msra.mxu1 %vm291_vm0, %v3643_v2  ;;  %3085 = vmatprep.mubr.msk.f32.mxu1 %vm272_vm2, %v3518_v49  ;;  %v3853_v49 = vld [vmem:[%s4074_s0 + $0x118] sm:$0xff] }
  0xe0   : > { %3102 = vmatprep.subr.msk.mxu1 %vm291_vm0, %v3629_v19  ;;  %1641 = vmatprep.mubr.f32.mxu0 %v3380_v0  ;;  %v2974_v2 = vld [vmem:[%s4074_s0 + $0x198] sm:$0xff] }
  0xe2   : > { %3086 = vmatmul.mubr.msk.f32.gmra.mrb[14].mxu1 %vm272_vm2, %v3534_v55  ;;  %2920 = vmatmul.mubr.msk.f32.gmra.mrb[8].mxu0 %vm272_vm2, %v3838_v38  ;;  %v3864_v55 = vld [vmem:[%s4074_s0 + $0x120] sm:$0xff]  ;;  %v1787_v59 = vpop.permute.xlu0 %1786 }
  0xe3   : > { %3088 = vmatprep.mubr.msk.f32.mxu1 %vm272_vm2, %v3553_v60  ;;  %1647 = vmatprep.mubr.f32.mxu0 %v3380_v0  ;;  %v2052_v60 = vsel %vm2051_vm8, %v2044_v43, %v2046_v53  ;;  %v1791_v5 = vsel %vm1788_vm7, %v3613_v15, %v1787_v59  ;;  %v2313_v15 = vpop.permute.xlu1 %2312 }
  0xe6   : > { %3089 = vmatmul.mubr.msk.f32.gmra.mrb[16].mxu1 %vm272_vm2, %v2850_v56  ;;  %2921 = vmatmul.mubr.msk.f32.gmra.mrb[10].mxu0 %vm272_vm2, %v3853_v49  ;;  %v2311_v62 = vpop.permute.xlu0 %2310 }
  0xe7   : > { %3093 = vmatprep.mubr.msk.f32.mxu1 %vm272_vm2, %v3572_v3  ;;  %1880 = vmatprep.mubr.f32.mxu0 %v3380_v0  ;;  %v2316_v1 = vsel %vm2314_vm9, %v2309_v63, %v2311_v62  ;;  %v2931_v3 = vld [vmem:[%s4074_s0 + $0x130] sm:$0xff] }
  0xea   : > { %3094 = vmatmul.mubr.msk.f32.vlgmr.msra.gmra.mrb[12].mxu1 %vm272_vm2, %v3590_v9  ;;  %2937 = vmatmul.mubr.msk.f32.vlgmr.msra.gmra.mrb[0].mxu0 %vm272_vm2, %v3864_v55  ;;  %v2050_v9 = vpop.permute.xlu0 %2049 }
  0xeb   : > { %3103 = vmatpush3.msk.msra.mxu1 %vm291_vm0, %v3629_v19  ;;  %3096 = vmatprep.mubr.msk.f32.mxu1 %vm272_vm2, %v3609_v13  ;;  %v2054_v12 = vsel %vm2051_vm8, %v3652_v24, %v2050_v9  ;;  %v2951_v13 = vld [vmem:[%s4074_s0 + $0x158] sm:$0xff]  ;;  %v2976_v24 = vld [vmem:[%s4074_s0 + $0x1a8] sm:$0xff] }
  0xec   : > { %3113 = vmatprep.subr.msk.mxu1 %vm291_vm0, %v3674_v31  ;;  %1886 = vmatprep.mubr.f32.mxu0 %v3380_v0  ;;  %v2955_v19 = vld [vmem:[%s4074_s0 + $0x178] sm:$0xff] }
  0xed   : > { %2957 = vmatpush1.msk.msra.mxu0 %vm291_vm0, %v2052_v60 }
  0xee   : > { %3097 = vmatmul.mubr.msk.f32.gmra.mrb[14].mxu1 %vm272_vm2, %v3624_v17  ;;  %2938 = vmatmul.mubr.msk.f32.gmra.mrb[2].mxu0 %vm272_vm2, %v2930_v61  ;;  %v2317_v17 = vsel %vm2314_vm9, %v2311_v62, %v2313_v15  ;;  %v2565_v39 = vpop.permute.xlu0 %2564 }
  0xef   : > { %3099 = vmatprep.mubr.msk.f32.mxu1 %vm272_vm2, %v3650_v23  ;;  %1892 = vmatprep.mubr.f32.mxu0 %v3380_v0  ;;  %v2975_v23 = vld [vmem:[%s4074_s0 + $0x1a0] sm:$0xff] }
  0xf0   : > { %2977 = vmatprep.subr.msk.mxu0 %vm291_vm0, %v2316_v1 }
  0xf2   : > { %3100 = vmatmul.mubr.msk.f32.gmra.mrb[16].mxu1 %vm272_vm2, %v3671_v29  ;;  %2939 = vmatmul.mubr.msk.f32.gmra.mrb[4].mxu0 %vm272_vm2, %v2931_v3  ;;  %v2580_v63 = vpop.permute.xlu0 %2579 }
  0xf3   : > { %3104 = vmatprep.mubr.msk.f32.mxu1 %vm272_vm2, %v3693_v35  ;;  %1898 = vmatprep.mubr.f32.mxu0 %v3380_v0 }
  0xf6   : > { %3105 = vmatmul.mubr.msk.f32.vlgmr.msra.gmra.mrb[12].mxu1 %vm272_vm2, %v3715_v41  ;;  %2940 = vmatmul.mubr.msk.f32.gmra.mrb[6].mxu0 %vm272_vm2, %v2932_v4 }
  0xf7   : > { %3114 = vmatpush3.msk.msra.mxu1 %vm291_vm0, %v3674_v31  ;;  %3107 = vmatprep.mubr.msk.f32.mxu1 %vm272_vm2, %v3730_v44  ;;  %v2570_v44 = vpop.permute.xlu1 %2569 }
  0xf8   : > { %3124 = vmatprep.subr.msk.mxu1 %vm291_vm0, %v1791_v5  ;;  %1904 = vmatprep.mubr.f32.mxu0 %v3380_v0 }
  0xfa   : > { %3108 = vmatmul.mubr.msk.f32.gmra.mrb[14].mxu1 %vm272_vm2, %v3743_v46  ;;  %2941 = vmatmul.mubr.msk.f32.gmra.mrb[8].mxu0 %vm272_vm2, %v2933_v6 }
  0xfb   : > { %3110 = vmatprep.mubr.msk.f32.mxu1 %vm272_vm2, %v3756_v48  ;;  %1910 = vmatprep.mubr.f32.mxu0 %v3380_v0 }
  0xfe   : > { %3111 = vmatmul.mubr.msk.f32.gmra.mrb[16].mxu1 %vm272_vm2, %v3766_v50  ;;  %2942 = vmatmul.mubr.msk.f32.gmra.mrb[10].mxu0 %vm272_vm2, %v2934_v7 }
  0xff   : > { %3115 = vmatprep.mubr.msk.f32.mxu1 %vm272_vm2, %v3777_v51  ;;  %2143 = vmatprep.mubr.f32.mxu0 %v3380_v0 }
 0x102   : > { %3116 = vmatmul.mubr.msk.f32.vlgmr.msra.gmra.mrb[12].mxu1 %vm272_vm2, %v3795_v54  ;;  %2958 = vmatmul.mubr.msk.f32.vlgmr.msra.gmra.mrb[0].mxu0 %vm272_vm2, %v2950_v8 }
 0x103   : > { %3125 = vmatpush3.msk.msra.mxu1 %vm291_vm0, %v1791_v5  ;;  %3118 = vmatprep.mubr.msk.f32.mxu1 %vm272_vm2, %v3810_v57 }
 0x104   : > { %3135 = vmatprep.subr.msk.mxu1 %vm291_vm0, %v2054_v12  ;;  %2149 = vmatprep.mubr.f32.mxu0 %v3380_v0 }
 0x105   : > { %2978 = vmatpush1.msk.msra.mxu0 %vm291_vm0, %v2315_v11 }
 0x106   : > { %3119 = vmatmul.mubr.msk.f32.gmra.mrb[14].mxu1 %vm272_vm2, %v3822_v58  ;;  %2959 = vmatmul.mubr.msk.f32.gmra.mrb[2].mxu0 %vm272_vm2, %v2951_v13 }
 0x107   : > { %3121 = vmatprep.mubr.msk.f32.mxu1 %vm272_vm2, %v3838_v38  ;;  %2155 = vmatprep.mubr.f32.mxu0 %v3380_v0  ;;  %v2575_v38 = vpop.permute.xlu1 %2574 }
 0x10a   : > { %3122 = vmatmul.mubr.msk.f32.gmra.mrb[16].mxu1 %vm272_vm2, %v3853_v49  ;;  %2960 = vmatmul.mubr.msk.f32.gmra.mrb[4].mxu0 %vm272_vm2, %v2952_v14 }
 0x10b   : > { %3126 = vmatprep.mubr.msk.f32.mxu1 %vm272_vm2, %v3864_v55  ;;  %2161 = vmatprep.mubr.f32.mxu0 %v3380_v0 }
 0x10e   : > { %3127 = vmatmul.mubr.msk.f32.vlgmr.msra.gmra.mrb[12].mxu1 %vm272_vm2, %v2930_v61  ;;  %2961 = vmatmul.mubr.msk.f32.gmra.mrb[6].mxu0 %vm272_vm2, %v2953_v16 }
 0x10f   : > { %3136 = vmatpush3.msk.msra.mxu1 %vm291_vm0, %v2054_v12  ;;  %3129 = vmatprep.mubr.msk.f32.mxu1 %vm272_vm2, %v2931_v3 }
 0x110   : > { %3146 = vmatprep.subr.msk.mxu1 %vm291_vm0, %v2317_v17  ;;  %2167 = vmatprep.mubr.f32.mxu0 %v3380_v0 }
 0x112   : > { %3130 = vmatmul.mubr.msk.f32.gmra.mrb[14].mxu1 %vm272_vm2, %v2932_v4  ;;  %2962 = vmatmul.mubr.msk.f32.gmra.mrb[8].mxu0 %vm272_vm2, %v2954_v18 }
 0x113   : > { %3132 = vmatprep.mubr.msk.f32.mxu1 %vm272_vm2, %v2933_v6  ;;  %2173 = vmatprep.mubr.f32.mxu0 %v3380_v0 }
 0x116   : > { %3133 = vmatmul.mubr.msk.f32.gmra.mrb[16].mxu1 %vm272_vm2, %v2934_v7  ;;  %2963 = vmatmul.mubr.msk.f32.gmra.mrb[10].mxu0 %vm272_vm2, %v2955_v19 }
 0x117   : > { %3137 = vmatprep.mubr.msk.f32.mxu1 %vm272_vm2, %v2950_v8  ;;  %2406 = vmatprep.mubr.f32.mxu0 %v3380_v0 }
 0x11a   : > { %3138 = vmatmul.mubr.msk.f32.vlgmr.msra.gmra.mrb[12].mxu1 %vm272_vm2, %v2951_v13  ;;  %2979 = vmatmul.mubr.msk.f32.vlgmr.msra.gmra.mrb[0].mxu0 %vm272_vm2, %v2971_v20 }
 0x11b   : > { %3147 = vmatpush3.msk.msra.mxu1 %vm291_vm0, %v2317_v17  ;;  %3140 = vmatprep.mubr.msk.f32.mxu1 %vm272_vm2, %v2952_v14 }
 0x11c   : > { %2412 = vmatprep.mubr.f32.mxu0 %v3380_v0 }
 0x11e   : > { %3141 = vmatmul.mubr.msk.f32.gmra.mrb[14].mxu1 %vm272_vm2, %v2953_v16  ;;  %2980 = vmatmul.mubr.msk.f32.gmra.mrb[2].mxu0 %vm272_vm2, %v2972_v21 }
 0x11f   : > { %3143 = vmatprep.mubr.msk.f32.mxu1 %vm272_vm2, %v2954_v18  ;;  %2418 = vmatprep.mubr.f32.mxu0 %v3380_v0 }
 0x122   : > { %3144 = vmatmul.mubr.msk.f32.gmra.mrb[16].mxu1 %vm272_vm2, %v2955_v19  ;;  %2981 = vmatmul.mubr.msk.f32.gmra.mrb[4].mxu0 %vm272_vm2, %v2973_v22 }
 0x123   : > { %2424 = vmatprep.mubr.f32.mxu0 %v3380_v0  ;;  %3148 = vmatprep.mubr.msk.f32.mxu1 %vm272_vm2, %v2971_v20 }
 0x126   : > { %2982 = vmatmul.mubr.msk.f32.gmra.mrb[6].mxu0 %vm272_vm2, %v2974_v2  ;;  %3149 = vmatmul.mubr.msk.f32.vlgmr.msra.gmra.mrb[12].mxu1 %vm272_vm2, %v2972_v21 }
 0x127   : > { %2430 = vmatprep.mubr.f32.mxu0 %v3380_v0  ;;  %3151 = vmatprep.mubr.msk.f32.mxu1 %vm272_vm2, %v2973_v22 }
 0x12a   : > { %2983 = vmatmul.mubr.msk.f32.gmra.mrb[8].mxu0 %vm272_vm2, %v2975_v23  ;;  %3152 = vmatmul.mubr.msk.f32.gmra.mrb[14].mxu1 %vm272_vm2, %v2974_v2 }
 0x12b   : > { %2436 = vmatprep.mubr.f32.mxu0 %v3380_v0  ;;  %3154 = vmatprep.mubr.msk.f32.mxu1 %vm272_vm2, %v2975_v23 }
 0x12e   : > { %2984 = vmatmul.mubr.msk.f32.gmra.mrb[10].mxu0 %vm272_vm2, %v2976_v24  ;;  %3155 = vmatmul.mubr.msk.f32.gmra.mrb[16].mxu1 %vm272_vm2, %v2976_v24 }
 0x189   : > { %v585_v25 = vpop.f32.mrb[0].mxu1 }
 0x18a   : > { %v587_v26 = vpop.f32.mrb[1].mxu1 }
 0x18d   : > { %v591_v27 = vpop.f32.mrb[2].mxu1 }
 0x18e   : > { %v593_v28 = vpop.f32.mrb[3].mxu1 }
 0x191   : > { %v597_v29 = vpop.f32.mrb[4].mxu1 }
 0x192   : > { %v599_v30 = vpop.f32.mrb[5].mxu1 }
 0x195   : > { %v603_v31 = vpop.f32.mrb[6].mxu1 }
 0x196   : > { %v605_v32 = vpop.f32.mrb[7].mxu1 }
 0x199   : > { %v4029_v0 = vpop.f32.mrb[8].mxu1 }
 0x19a   : > { %v4031_v33 = vpop.f32.mrb[9].mxu1 }
 0x1ad   : > { %v4033_v34 = vpop.f32.mrb[10].mxu1 }
 0x1ae   : > { %v4035_v35 = vpop.f32.mrb[11].mxu1 }
 0x1ed   : > { %v2408_v36 = vpop.f32.mrb[0].mxu0 }
 0x1ee   : > { %v3159_v37 = vadd.f32 %v2408_v36, %v585_v25  ;;  %v2410_v41 = vpop.f32.mrb[1].mxu0 }
 0x1ef   : > { %v3160_v42 = vadd.f32 %v2410_v41, %v587_v26 }
 0x1f0   : > { %v2592_v45 = vadd.f32 %v3159_v37, %v2565_v39 }
 0x1f1   : > { %v2593_v46 = vadd.f32 %v3160_v42, %v2565_v39  ;;  %v2414_v47 = vpop.f32.mrb[2].mxu0 }
 0x1f2   : > { %vm2610_vm10 = vcmp.ge.f32.partialorder %v2592_v45, 0.0  ;;  %v2628_v48 = vmul.f32 0.2, %v2592_v45  ;;  %v3161_v50 = vadd.f32 %v2414_v47, %v591_v27  ;;  %v2416_v51 = vpop.f32.mrb[3].mxu0 }
 0x1f3   : > { %vm2611_vm11 = vcmp.ge.f32.partialorder %v2593_v46, 0.0  ;;  %v2629_v52 = vmul.f32 0.2, %v2593_v46  ;;  %v3162_v53 = vadd.f32 %v2416_v51, %v593_v28 }
 0x1f4   : > { %v2646_v40 = vsel %vm2610_vm10, %v2592_v45, %v2628_v48  ;;  %v2595_v54 = vadd.f32 %v3161_v50, %v2570_v44 }
 0x1f5   : > { %v2647_v56 = vsel %vm2611_vm11, %v2593_v46, %v2629_v52  ;;  %2664 = vst [vmem:[%s4041_s9] sm:$0xff] %v2646_v40  ;;  %v2596_v57 = vadd.f32 %v3162_v53, %v2570_v44  ;;  %v2420_v58 = vpop.f32.mrb[4].mxu0 }
 0x1f6   : > { %2665 = vst [vmem:[%s4041_s9 + $0x8] sm:$0xff] %v2647_v56  ;;  %vm2613_vm12 = vcmp.ge.f32.partialorder %v2595_v54, 0.0  ;;  %v2631_v43 = vmul.f32 0.2, %v2595_v54  ;;  %v3163_v49 = vadd.f32 %v2420_v58, %v597_v29  ;;  %v2422_v55 = vpop.f32.mrb[5].mxu0  ;;  %v2585_v29 = vpop.permute.xlu1 %2584 }
 0x1f7   : > { %vm2614_vm13 = vcmp.ge.f32.partialorder %v2596_v57, 0.0  ;;  %v2632_v59 = vmul.f32 0.2, %v2596_v57  ;;  %v3164_v60 = vadd.f32 %v2422_v55, %v599_v30 }
 0x1f8   : > { %v2649_v61 = vsel %vm2613_vm12, %v2595_v54, %v2631_v43  ;;  %v2598_v62 = vadd.f32 %v3163_v49, %v2575_v38 }
 0x1f9   : > { %v2650_v1 = vsel %vm2614_vm13, %v2596_v57, %v2632_v59  ;;  %2667 = vst [vmem:[%s4041_s9 + $0x18] sm:$0xff] %v2649_v61  ;;  %v2599_v3 = vadd.f32 %v3164_v60, %v2575_v38  ;;  %v2426_v4 = vpop.f32.mrb[6].mxu0  ;;  %v3150_v5 = vpop.f32.mrb[12].mxu1 }
 0x1fa   : > { %2668 = vst [vmem:[%s4041_s9 + $0x20] sm:$0xff] %v2650_v1  ;;  %vm2616_vm14 = vcmp.ge.f32.partialorder %v2598_v62, 0.0  ;;  %v2634_v6 = vmul.f32 0.2, %v2598_v62  ;;  %v3165_v7 = vadd.f32 %v2426_v4, %v603_v31  ;;  %v2597_v8 = vadd.f32 %v3150_v5, %v2570_v44  ;;  %v2428_v9 = vpop.f32.mrb[7].mxu0  ;;  %v2509_v10 = vpop.f32.mrb[13].mxu1 }
 0x1fb   : > { %vm2617_vm15 = vcmp.ge.f32.partialorder %v2599_v3, 0.0  ;;  %v2635_v11 = vmul.f32 0.2, %v2599_v3  ;;  %v3166_v12 = vadd.f32 %v2428_v9, %v605_v32  ;;  %v2594_v13 = vadd.f32 %v2565_v39, %v2509_v10  ;;  %v2590_v39 = vpop.permute.xlu0 %2589 }
 0x1fc   : > { %v2652_v14 = vsel %vm2616_vm14, %v2598_v62, %v2634_v6  ;;  %vm2615_vm0 = vcmp.ge.f32.partialorder %v2597_v8, 0.0  ;;  %v2633_v15 = vmul.f32 0.2, %v2597_v8  ;;  %v2601_v16 = vadd.f32 %v3165_v7, %v2580_v63 }
 0x1fd   : > { %v2653_v17 = vsel %vm2617_vm15, %v2599_v3, %v2635_v11  ;;  %2670 = vst [vmem:[%s4041_s9 + $0x30] sm:$0xff] %v2652_v14  ;;  %vm2612_vm1 = vcmp.ge.f32.partialorder %v2594_v13, 0.0  ;;  %v2630_v18 = vmul.f32 0.2, %v2594_v13  ;;  %v2602_v19 = vadd.f32 %v3166_v12, %v2580_v63  ;;  %v2432_v20 = vpop.f32.mrb[8].mxu0  ;;  %v3153_v21 = vpop.f32.mrb[14].mxu1 }
 0x1fe   : > { %2671 = vst [vmem:[%s4041_s9 + $0x38] sm:$0xff] %v2653_v17  ;;  %v2651_v22 = vsel %vm2615_vm0, %v2597_v8, %v2633_v15  ;;  %vm2619_vm2 = vcmp.ge.f32.partialorder %v2601_v16, 0.0  ;;  %v2637_v2 = vmul.f32 0.2, %v2601_v16  ;;  %v3167_v23 = vadd.f32 %v2432_v20, %v4029_v0  ;;  %v2434_v24 = vpop.f32.mrb[9].mxu0  ;;  %v2519_v25 = vpop.f32.mrb[15].mxu1 }
 0x1ff   : > { %2669 = vst [vmem:[%s4041_s9 + $0x28] sm:$0xff] %v2651_v22  ;;  %v2648_v26 = vsel %vm2612_vm1, %v2594_v13, %v2630_v18  ;;  %vm2620_vm3 = vcmp.ge.f32.partialorder %v2602_v19, 0.0  ;;  %v2638_v27 = vmul.f32 0.2, %v2602_v19  ;;  %v2603_v28 = vadd.f32 %v3153_v21, %v2580_v63 }
 0x200   : > { %2666 = vst [vmem:[%s4041_s9 + $0x10] sm:$0xff] %v2648_v26  ;;  %v2655_v30 = vsel %vm2619_vm2, %v2601_v16, %v2637_v2  ;;  %v3168_v31 = vadd.f32 %v2434_v24, %v4031_v33  ;;  %v2600_v32 = vadd.f32 %v2575_v38, %v2519_v25  ;;  %v2604_v36 = vadd.f32 %v3167_v23, %v2585_v29 }
 0x201   : > { %v2656_v37 = vsel %vm2620_vm3, %v2602_v19, %v2638_v27  ;;  %2673 = vst [vmem:[%s4041_s9 + $0x48] sm:$0xff] %v2655_v30  ;;  %vm2621_vm4 = vcmp.ge.f32.partialorder %v2603_v28, 0.0  ;;  %v2639_v0 = vmul.f32 0.2, %v2603_v28  ;;  %v2438_v41 = vpop.f32.mrb[10].mxu0  ;;  %v3156_v42 = vpop.f32.mrb[16].mxu1 }
 0x202   : > { %2674 = vst [vmem:[%s4041_s9 + $0x50] sm:$0xff] %v2656_v37  ;;  %vm2618_vm5 = vcmp.ge.f32.partialorder %v2600_v32, 0.0  ;;  %v2636_v44 = vmul.f32 0.2, %v2600_v32  ;;  %v2605_v45 = vadd.f32 %v3168_v31, %v2585_v29  ;;  %vm2622_vm6 = vcmp.ge.f32.partialorder %v2604_v36, 0.0  ;;  %v2440_v46 = vpop.f32.mrb[11].mxu0 }
 0x203   : > { %v2529_v47 = vpop.f32.mrb[17].mxu1  ;;  %v2657_v33 = vsel %vm2621_vm4, %v2603_v28, %v2639_v0  ;;  %v2640_v48 = vmul.f32 0.2, %v2604_v36  ;;  %v3169_v50 = vadd.f32 %v2438_v41, %v4033_v34  ;;  %v2609_v51 = vadd.f32 %v3156_v42, %v2590_v39 }
 0x204   : > { %2675 = vst [vmem:[%s4041_s9 + $0x58] sm:$0xff] %v2657_v33  ;;  %v2654_v52 = vsel %vm2618_vm5, %v2600_v32, %v2636_v44  ;;  %vm2623_vm7 = vcmp.ge.f32.partialorder %v2605_v45, 0.0  ;;  %v2641_v53 = vmul.f32 0.2, %v2605_v45  ;;  %v3170_v40 = vadd.f32 %v2440_v46, %v4035_v35 }
 0x205   : > { %2672 = vst [vmem:[%s4041_s9 + $0x40] sm:$0xff] %v2654_v52  ;;  %v2658_v54 = vsel %vm2622_vm6, %v2604_v36, %v2640_v48  ;;  %v2607_v56 = vadd.f32 %v3169_v50, %v2590_v39  ;;  %vm2627_vm8 = vcmp.ge.f32.partialorder %v2609_v51, 0.0  ;;  %v2645_v57 = vmul.f32 0.2, %v2609_v51 }
 0x206   : > { %v2659_v58 = vsel %vm2623_vm7, %v2605_v45, %v2641_v53  ;;  %2676 = vst [vmem:[%s4041_s9 + $0x60] sm:$0xff] %v2658_v54  ;;  %v2608_v38 = vadd.f32 %v3170_v40, %v2590_v39  ;;  %v2606_v34 = vadd.f32 %v2585_v29, %v2529_v47 }
 0x207   : > { %2677 = vst [vmem:[%s4041_s9 + $0x68] sm:$0xff] %v2659_v58  ;;  %vm2625_vm9 = vcmp.ge.f32.partialorder %v2607_v56, 0.0  ;;  %v2643_v43 = vmul.f32 0.2, %v2607_v56  ;;  %v2663_v49 = vsel %vm2627_vm8, %v2609_v51, %v2645_v57 }
 0x208   : > { %2681 = vst [vmem:[%s4041_s9 + $0x88] sm:$0xff] %v2663_v49  ;;  %vm2626_vm10 = vcmp.ge.f32.partialorder %v2608_v38, 0.0  ;;  %v2644_v55 = vmul.f32 0.2, %v2608_v38  ;;  %vm2624_vm11 = vcmp.ge.f32.partialorder %v2606_v34, 0.0 }
 0x209   : > { %v2642_v35 = vmul.f32 0.2, %v2606_v34  ;;  %v2661_v59 = vsel %vm2625_vm9, %v2607_v56, %v2643_v43 }
 0x20a   : > { %2679 = vst [vmem:[%s4041_s9 + $0x78] sm:$0xff] %v2661_v59  ;;  %v2662_v60 = vsel %vm2626_vm10, %v2608_v38, %v2644_v55 }
 0x20b   : > { %v2660_v61 = vsel %vm2624_vm11, %v2606_v34, %v2642_v35  ;;  %2680 = vst [vmem:[%s4041_s9 + $0x80] sm:$0xff] %v2662_v60 }
 0x20c   : > { %2678 = vst [vmem:[%s4041_s9 + $0x70] sm:$0xff] %v2660_v61 }
 0x20d PF: > { %s13_s14 = sadd.s32 1, %s3378_s14   ;;  %s4078_s12 = smov %s3374_s13 }
 0x20e   : > { %p10_p5 = scmp.ge.s32.totalorder %s13_s14, 4   ;;  %s4079_s13 = smov %s4081_s15 }
 0x210   :  { %12 = sbr.rel (!%p10_p5) target bundleno = 2 (0x2), region = 76 }

// kernel: _lambda_.10
= control target key start
LH: loop header
LB: loop body
LE: loop exit
PB: predicated region body
PF: predicated region fallthrough
CT: control target
= control target key end

     0   :  { %s2706_s12 = smov 0   ;;  %s2708_s13 = smov 0   ;;  %s2951_s0 = inlined_call_operand.vmem [shape: f32[3,9,16,16], index: 0, kind: input, shape index: {}]   ;;  %s2952_s1 = inlined_call_operand.vmem [shape: f32[3,16,1], index: 1, kind: input, shape index: {}]   ;;  %s2953_s2 = inlined_call_operand.vmem [shape: f32[2,3,16,512], index: 2, kind: input, shape index: {}]   ;;  %s2954_s3 = inlined_call_operand.vmem [shape: f32[2,3,16,384], index: 3, kind: output, shape index: {}]  }
   0x1   :  { %s2710_s14 = smov 0   ;;  %s2712_s15 = smov 0  }
   0x2   :  { %s2714_s16 = smov 0  }
   0x3 LB: > { %s22_s17 = sadd.s32 1, %s2666_s14  ;;  %s25_s18 = sadd.s32 1, %s2670_s15  ;;  %s2674_s16 = sphi %s2714_s16, %s13_s16   ;;  %s2670_s15 = sphi %s2712_s15, %s2958_s15   ;;  %s2666_s14 = sphi %s2710_s14, %s2957_s14   ;;  %s2662_s13 = sphi %s2708_s13, %s2956_s13   ;;  %s2658_s12 = sphi %s2706_s12, %s2955_s12  }
   0x4   : > { %p23_p0 = scmp.ge.s32.totalorder %s22_s17, 3  ;;  %p2139_p1 = scmp.ge.s32.totalorder %s2674_s16, 1 }
   0x5   : > { %p177_p2 = scmp.lt.s32.totalorder %s2674_s16, 7 }
   0x6   : > { %s2960_s17 = smov (%p23_p0, %s22_s17), 0  ;;  %s2962_s18 = smov (!%p23_p0, %s25_s18), %s2670_s15 }
   0x7   : > { %p178_p3 = pnand %p2139_p1, %p177_p2  ;;  %p27_p4 = scmp.ge.s32.totalorder %s2962_s18, 2 }
   0x8   : > { %p219_p5 = scmp.lt.s32.totalorder (!%p178_p3), %s2658_s12, 2  ;;  %p229_p6 = scmp.lt.s32.totalorder (!%p178_p3), %s2662_s13, 1  ;;  %v2677_v12 = vmov (!%p178_p3), 0.0   ;;  %v2685_v16 = vmov (!%p178_p3), 0   ;;  %vm290_vm0 = vcmask (!%p178_p3), 1039360   ;;  %vm639_vm1 = vcmask (!%p178_p3), 1031168  }
   0x9   : > { %s2964_s18 = smov (%p27_p4, %s2962_s18), 0  ;;  %181 = sbr.rel (%p178_p3) target bundleno = 445 (0x1bd), region = 32 }
   0xa   : > { %s2676_s26 = smov (!%p178_p3), 127   ;;  %374 = vmatprep.mubr.f32.mxu1 (!%p178_p3), %v2677_v12  ;;  %722 = vmatprep.mubr.f32.mxu0 (!%p178_p3), %v2677_v12  ;;  %s2678_s27 = smov (!%p178_p3), 126   ;;  %vm303_vm2 = vcmask (!%p178_p3), 130048   ;;  %vm835_vm3 = vcmask (!%p178_p3), 900096   ;;  %vm1031_vm4 = vcmask (!%p178_p3), 891904   ;;  %vm1227_vm5 = vcmask (!%p178_p3), 883712  }
   0xb   : > { %s2679_s28 = smov (!%p178_p3), 110   ;;  %s2680_s29 = smov (!%p178_p3), 109   ;;  %2634 = vset.pattern.permute.xlu0 (!%p178_p3), %v2685_v16  ;;  %2635 = vset.pattern.permute.xlu1 (!%p178_p3), %v2685_v16  ;;  %vm1423_vm6 = vcmask (!%p178_p3), 752640   ;;  %vm1619_vm7 = vcmask (!%p178_p3), 744448   ;;  %vm1815_vm8 = vcmask (!%p178_p3), 736256  }
   0xc   : > { %s2681_s30 = smov (!%p178_p3), 108   ;;  %s2682_s4 = smov (!%p178_p3), 92  }
   0xd   : > { %s2683_s5 = smov (!%p178_p3), 91   ;;  %s2684_s6 = smov (!%p178_p3), 90  }
  0x10   : > { %s2966_s12 = smov (!%p219_p5, %s2658_s12), 2  ;;  %s2968_s13 = smov (!%p229_p6, %s2662_s13), 1 }
  0x11   : > { %s2143_s19 = sshll.u32 %s2966_s12, 3  ;;  %s2421_s20 = smul.u32 24, %s2968_s13 }
  0x12   : > { %s2200_s7 = sshll.u32 %s2966_s12, 4  ;;  %s2420_s11 = smul.u32 144, %s2966_s12 }
  0x13   : > { %s235_s21 = sadd.s32 %s2421_s20, %s2143_s19  ;;  %s228_s10 = scalar_lea.vmem %s2952_s1, %s2200_s7 }
  0x14   : > { %s2144_s22 = sshll.u32 %s235_s21, 3  ;;  %v1992_v17 = vld [vmem:[%s228_s10] sm:$0xff]  ;;  %v1993_v18 = vld [vmem:[%s228_s10 + $0x8] sm:$0xff]  ;;  %s2773_s21 = scalar_lea.vmem %s2951_s0, %s2420_s11 }
  0x15   : > { %s237_s25 = scalar_lea.vmem %s2953_s2, %s2144_s22  ;;  %v2146_v46 = vld [vmem:[%s2773_s21 + $0x10] sm:$0xff]  ;;  %v2147_v54 = vld [vmem:[%s2773_s21 + $0x18] sm:$0xff]  ;;  %s2422_s22 = smul.u32 6, %s2966_s12 }
  0x16   : > { %v2745_v0 = vld [vmem:[%s237_s25 + $0x8] sm:$0xff]  ;;  %v257_v1 = vld [vmem:[%s237_s25 + $0x10] sm:$0xff]  ;;  %v2747_v2 = vld [vmem:[%s237_s25] sm:$0xff]  ;;  %s2423_s23 = smul.u32 18, %s2968_s13 }
  0x17   : > { %v2474_v3 = vpack.i.bf16 %v257_v1, %v2745_v0  ;;  %v2750_v4 = vld [vmem:[%s237_s25 + $0x20] sm:$0xff]  ;;  %v2752_v5 = vld [vmem:[%s237_s25 + $0x28] sm:$0xff]  ;;  %v261_v6 = vld [vmem:[%s237_s25 + $0x30] sm:$0xff] }
  0x18   : > { %v2484_v7 = vpack.i.bf16 %v2750_v4, %v2747_v2  ;;  %v258_v8 = vld [vmem:[%s237_s25 + $0x18] sm:$0xff]  ;;  %v2479_v10 = vpack.i.bf16 %v261_v6, %v2752_v5  ;;  %v2308_v13 = vpack.c.bf16 %v2752_v5, %v2745_v0  ;;  %v2310_v14 = vpack.c.bf16 %v2750_v4, %v2747_v2  ;;  %s244_s24 = sadd.s32 %s2423_s23, %s2422_s22 }
  0x19   : > { %v262_v9 = vld [vmem:[%s237_s25 + $0x38] sm:$0xff]  ;;  %2475 = vrot.lane.b32.xlu0 %v2474_v3, %s2676_s26  ;;  %v2763_v15 = vpack.c.bf16 %v261_v6, %v257_v1  ;;  %v2788_v6 = vld [vmem:[%s2773_s21 + $0x20] sm:$0xff]  ;;  %s2145_s25 = sshll.u32 %s244_s24, 3 }
  0x1a   : > { %2485 = vrot.lane.b32.xlu1 %v2484_v7, %s2676_s26  ;;  %v2489_v11 = vpack.i.bf16 %v262_v9, %v258_v8 }
  0x1d   : > { %2480 = vrot.lane.b32.xlu0 %v2479_v10, %s2676_s26 }
  0x1e   : > { %2490 = vrot.lane.b32.xlu1 %v2489_v11, %s2676_s26 }
  0x21   : > { %2495 = vrot.lane.b32.xlu0 %v2474_v3, %s2678_s27 }
  0x22   : > { %2500 = vrot.lane.b32.xlu1 %v2479_v10, %s2678_s27 }
  0x25   : > { %2505 = vrot.lane.b32.xlu0 %v2484_v7, %s2678_s27 }
  0x26   : > { %2510 = vrot.lane.b32.xlu1 %v2489_v11, %s2678_s27 }
  0x29   : > { %2515 = vrot.lane.b32.xlu0 %v2474_v3, %s2679_s28 }
  0x2a   : > { %2520 = vrot.lane.b32.xlu1 %v2479_v10, %s2679_s28 }
  0x2d   : > { %2525 = vrot.lane.b32.xlu0 %v2484_v7, %s2679_s28 }
  0x2e   : > { %2530 = vrot.lane.b32.xlu1 %v2489_v11, %s2679_s28  ;;  %s246_s28 = scalar_lea.vmem %s2954_s3, %s2145_s25 }
  0x31   : > { %2535 = vrot.lane.b32.xlu0 %v2474_v3, %s2680_s29 }
  0x32   : > { %2540 = vrot.lane.b32.xlu1 %v2479_v10, %s2680_s29 }
  0x35   : > { %2545 = vrot.lane.b32.xlu0 %v2484_v7, %s2680_s29 }
  0x36   : > { %2550 = vrot.lane.b32.xlu1 %v2489_v11, %s2680_s29 }
  0x39   : > { %2555 = vrot.lane.b32.xlu0 %v2474_v3, %s2681_s30 }
  0x3a   : > { %2560 = vrot.lane.b32.xlu1 %v2479_v10, %s2681_s30 }
  0x3d   : > { %2565 = vrot.lane.b32.xlu0 %v2484_v7, %s2681_s30 }
  0x3e   : > { %2570 = vrot.lane.b32.xlu1 %v2489_v11, %s2681_s30 }
  0x41   : > { %2575 = vrot.lane.b32.xlu0 %v2474_v3, %s2682_s4 }
  0x42   : > { %2580 = vrot.lane.b32.xlu1 %v2479_v10, %s2682_s4 }
  0x45   : > { %2585 = vrot.lane.b32.xlu0 %v2484_v7, %s2682_s4 }
  0x46   : > { %2590 = vrot.lane.b32.xlu1 %v2489_v11, %s2682_s4 }
  0x49   : > { %2595 = vrot.lane.b32.xlu0 %v2474_v3, %s2683_s5 }
  0x4a   : > { %2600 = vrot.lane.b32.xlu1 %v2479_v10, %s2683_s5 }
  0x4d   : > { %2605 = vrot.lane.b32.xlu0 %v2484_v7, %s2683_s5 }
  0x4e   : > { %2610 = vrot.lane.b32.xlu1 %v2489_v11, %s2683_s5 }
  0x51   : > { %2615 = vrot.lane.b32.xlu0 %v2474_v3, %s2684_s6 }
  0x52   : > { %2620 = vrot.lane.b32.xlu1 %v2479_v10, %s2684_s6 }
  0x55   : > { %2625 = vrot.lane.b32.xlu0 %v2484_v7, %s2684_s6 }
  0x56   : > { %2630 = vrot.lane.b32.xlu1 %v2489_v11, %s2684_s6 }
  0x59   : > { %1996 = vperm.xlu0 %2634, %v1992_v17   ;;  %v2800_v17 = vld [vmem:[%s2773_s21 + $0x28] sm:$0xff] }
  0x5a   : > { %2001 = vperm.xlu1 %2635, %v1993_v18  }
  0x8b   : > { %v2476_v19 = vpop.permute.xlu0 %2475 }
  0x8c   : > { %v2486_v20 = vpop.permute.xlu1 %2485  ;;  %v2478_v21 = vunpack.i.h.bf16 %v2476_v19  ;;  %v2477_v22 = vunpack.i.l.bf16 %v2476_v19 }
  0x8d   : > { %v2488_v23 = vunpack.i.h.bf16 %v2486_v20  ;;  %v2487_v24 = vunpack.i.l.bf16 %v2486_v20  ;;  %v253_v20 = vld [vmem:[%s2773_s21] sm:$0xff] }
  0x8e   : > { %v292_v31 = vsel %vm290_vm0, %v2477_v22, %v2478_v21 }
  0x8f   : > { %v2481_v25 = vpop.permute.xlu0 %2480  ;;  %v291_v33 = vsel %vm290_vm0, %v2487_v24, %v2477_v22 }
  0x90   : > { %v2483_v26 = vunpack.i.h.bf16 %v2481_v25  ;;  %v2482_v27 = vunpack.i.l.bf16 %v2481_v25  ;;  %v2491_v28 = vpop.permute.xlu1 %2490 }
  0x91   : > { %v2493_v29 = vunpack.i.h.bf16 %v2491_v28  ;;  %v2492_v30 = vunpack.i.l.bf16 %v2491_v28  ;;  %v2814_v28 = vld [vmem:[%s2773_s21 + $0x30] sm:$0xff] }
  0x92   : > { %v295_v32 = vsel %vm290_vm0, %v2482_v27, %v2483_v26  ;;  %v294_v34 = vsel %vm290_vm0, %v2488_v23, %v2482_v27 }
  0x93   : > { %v2496_v35 = vpop.permute.xlu0 %2495  ;;  %v2300_v36 = vpack.c.bf16 %v295_v32, %v292_v31  ;;  %v2302_v37 = vpack.c.bf16 %v294_v34, %v291_v33  ;;  %v293_v38 = vsel %vm290_vm0, %v2478_v21, %v2492_v30  ;;  %v296_v39 = vsel %vm290_vm0, %v2483_v26, %v2493_v29  ;;  %v254_v29 = vld [vmem:[%s2773_s21 + $0x8] sm:$0xff] }
  0x94   : > { %v2498_v40 = vunpack.i.h.bf16 %v2496_v35  ;;  %v2497_v41 = vunpack.i.l.bf16 %v2496_v35  ;;  %v2501_v42 = vpop.permute.xlu1 %2500  ;;  %v2304_v45 = vpack.c.bf16 %v296_v39, %v293_v38  ;;  %v2829_v38 = vld [vmem:[%s2773_s21 + $0x38] sm:$0xff] }
  0x95   : > { %2301 = vmatprep.subr.bf16.mxu1 %v2300_v36  ;;  %v2503_v43 = vunpack.i.h.bf16 %v2501_v42  ;;  %v2502_v44 = vunpack.i.l.bf16 %v2501_v42 }
  0x96   : > { %2303 = vmatpush1.bf16.msra.mxu1 %v2302_v37  ;;  %v641_v47 = vsel %vm639_vm1, %v2497_v41, %v2498_v40 }
  0x97   : > { %v2506_v48 = vpop.permute.xlu0 %2505  ;;  %2305 = vmatprep.subr.bf16.mxu1 %v2304_v45  ;;  %v644_v49 = vsel %vm639_vm1, %v2502_v44, %v2503_v43 }
  0x98   : > { %v2508_v50 = vunpack.i.h.bf16 %v2506_v48  ;;  %v2507_v51 = vunpack.i.l.bf16 %v2506_v48  ;;  %v2511_v52 = vpop.permute.xlu1 %2510  ;;  %v2316_v53 = vpack.c.bf16 %v644_v49, %v641_v47 }
  0x99   : > { %2148 = vmatmul.mubr.msk.f32.vlgmr.msra.gmra.mrb[0].mxu1 %vm303_vm2, %v2146_v46  ;;  %v2512_v57 = vunpack.i.l.bf16 %v2511_v52  ;;  %v2513_v60 = vunpack.i.h.bf16 %v2511_v52 }
  0x9a   : > { %2307 = vmatpush3.bf16.msra.mxu1 %v2304_v45  ;;  %380 = vmatprep.mubr.f32.mxu1 %v2677_v12  ;;  %v640_v55 = vsel %vm639_vm1, %v2507_v51, %v2497_v41  ;;  %v643_v56 = vsel %vm639_vm1, %v2508_v50, %v2502_v44  ;;  %v2838_v51 = vld [vmem:[%s2773_s21 + $0x40] sm:$0xff] }
  0x9b   : > { %v2516_v58 = vpop.permute.xlu0 %2515  ;;  %2317 = vmatprep.subr.bf16.mxu0 %v2316_v53  ;;  %v2318_v59 = vpack.c.bf16 %v643_v56, %v640_v55  ;;  %2309 = vmatprep.subr.bf16.mxu1 %v2308_v13  ;;  %v642_v5 = vsel %vm639_vm1, %v2498_v40, %v2512_v57  ;;  %v645_v16 = vsel %vm639_vm1, %v2503_v43, %v2513_v60 }
  0x9c   : > { %v2518_v61 = vunpack.i.h.bf16 %v2516_v58  ;;  %v2517_v62 = vunpack.i.l.bf16 %v2516_v58  ;;  %v2521_v63 = vpop.permute.xlu1 %2520  ;;  %v2320_v24 = vpack.c.bf16 %v645_v16, %v642_v5 }
  0x9d   : > { %2149 = vmatmul.mubr.msk.f32.gmra.mrb[2].mxu1 %vm303_vm2, %v2147_v54  ;;  %2319 = vmatpush1.bf16.msra.mxu0 %v2318_v59  ;;  %v2523_v1 = vunpack.i.h.bf16 %v2521_v63  ;;  %v2522_v3 = vunpack.i.l.bf16 %v2521_v63 }
  0x9e   : > { %2241 = vmatprep.mubr.msk.f32.mxu1 %vm303_vm2, %v2146_v46  ;;  %v837_v7 = vsel %vm835_vm3, %v2517_v62, %v2518_v61 }
  0x9f   : > { %v2526_v8 = vpop.permute.xlu0 %2525  ;;  %v840_v0 = vsel %vm835_vm3, %v2522_v3, %v2523_v1 }
  0xa0   : > { %v2528_v9 = vunpack.i.h.bf16 %v2526_v8  ;;  %v2527_v10 = vunpack.i.l.bf16 %v2526_v8  ;;  %2158 = vmatmul.mubr.msk.f32.vlgmr.msra.gmra.mrb[0].mxu0 %vm303_vm2, %v2788_v6  ;;  %v2531_v11 = vpop.permute.xlu1 %2530  ;;  %v2324_v13 = vpack.c.bf16 %v840_v0, %v837_v7 }
  0xa1   : > { %2242 = vmatmul.mubr.msk.f32.vlgmr.msra.gmra.mrb[4].mxu1 %vm303_vm2, %v2147_v54  ;;  %728 = vmatprep.mubr.f32.mxu0 %v2677_v12  ;;  %v2532_v22 = vunpack.i.l.bf16 %v2531_v11  ;;  %v2533_v25 = vunpack.i.h.bf16 %v2531_v11 }
  0xa2   : > { %v836_v18 = vsel %vm835_vm3, %v2527_v10, %v2517_v62  ;;  %v839_v19 = vsel %vm835_vm3, %v2528_v9, %v2522_v3  ;;  %2311 = vmatpush1.bf16.msra.mxu1 %v2310_v14  ;;  %532 = vmatprep.mubr.f32.mxu1 %v2677_v12 }
  0xa3   : > { %v2326_v21 = vpack.c.bf16 %v839_v19, %v836_v18  ;;  %v2536_v23 = vpop.permute.xlu0 %2535  ;;  %2313 = vmatprep.subr.bf16.mxu1 %v2763_v15  ;;  %2325 = vmatprep.subr.bf16.mxu0 %v2324_v13  ;;  %v838_v33 = vsel %vm835_vm3, %v2518_v61, %v2532_v22  ;;  %v841_v37 = vsel %vm835_vm3, %v2523_v1, %v2533_v25  ;;  %v2851_v61 = vld [vmem:[%s2773_s21 + $0x48] sm:$0xff]  ;;  %v2860_v13 = vld [vmem:[%s2773_s21 + $0x50] sm:$0xff]  ;;  %v2873_v25 = vld [vmem:[%s2773_s21 + $0x58] sm:$0xff] }
  0xa4   : > { %v2538_v26 = vunpack.i.h.bf16 %v2536_v23  ;;  %v2537_v27 = vunpack.i.l.bf16 %v2536_v23  ;;  %2159 = vmatmul.mubr.msk.f32.gmra.mrb[2].mxu0 %vm303_vm2, %v2800_v17  ;;  %v2541_v2 = vpop.permute.xlu1 %2540  ;;  %v2328_v44 = vpack.c.bf16 %v841_v37, %v838_v33 }
  0xa5   : > { %2152 = vmatmul.mubr.msk.f32.vlgmr.msra.gmra.mrb[0].mxu1 %vm303_vm2, %v253_v20  ;;  %2327 = vmatpush1.bf16.msra.mxu0 %v2326_v21  ;;  %v2543_v4 = vunpack.i.h.bf16 %v2541_v2  ;;  %v2542_v14 = vunpack.i.l.bf16 %v2541_v2 }
  0xa6   : > { %2315 = vmatpush3.bf16.msra.mxu1 %v2763_v15  ;;  %918 = vmatprep.mubr.f32.mxu0 %v2677_v12  ;;  %v1033_v30 = vsel %vm1031_vm4, %v2537_v27, %v2538_v26 }
  0xa7   : > { %2321 = vmatprep.subr.bf16.mxu1 %v2320_v24  ;;  %v2546_v31 = vpop.permute.xlu0 %2545  ;;  %538 = vmatprep.mubr.f32.mxu1 %v2677_v12  ;;  %v1036_v32 = vsel %vm1031_vm4, %v2542_v14, %v2543_v4 }
  0xa8   : > { %v2548_v34 = vunpack.i.h.bf16 %v2546_v31  ;;  %v2547_v35 = vunpack.i.l.bf16 %v2546_v31  ;;  %2164 = vmatmul.mubr.msk.f32.vlgmr.msra.gmra.mrb[0].mxu0 %vm303_vm2, %v2814_v28  ;;  %v2551_v15 = vpop.permute.xlu1 %2550  ;;  %v2332_v36 = vpack.c.bf16 %v1036_v32, %v1033_v30 }
  0xa9   : > { %2153 = vmatmul.mubr.msk.f32.gmra.mrb[2].mxu1 %vm303_vm2, %v254_v29  ;;  %924 = vmatprep.mubr.f32.mxu0 %v2677_v12  ;;  %v2552_v42 = vunpack.i.l.bf16 %v2551_v15  ;;  %v2553_v45 = vunpack.i.h.bf16 %v2551_v15 }
  0xaa   : > { %v1032_v39 = vsel %vm1031_vm4, %v2547_v35, %v2537_v27  ;;  %v1035_v40 = vsel %vm1031_vm4, %v2548_v34, %v2542_v14  ;;  %2248 = vmatprep.mubr.msk.f32.mxu1 %vm303_vm2, %v253_v20  ;;  %2333 = vmatprep.subr.bf16.mxu0 %v2332_v36  ;;  %v2882_v35 = vld [vmem:[%s2773_s21 + $0x60] sm:$0xff] }
  0xab   : > { %v2334_v41 = vpack.c.bf16 %v1035_v40, %v1032_v39  ;;  %v2556_v43 = vpop.permute.xlu0 %2555  ;;  %v1034_v55 = vsel %vm1031_vm4, %v2538_v26, %v2552_v42  ;;  %v1037_v60 = vsel %vm1031_vm4, %v2543_v4, %v2553_v45 }
  0xac   : > { %v2558_v46 = vunpack.i.h.bf16 %v2556_v43  ;;  %v2557_v47 = vunpack.i.l.bf16 %v2556_v43  ;;  %2165 = vmatmul.mubr.msk.f32.gmra.mrb[2].mxu0 %vm303_vm2, %v2829_v38  ;;  %v2561_v48 = vpop.permute.xlu1 %2560  ;;  %v2336_v7 = vpack.c.bf16 %v1037_v60, %v1034_v55 }
  0xad   : > { %2249 = vmatmul.mubr.msk.f32.vlgmr.msra.gmra.mrb[4].mxu1 %vm303_vm2, %v254_v29  ;;  %2335 = vmatpush1.bf16.msra.mxu0 %v2334_v41  ;;  %v2563_v49 = vunpack.i.h.bf16 %v2561_v48  ;;  %v2562_v50 = vunpack.i.l.bf16 %v2561_v48 }
  0xae   : > { %2323 = vmatpush3.bf16.msra.mxu1 %v2320_v24  ;;  %1114 = vmatprep.mubr.f32.mxu0 %v2677_v12  ;;  %v1229_v52 = vsel %vm1227_vm5, %v2557_v47, %v2558_v46 }
  0xaf   : > { %2329 = vmatprep.subr.bf16.mxu1 %v2328_v44  ;;  %v2566_v53 = vpop.permute.xlu0 %2565  ;;  %2255 = vmatprep.mubr.msk.f32.mxu1 %vm303_vm2, %v2788_v6  ;;  %v1232_v54 = vsel %vm1227_vm5, %v2562_v50, %v2563_v49 }
  0xb0   : > { %v2568_v56 = vunpack.i.h.bf16 %v2566_v53  ;;  %v2567_v57 = vunpack.i.l.bf16 %v2566_v53  ;;  %2170 = vmatmul.mubr.msk.f32.vlgmr.msra.gmra.mrb[0].mxu0 %vm303_vm2, %v2838_v51  ;;  %v2571_v58 = vpop.permute.xlu1 %2570  ;;  %v2340_v59 = vpack.c.bf16 %v1232_v54, %v1229_v52 }
  0xb1   : > { %1120 = vmatprep.mubr.f32.mxu0 %v2677_v12  ;;  %v2572_v3 = vunpack.i.l.bf16 %v2571_v58  ;;  %v2573_v8 = vunpack.i.h.bf16 %v2571_v58 }
  0xb2   : > { %v1228_v62 = vsel %vm1227_vm5, %v2567_v57, %v2557_v47  ;;  %v1231_v63 = vsel %vm1227_vm5, %v2568_v56, %v2562_v50  ;;  %2341 = vmatprep.subr.bf16.mxu0 %v2340_v59  ;;  %v2186_v57 = vld [vmem:[%s2773_s21 + $0x70] sm:$0xff] }
  0xb3   : > { %v2342_v1 = vpack.c.bf16 %v1231_v63, %v1228_v62  ;;  %v2576_v6 = vpop.permute.xlu0 %2575  ;;  %v1233_v24 = vsel %vm1227_vm5, %v2563_v49, %v2573_v8 }
  0xb4   : > { %v2578_v0 = vunpack.i.h.bf16 %v2576_v6  ;;  %v2577_v5 = vunpack.i.l.bf16 %v2576_v6  ;;  %2171 = vmatmul.mubr.msk.f32.gmra.mrb[2].mxu0 %vm303_vm2, %v2851_v61  ;;  %v2581_v9 = vpop.permute.xlu1 %2580  ;;  %v2187_v6 = vld [vmem:[%s2773_s21 + $0x78] sm:$0xff] }
  0xb5   : > { %2256 = vmatmul.mubr.msk.f32.vlgmr.msra.gmra.mrb[4].mxu1 %vm303_vm2, %v2800_v17  ;;  %2343 = vmatpush1.bf16.msra.mxu0 %v2342_v1  ;;  %v2583_v10 = vunpack.i.h.bf16 %v2581_v9  ;;  %v2582_v11 = vunpack.i.l.bf16 %v2581_v9  ;;  %v1230_v17 = vsel %vm1227_vm5, %v2558_v46, %v2572_v3 }
  0xb6   : > { %2331 = vmatpush3.bf16.msra.mxu1 %v2328_v44  ;;  %1310 = vmatprep.mubr.f32.mxu0 %v2677_v12  ;;  %v1425_v16 = vsel %vm1423_vm6, %v2577_v5, %v2578_v0  ;;  %v2181_v44 = vld [vmem:[%s2773_s21 + $0x68] sm:$0xff] }
  0xb7   : > { %2337 = vmatprep.subr.bf16.mxu1 %v2336_v7  ;;  %v2586_v18 = vpop.permute.xlu0 %2585  ;;  %2262 = vmatprep.mubr.msk.f32.mxu1 %vm303_vm2, %v2814_v28  ;;  %v1428_v19 = vsel %vm1423_vm6, %v2582_v11, %v2583_v10  ;;  %v2344_v28 = vpack.c.bf16 %v1233_v24, %v1230_v17 }
  0xb8   : > { %v2588_v20 = vunpack.i.h.bf16 %v2586_v18  ;;  %v2587_v21 = vunpack.i.l.bf16 %v2586_v18  ;;  %2176 = vmatmul.mubr.msk.f32.vlgmr.msra.gmra.mrb[0].mxu0 %vm303_vm2, %v2860_v13  ;;  %v2591_v22 = vpop.permute.xlu1 %2590  ;;  %v2348_v23 = vpack.c.bf16 %v1428_v19, %v1425_v16  ;;  %v2193_v19 = vld [vmem:[%s2773_s21 + $0x88] sm:$0xff] }
  0xb9   : > { %1316 = vmatprep.mubr.f32.mxu0 %v2677_v12  ;;  %v2592_v4 = vunpack.i.l.bf16 %v2591_v22  ;;  %v2593_v29 = vunpack.i.h.bf16 %v2591_v22 }
  0xba   : > { %v1424_v26 = vsel %vm1423_vm6, %v2587_v21, %v2577_v5  ;;  %v1427_v27 = vsel %vm1423_vm6, %v2588_v20, %v2582_v11  ;;  %2349 = vmatprep.subr.bf16.mxu0 %v2348_v23 }
  0xbb   : > { %v2350_v2 = vpack.c.bf16 %v1427_v27, %v1424_v26  ;;  %v2596_v14 = vpop.permute.xlu0 %2595  ;;  %v1429_v43 = vsel %vm1423_vm6, %v2583_v10, %v2593_v29 }
  0xbc   : > { %v2598_v30 = vunpack.i.h.bf16 %v2596_v14  ;;  %v2597_v31 = vunpack.i.l.bf16 %v2596_v14  ;;  %2177 = vmatmul.mubr.msk.f32.gmra.mrb[2].mxu0 %vm303_vm2, %v2873_v25  ;;  %v2601_v32 = vpop.permute.xlu1 %2600 }
  0xbd   : > { %2263 = vmatmul.mubr.msk.f32.vlgmr.msra.gmra.mrb[4].mxu1 %vm303_vm2, %v2829_v38  ;;  %2351 = vmatpush1.bf16.msra.mxu0 %v2350_v2  ;;  %v2603_v33 = vunpack.i.h.bf16 %v2601_v32  ;;  %v2602_v34 = vunpack.i.l.bf16 %v2601_v32  ;;  %v1426_v38 = vsel %vm1423_vm6, %v2578_v0, %v2592_v4 }
  0xbe   : > { %2339 = vmatpush3.bf16.msra.mxu1 %v2336_v7  ;;  %1506 = vmatprep.mubr.f32.mxu0 %v2677_v12  ;;  %v1621_v15 = vsel %vm1619_vm7, %v2597_v31, %v2598_v30  ;;  %v2352_v50 = vpack.c.bf16 %v1429_v43, %v1426_v38 }
  0xbf   : > { %2345 = vmatprep.subr.bf16.mxu1 %v2344_v28  ;;  %v2606_v36 = vpop.permute.xlu0 %2605  ;;  %2269 = vmatprep.mubr.msk.f32.mxu1 %vm303_vm2, %v2838_v51  ;;  %v1624_v37 = vsel %vm1619_vm7, %v2602_v34, %v2603_v33 }
  0xc0   : > { %v2608_v39 = vunpack.i.h.bf16 %v2606_v36  ;;  %v2607_v40 = vunpack.i.l.bf16 %v2606_v36  ;;  %2182 = vmatmul.mubr.msk.f32.vlgmr.msra.gmra.mrb[0].mxu0 %vm303_vm2, %v2882_v35  ;;  %v2611_v41 = vpop.permute.xlu1 %2610  ;;  %v2356_v42 = vpack.c.bf16 %v1624_v37, %v1621_v15 }
  0xc1   : > { %1512 = vmatprep.mubr.f32.mxu0 %v2677_v12  ;;  %v2612_v48 = vunpack.i.l.bf16 %v2611_v41  ;;  %v2613_v51 = vunpack.i.h.bf16 %v2611_v41 }
  0xc2   : > { %v1620_v45 = vsel %vm1619_vm7, %v2607_v40, %v2597_v31  ;;  %v1623_v46 = vsel %vm1619_vm7, %v2608_v39, %v2602_v34  ;;  %2357 = vmatprep.subr.bf16.mxu0 %v2356_v42 }
  0xc3   : > { %v2358_v47 = vpack.c.bf16 %v1623_v46, %v1620_v45  ;;  %v2616_v49 = vpop.permute.xlu0 %2615  ;;  %v1622_v62 = vsel %vm1619_vm7, %v2598_v30, %v2612_v48  ;;  %v1625_v3 = vsel %vm1619_vm7, %v2603_v33, %v2613_v51 }
  0xc4   : > { %v2618_v52 = vunpack.i.h.bf16 %v2616_v49  ;;  %v2617_v53 = vunpack.i.l.bf16 %v2616_v49  ;;  %2183 = vmatmul.mubr.msk.f32.gmra.mrb[2].mxu0 %vm303_vm2, %v2181_v44  ;;  %v2621_v54 = vpop.permute.xlu1 %2620  ;;  %v2360_v9 = vpack.c.bf16 %v1625_v3, %v1622_v62 }
  0xc5   : > { %2270 = vmatmul.mubr.msk.f32.vlgmr.msra.gmra.mrb[4].mxu1 %vm303_vm2, %v2851_v61  ;;  %2359 = vmatpush1.bf16.msra.mxu0 %v2358_v47  ;;  %v2623_v55 = vunpack.i.h.bf16 %v2621_v54  ;;  %v2622_v56 = vunpack.i.l.bf16 %v2621_v54 }
  0xc6   : > { %2347 = vmatpush3.bf16.msra.mxu1 %v2344_v28  ;;  %1702 = vmatprep.mubr.f32.mxu0 %v2677_v12  ;;  %v1817_v58 = vsel %vm1815_vm8, %v2617_v53, %v2618_v52 }
  0xc7   : > { %2353 = vmatprep.subr.bf16.mxu1 %v2352_v50  ;;  %v2626_v59 = vpop.permute.xlu0 %2625  ;;  %2276 = vmatprep.mubr.msk.f32.mxu1 %vm303_vm2, %v2860_v13  ;;  %v1820_v60 = vsel %vm1815_vm8, %v2622_v56, %v2623_v55  ;;  %v2192_v13 = vld [vmem:[%s2773_s21 + $0x80] sm:$0xff] }
  0xc8   : > { %v2628_v61 = vunpack.i.h.bf16 %v2626_v59  ;;  %v2627_v63 = vunpack.i.l.bf16 %v2626_v59  ;;  %2188 = vmatmul.mubr.msk.f32.vlgmr.msra.gmra.mrb[0].mxu0 %vm303_vm2, %v2186_v57  ;;  %v2364_v1 = vpack.c.bf16 %v1820_v60, %v1817_v58  ;;  %v2631_v7 = vpop.permute.xlu1 %2630 }
  0xc9   : > { %1708 = vmatprep.mubr.f32.mxu0 %v2677_v12  ;;  %v2633_v10 = vunpack.i.h.bf16 %v2631_v7  ;;  %v2632_v11 = vunpack.i.l.bf16 %v2631_v7 }
  0xca   : > { %v1816_v8 = vsel %vm1815_vm8, %v2627_v63, %v2617_v53  ;;  %v1819_v0 = vsel %vm1815_vm8, %v2628_v61, %v2622_v56  ;;  %2365 = vmatprep.subr.bf16.mxu0 %v2364_v1 }
  0xcb   : > { %v2366_v5 = vpack.c.bf16 %v1819_v0, %v1816_v8  ;;  %v1818_v16 = vsel %vm1815_vm8, %v2618_v52, %v2632_v11  ;;  %v1821_v18 = vsel %vm1815_vm8, %v2623_v55, %v2633_v10 }
  0xcc   : > { %2189 = vmatmul.mubr.msk.f32.gmra.mrb[2].mxu0 %vm303_vm2, %v2187_v6  ;;  %v2368_v17 = vpack.c.bf16 %v1821_v18, %v1818_v16 }
  0xcd   : > { %2277 = vmatmul.mubr.msk.f32.vlgmr.msra.gmra.mrb[4].mxu1 %vm303_vm2, %v2873_v25  ;;  %2367 = vmatpush1.bf16.msra.mxu0 %v2366_v5 }
  0xce   : > { %2355 = vmatpush3.bf16.msra.mxu1 %v2352_v50  ;;  %1898 = vmatprep.mubr.f32.mxu0 %v2677_v12 }
  0xcf   : > { %2361 = vmatprep.subr.bf16.mxu1 %v2360_v9  ;;  %2283 = vmatprep.mubr.msk.f32.mxu1 %vm303_vm2, %v2882_v35 }
  0xd0   : > { %2194 = vmatmul.mubr.msk.f32.vlgmr.msra.gmra.mrb[0].mxu0 %vm303_vm2, %v2192_v13 }
  0xd1   : > { %1904 = vmatprep.mubr.f32.mxu0 %v2677_v12 }
  0xd4   : > { %2195 = vmatmul.mubr.msk.f32.gmra.mrb[2].mxu0 %vm303_vm2, %v2193_v19 }
  0xd5   : > { %2284 = vmatmul.mubr.msk.f32.vlgmr.msra.gmra.mrb[4].mxu1 %vm303_vm2, %v2181_v44 }
  0xd6   : > { %2363 = vmatpush3.bf16.msra.mxu1 %v2360_v9  ;;  %2290 = vmatprep.mubr.msk.f32.mxu1 %vm303_vm2, %v2186_v57 }
  0xd7   : > { %2369 = vmatprep.subr.bf16.mxu1 %v2368_v17 }
  0xd8   : > { %v1997_v24 = vpop.permute.xlu0 %1996 }
  0xd9   : > { %v2002_v28 = vpop.permute.xlu1 %2001 }
  0xdd   : > { %2291 = vmatmul.mubr.msk.f32.vlgmr.msra.gmra.mrb[4].mxu1 %vm303_vm2, %v2187_v6 }
  0xde   : > { %2371 = vmatpush3.bf16.msra.mxu1 %v2368_v17  ;;  %2297 = vmatprep.mubr.msk.f32.mxu1 %vm303_vm2, %v2192_v13 }
  0xe5   : > { %2298 = vmatmul.mubr.msk.f32.vlgmr.msra.gmra.mrb[4].mxu1 %vm303_vm2, %v2193_v19 }
 0x178   : > { %v534_v12 = vpop.f32.mrb[0].mxu1 }
 0x179   : > { %v536_v20 = vpop.f32.mrb[1].mxu1 }
 0x17c   : > { %v540_v21 = vpop.f32.mrb[2].mxu1 }
 0x17d   : > { %v542_v22 = vpop.f32.mrb[3].mxu1 }
 0x1a3   : > { %v1900_v23 = vpop.f32.mrb[0].mxu0 }
 0x1a4   : > { %v2372_v25 = vadd.f32 %v1900_v23, %v534_v12  ;;  %v1902_v26 = vpop.f32.mrb[1].mxu0 }
 0x1a5   : > { %v2373_v27 = vadd.f32 %v1902_v26, %v536_v20 }
 0x1a6   : > { %v2004_v2 = vadd.f32 %v2372_v25, %v1997_v24 }
 0x1a7   : > { %v2005_v4 = vadd.f32 %v2373_v27, %v1997_v24  ;;  %v1906_v14 = vpop.f32.mrb[2].mxu0 }
 0x1a8   : > { %2010 = vst [vmem:[%s246_s28] sm:$0xff] %v2004_v2  ;;  %v2374_v29 = vadd.f32 %v1906_v14, %v540_v21  ;;  %v1908_v30 = vpop.f32.mrb[3].mxu0 }
 0x1a9   : > { %2011 = vst [vmem:[%s246_s28 + $0x8] sm:$0xff] %v2005_v4  ;;  %v2375_v31 = vadd.f32 %v1908_v30, %v542_v22 }
 0x1aa   : > { %v2007_v32 = vadd.f32 %v2374_v29, %v2002_v28 }
 0x1ab   : > { %v2008_v33 = vadd.f32 %v2375_v31, %v2002_v28 }
 0x1ac   : > { %2013 = vst [vmem:[%s246_s28 + $0x18] sm:$0xff] %v2007_v32 }
 0x1ad   : > { %2014 = vst [vmem:[%s246_s28 + $0x20] sm:$0xff] %v2008_v33 }
 0x1b8   : > { %v2299_v34 = vpop.f32.mrb[4].mxu1 }
 0x1b9   : > { %v2009_v35 = vadd.f32 %v2299_v34, %v2002_v28  ;;  %v1977_v15 = vpop.f32.mrb[5].mxu1 }
 0x1ba   : > { %v2006_v36 = vadd.f32 %v1997_v24, %v1977_v15 }
 0x1bb   : > { %2015 = vst [vmem:[%s246_s28 + $0x28] sm:$0xff] %v2009_v35 }
 0x1bc   : > { %2012 = vst [vmem:[%s246_s28 + $0x10] sm:$0xff] %v2006_v36 }
 0x1bd PF: > { %s13_s16 = sadd.s32 1, %s2674_s16   ;;  %s2955_s12 = smov %s2666_s14 }
 0x1be   : > { %p10_p7 = scmp.ge.s32.totalorder %s13_s16, 8   ;;  %s2956_s13 = smov %s2670_s15 }
 0x1bf   : > { %s2957_s14 = smov %s2960_s17  ;;  %s2958_s15 = smov %s2964_s18 }
 0x1c0   :  { %12 = sbr.rel (!%p10_p7) target bundleno = 3 (0x3), region = 76 }

// kernel: _lambda_.14
= control target key start
LH: loop header
LB: loop body
LE: loop exit
PB: predicated region body
PF: predicated region fallthrough
CT: control target
= control target key end

     0   :  { %s689_s21 = smov 0   ;;  %s731_s0 = inlined_call_operand.vmem [shape: f32[8,8], index: 0, kind: input, shape index: {}]   ;;  %s732_s1 = inlined_call_operand.vmem [shape: f32[8,1], index: 1, kind: input, shape index: {}]   ;;  %s733_s2 = inlined_call_operand.vmem [shape: f32[8,1], index: 2, kind: input, shape index: {}]   ;;  %s734_s3 = inlined_call_operand.vmem [shape: f32[2,8,256], index: 3, kind: input, shape index: {}]   ;;  %s735_s4 = inlined_call_operand.vmem [shape: f32[2,3,2,8,256], index: 4, kind: input, shape index: {}, may-alias: {4,5}]   ;;  %s736_s5 = inlined_call_operand.vmem [shape: f32[2,3,2,8,256], index: 5, kind: input, shape index: {}, may-alias: {4,5}]   ;;  %s737_s6 = inlined_call_operand.vmem [shape: f32[2,8,256], index: 6, kind: output, shape index: {}]  }
   0x1 LB: > { %s593_s22 = sadd.s32 4294967295, %s649_s21   ;;  %p597_p0 = scmp.ge.s32.totalorder %s649_s21, 1  ;;  %s649_s21 = sphi %s689_s21, %s16_s21  }
   0x2   : > { %p234_p1 = scmp.lt.s32.totalorder %s649_s21, 3 }
   0x4   : > { %p235_p2 = pnand %p597_p0, %p234_p1 }
   0x5   : > { %p276_p3 = scmp.lt.s32.totalorder (!%p235_p2), %s593_s22, 1  ;;  %v651_v0 = vmov (!%p235_p2), 0.0   ;;  %vm652_vm0 = vmmov (!%p235_p2), 0   ;;  %v653_v4 = vmov (!%p235_p2), 0   ;;  %v300_v5 = vld [vmem:[%s731_s0] sm:$0xff] (!%p235_p2)  ;;  %vm304_vm1 = vcmask (!%p235_p2), 64512  }
   0x6   : > { %238 = sbr.rel (%p235_p2) target bundleno = 1018 (0x3fa), region = 44  ;;  %618 = vmatprep.subr.mxu0 (!%p235_p2), %v651_v0  ;;  %623 = vmatprep.subr.mxu1 (!%p235_p2), %v651_v0  ;;  %v468_v16 = vld [vmem:[%s732_s1] sm:$0xff] (!%p235_p2) }
   0x7   : > { %620 = vmatprep.mubr.msk.f32.mxu0 (!%p235_p2), %vm652_vm0, %v651_v0  ;;  %625 = vmatprep.mubr.msk.f32.mxu1 (!%p235_p2), %vm652_vm0, %v651_v0  ;;  %v476_v21 = vld [vmem:[%s733_s2] sm:$0xff] (!%p235_p2) }
   0x8   : > { %639 = vset.pattern.permute.xlu0 (!%p235_p2), %v653_v4  ;;  %640 = vset.pattern.permute.xlu1 (!%p235_p2), %v653_v4 }
   0xd   : > { %s739_s22 = smov (!%p276_p3, %s593_s22), 1 }
   0xe   : > { %s612_s23 = sshll.u32 %s739_s22, 4  ;;  %s600_s9 = smul.u32 96, %s739_s22 }
   0xf   : > { %s280_s26 = scalar_lea.vmem %s734_s3, %s612_s23  ;;  %s297_s18 = scalar_lea.vmem %s737_s6, %s612_s23 }
  0x10   : > { %v298_v1 = vld [vmem:[%s280_s26] sm:$0xff]  ;;  %v299_v2 = vld [vmem:[%s280_s26 + $0x8] sm:$0xff]  ;;  %s549_s12 = scalar_lea.vmem %s735_s4, %s600_s9  ;;  %s553_s15 = scalar_lea.vmem %s736_s5, %s600_s9 }
  0x11   : > { %v301_v3 = vadd.f32 %v299_v2, %v298_v1  ;;  %v606_v24 = vld [vmem:[%s549_s12 + $0x40] sm:$0xff]  ;;  %v607_v25 = vld [vmem:[%s549_s12 + $0x48] sm:$0xff]  ;;  %v608_v35 = vld [vmem:[%s553_s15 + $0x50] sm:$0xff] }
  0x12   : > { %v486_v30 = vadd.f32 1.0, %v606_v24  ;;  %v487_v31 = vadd.f32 1.0, %v607_v25  ;;  %v609_v36 = vld [vmem:[%s553_s15 + $0x58] sm:$0xff] }
  0x13   : > { %302 = vadd.xlane.f32.xlu0 %v301_v3 }
  0xa0   : > { %v303_v6 = vpop.xlane.xlu0 %302 }
  0xa1   : > { %619 = vmatpush3.msra.mxu0 %v303_v6 }
  0xa2   : > { %621 = vmatmul.mubr.msk.f32.vlgmr.msra.gmra.mrb[0].mxu0 %vm304_vm1, %v300_v5 }
 0x175   : > { %v374_v7 = vpop.f32.mrb[0].mxu0 }
 0x176   : > { %380 = vperm.xlu0 %639, %v374_v7   ;;  %v622_v8 = vpop.f32.mrb[1].mxu0 }
 0x1f5   : > { %v381_v9 = vpop.permute.xlu0 %380 }
 0x1f6   : > { %v383_v10 = vsub.f32 %v298_v1, %v381_v9  ;;  %v384_v11 = vsub.f32 %v299_v2, %v381_v9 }
 0x1f8   : > { %v385_v12 = vmul.f32 %v383_v10, %v383_v10  ;;  %v386_v13 = vmul.f32 %v384_v11, %v384_v11 }
 0x1fa   : > { %v387_v14 = vadd.f32 %v386_v13, %v385_v12 }
 0x1fc   : > { %388 = vadd.xlane.f32.xlu1 %v387_v14 }
 0x20d   : > { %471 = vperm.xlu1 %640, %v468_v16  }
 0x289   : > { %v389_v15 = vpop.xlane.xlu1 %388 }
 0x28a   : > { %624 = vmatpush3.msra.mxu1 %v389_v15 }
 0x28b   : > { %626 = vmatmul.mubr.msk.f32.vlgmr.msra.gmra.mrb[0].mxu1 %vm304_vm1, %v300_v5 }
 0x28d   : > { %v472_v22 = vpop.permute.xlu1 %471 }
 0x35e   : > { %v456_v17 = vpop.f32.mrb[0].mxu1 }
 0x35f   : > { %v457_v18 = vadd.f32 1e-05, %v456_v17  ;;  %v627_v19 = vpop.f32.mrb[1].mxu1 }
 0x361   : > { %641 = vrsqrt.f32 %v457_v18 }
 0x36b   : > { %v642_v20 = vpop.eup %641 }
 0x36c   : > { %463 = vperm.xlu1 %640, %v642_v20  }
 0x370   : > { %479 = vperm.xlu1 %640, %v476_v21  }
 0x3eb   : > { %v464_v23 = vpop.permute.xlu1 %463 }
 0x3ec   : > { %v466_v26 = vmul.f32 %v464_v23, %v383_v10  ;;  %v467_v27 = vmul.f32 %v464_v23, %v384_v11 }
 0x3ee   : > { %v474_v28 = vmul.f32 %v472_v22, %v466_v26  ;;  %v475_v29 = vmul.f32 %v472_v22, %v467_v27 }
 0x3ef   : > { %v480_v32 = vpop.permute.xlu1 %479 }
 0x3f0   : > { %v482_v33 = vadd.f32 %v480_v32, %v474_v28  ;;  %v483_v34 = vadd.f32 %v480_v32, %v475_v29 }
 0x3f2   : > { %v488_v37 = vmul.f32 %v486_v30, %v482_v33  ;;  %v489_v38 = vmul.f32 %v487_v31, %v483_v34 }
 0x3f4   : > { %v492_v39 = vadd.f32 %v608_v35, %v488_v37  ;;  %v493_v40 = vadd.f32 %v609_v36, %v489_v38 }
 0x3f6   : > { %vm494_vm2 = vcmp.ge.f32.partialorder %v492_v39, 0.0  ;;  %vm495_vm3 = vcmp.ge.f32.partialorder %v493_v40, 0.0  ;;  %v496_v41 = vmul.f32 0.2, %v492_v39  ;;  %v497_v42 = vmul.f32 0.2, %v493_v40 }
 0x3f8   : > { %v498_v43 = vsel %vm494_vm2, %v492_v39, %v496_v41  ;;  %v499_v44 = vsel %vm495_vm3, %v493_v40, %v497_v42 }
 0x3f9   : > { %500 = vst [vmem:[%s297_s18] sm:$0xff] %v498_v43  ;;  %501 = vst [vmem:[%s297_s18 + $0x8] sm:$0xff] %v499_v44 }
 0x3fa PF: > { %s16_s21 = sadd.s32 1, %s649_s21  }
 0x3fb   : > { %p13_p4 = scmp.ge.s32.totalorder %s16_s21, 4  }
 0x3fd   :  { %15 = sbr.rel (!%p13_p4) target bundleno = 1 (0x1), region = 80 }

// kernel: _lambda_.11
= control target key start
LH: loop header
LB: loop body
LE: loop exit
PB: predicated region body
PF: predicated region fallthrough
CT: control target
= control target key end

     0   :  { %s679_s21 = smov 0   ;;  %s721_s0 = inlined_call_operand.vmem [shape: f32[8,8], index: 0, kind: input, shape index: {}]   ;;  %s722_s1 = inlined_call_operand.vmem [shape: f32[8,1], index: 1, kind: input, shape index: {}]   ;;  %s723_s2 = inlined_call_operand.vmem [shape: f32[8,1], index: 2, kind: input, shape index: {}]   ;;  %s724_s3 = inlined_call_operand.vmem [shape: f32[2,8,256], index: 3, kind: input, shape index: {}]   ;;  %s725_s4 = inlined_call_operand.vmem [shape: f32[2,3,2,8,256], index: 4, kind: input, shape index: {}, may-alias: {4,5}]   ;;  %s726_s5 = inlined_call_operand.vmem [shape: f32[2,3,2,8,256], index: 5, kind: input, shape index: {}, may-alias: {4,5}]   ;;  %s727_s6 = inlined_call_operand.vmem [shape: f32[2,8,256], index: 6, kind: output, shape index: {}]  }
   0x1 LB: > { %s584_s22 = sadd.s32 4294967295, %s639_s21   ;;  %p588_p0 = scmp.ge.s32.totalorder %s639_s21, 1  ;;  %s639_s21 = sphi %s679_s21, %s16_s21  }
   0x2   : > { %p233_p1 = scmp.lt.s32.totalorder %s639_s21, 3 }
   0x4   : > { %p234_p2 = pnand %p588_p0, %p233_p1 }
   0x5   : > { %p274_p3 = scmp.lt.s32.totalorder (!%p234_p2), %s584_s22, 1  ;;  %v641_v0 = vmov (!%p234_p2), 0.0   ;;  %vm642_vm0 = vmmov (!%p234_p2), 0   ;;  %v643_v4 = vmov (!%p234_p2), 0   ;;  %v297_v5 = vld [vmem:[%s721_s0] sm:$0xff] (!%p234_p2)  ;;  %vm301_vm1 = vcmask (!%p234_p2), 64512  }
   0x6   : > { %237 = sbr.rel (%p234_p2) target bundleno = 1018 (0x3fa), region = 44  ;;  %607 = vmatprep.subr.mxu0 (!%p234_p2), %v641_v0  ;;  %612 = vmatprep.subr.mxu1 (!%p234_p2), %v641_v0  ;;  %v465_v16 = vld [vmem:[%s722_s1] sm:$0xff] (!%p234_p2) }
   0x7   : > { %609 = vmatprep.mubr.msk.f32.mxu0 (!%p234_p2), %vm642_vm0, %v641_v0  ;;  %614 = vmatprep.mubr.msk.f32.mxu1 (!%p234_p2), %vm642_vm0, %v641_v0  ;;  %v473_v21 = vld [vmem:[%s723_s2] sm:$0xff] (!%p234_p2) }
   0x8   : > { %629 = vset.pattern.permute.xlu0 (!%p234_p2), %v643_v4  ;;  %630 = vset.pattern.permute.xlu1 (!%p234_p2), %v643_v4 }
   0xd   : > { %s729_s22 = smov (!%p274_p3, %s584_s22), 1 }
   0xe   : > { %s601_s23 = sshll.u32 %s729_s22, 4  ;;  %s617_s9 = smul.u32 96, %s729_s22 }
   0xf   : > { %s278_s26 = scalar_lea.vmem %s724_s3, %s601_s23  ;;  %s294_s18 = scalar_lea.vmem %s727_s6, %s601_s23 }
  0x10   : > { %v295_v1 = vld [vmem:[%s278_s26] sm:$0xff]  ;;  %v296_v2 = vld [vmem:[%s278_s26 + $0x8] sm:$0xff]  ;;  %s283_s12 = scalar_lea.vmem %s725_s4, %s617_s9  ;;  %s544_s15 = scalar_lea.vmem %s726_s5, %s617_s9 }
  0x11   : > { %v298_v3 = vadd.f32 %v296_v2, %v295_v1  ;;  %v481_v24 = vld [vmem:[%s283_s12] sm:$0xff]  ;;  %v482_v25 = vld [vmem:[%s283_s12 + $0x8] sm:$0xff]  ;;  %v597_v35 = vld [vmem:[%s544_s15 + $0x10] sm:$0xff] }
  0x12   : > { %v483_v30 = vadd.f32 1.0, %v481_v24  ;;  %v484_v31 = vadd.f32 1.0, %v482_v25  ;;  %v598_v36 = vld [vmem:[%s544_s15 + $0x18] sm:$0xff] }
  0x13   : > { %299 = vadd.xlane.f32.xlu0 %v298_v3 }
  0xa0   : > { %v300_v6 = vpop.xlane.xlu0 %299 }
  0xa1   : > { %608 = vmatpush3.msra.mxu0 %v300_v6 }
  0xa2   : > { %610 = vmatmul.mubr.msk.f32.vlgmr.msra.gmra.mrb[0].mxu0 %vm301_vm1, %v297_v5 }
 0x175   : > { %v371_v7 = vpop.f32.mrb[0].mxu0 }
 0x176   : > { %377 = vperm.xlu0 %629, %v371_v7   ;;  %v611_v8 = vpop.f32.mrb[1].mxu0 }
 0x1f5   : > { %v378_v9 = vpop.permute.xlu0 %377 }
 0x1f6   : > { %v380_v10 = vsub.f32 %v295_v1, %v378_v9  ;;  %v381_v11 = vsub.f32 %v296_v2, %v378_v9 }
 0x1f8   : > { %v382_v12 = vmul.f32 %v380_v10, %v380_v10  ;;  %v383_v13 = vmul.f32 %v381_v11, %v381_v11 }
 0x1fa   : > { %v384_v14 = vadd.f32 %v383_v13, %v382_v12 }
 0x1fc   : > { %385 = vadd.xlane.f32.xlu1 %v384_v14 }
 0x20d   : > { %468 = vperm.xlu1 %630, %v465_v16  }
 0x289   : > { %v386_v15 = vpop.xlane.xlu1 %385 }
 0x28a   : > { %613 = vmatpush3.msra.mxu1 %v386_v15 }
 0x28b   : > { %615 = vmatmul.mubr.msk.f32.vlgmr.msra.gmra.mrb[0].mxu1 %vm301_vm1, %v297_v5 }
 0x28d   : > { %v469_v22 = vpop.permute.xlu1 %468 }
 0x35e   : > { %v453_v17 = vpop.f32.mrb[0].mxu1 }
 0x35f   : > { %v454_v18 = vadd.f32 1e-05, %v453_v17  ;;  %v616_v19 = vpop.f32.mrb[1].mxu1 }
 0x361   : > { %631 = vrsqrt.f32 %v454_v18 }
 0x36b   : > { %v632_v20 = vpop.eup %631 }
 0x36c   : > { %460 = vperm.xlu1 %630, %v632_v20  }
 0x370   : > { %476 = vperm.xlu1 %630, %v473_v21  }
 0x3eb   : > { %v461_v23 = vpop.permute.xlu1 %460 }
 0x3ec   : > { %v463_v26 = vmul.f32 %v461_v23, %v380_v10  ;;  %v464_v27 = vmul.f32 %v461_v23, %v381_v11 }
 0x3ee   : > { %v471_v28 = vmul.f32 %v469_v22, %v463_v26  ;;  %v472_v29 = vmul.f32 %v469_v22, %v464_v27 }
 0x3ef   : > { %v477_v32 = vpop.permute.xlu1 %476 }
 0x3f0   : > { %v479_v33 = vadd.f32 %v477_v32, %v471_v28  ;;  %v480_v34 = vadd.f32 %v477_v32, %v472_v29 }
 0x3f2   : > { %v485_v37 = vmul.f32 %v483_v30, %v479_v33  ;;  %v486_v38 = vmul.f32 %v484_v31, %v480_v34 }
 0x3f4   : > { %v489_v39 = vadd.f32 %v597_v35, %v485_v37  ;;  %v490_v40 = vadd.f32 %v598_v36, %v486_v38 }
 0x3f6   : > { %vm491_vm2 = vcmp.ge.f32.partialorder %v489_v39, 0.0  ;;  %vm492_vm3 = vcmp.ge.f32.partialorder %v490_v40, 0.0  ;;  %v493_v41 = vmul.f32 0.2, %v489_v39  ;;  %v494_v42 = vmul.f32 0.2, %v490_v40 }
 0x3f8   : > { %v495_v43 = vsel %vm491_vm2, %v489_v39, %v493_v41  ;;  %v496_v44 = vsel %vm492_vm3, %v490_v40, %v494_v42 }
 0x3f9   : > { %497 = vst [vmem:[%s294_s18] sm:$0xff] %v495_v43  ;;  %498 = vst [vmem:[%s294_s18 + $0x8] sm:$0xff] %v496_v44 }
 0x3fa PF: > { %s16_s21 = sadd.s32 1, %s639_s21  }
 0x3fb   : > { %p13_p4 = scmp.ge.s32.totalorder %s16_s21, 4  }
 0x3fd   :  { %15 = sbr.rel (!%p13_p4) target bundleno = 1 (0x1), region = 80 }

// kernel: _lambda_.12
= control target key start
LH: loop header
LB: loop body
LE: loop exit
PB: predicated region body
PF: predicated region fallthrough
CT: control target
= control target key end

     0   :  { %s2029_s12 = smov 0   ;;  %s2031_s13 = smov 0   ;;  %s2201_s0 = inlined_call_operand.vmem [shape: f32[9,8,8], index: 0, kind: input, shape index: {}]   ;;  %s2202_s1 = inlined_call_operand.vmem [shape: f32[8,1], index: 1, kind: input, shape index: {}]   ;;  %s2203_s2 = inlined_call_operand.vmem [shape: f32[2,8,512], index: 2, kind: input, shape index: {}]   ;;  %s2204_s3 = inlined_call_operand.vmem [shape: f32[2,8,384], index: 3, kind: output, shape index: {}]  }
   0x1   :  { %s2033_s14 = smov 0  }
   0x2 LB: > { %s25_s15 = sadd.s32 1, %s1992_s13  ;;  %p1825_p0 = scmp.ge.s32.totalorder %s1996_s14, 1  ;;  %s1996_s14 = sphi %s2033_s14, %s13_s14   ;;  %s1992_s13 = sphi %s2031_s13, %s2206_s13   ;;  %s1988_s12 = sphi %s2029_s12, %s2205_s12  }
   0x3   : > { %p27_p1 = scmp.ge.s32.totalorder %s25_s15, 2  ;;  %p169_p2 = scmp.lt.s32.totalorder %s1996_s14, 3 }
   0x5   : > { %s2208_s15 = smov (%p27_p1, %s25_s15), 0  ;;  %p170_p3 = pnand %p1825_p0, %p169_p2 }
   0x6   : > { %p213_p4 = scmp.lt.s32.totalorder (!%p170_p3), %s1988_s12, 1  ;;  %v1998_v0 = vmov (!%p170_p3), 0.0   ;;  %s1999_s20 = smov (!%p170_p3), 127   ;;  %vm2001_vm0 = vmmov (!%p170_p3), 0   ;;  %v2008_v5 = vmov (!%p170_p3), 0   ;;  %v1693_v6 = vld [vmem:[%s2202_s1] sm:$0xff] (!%p170_p3) }
   0x7   : > { %173 = sbr.rel (%p170_p3) target bundleno = 420 (0x1a4), region = 32  ;;  %324 = vmatprep.mubr.f32.mxu0 (!%p170_p3), %v1998_v0  ;;  %1876 = vmatprep.subr.mxu1 (!%p170_p3), %v1998_v0  ;;  %s2000_s21 = smov (!%p170_p3), 126   ;;  %vm249_vm1 = vcmask (!%p170_p3), 1039360   ;;  %v1829_v12 = vld [vmem:[%s2201_s0 + $0x8] sm:$0xff] (!%p170_p3)  ;;  %vm256_vm2 = vcmask (!%p170_p3), 64512   ;;  %vm555_vm3 = vcmask (!%p170_p3), 1031168  }
   0x8   : > { %1878 = vmatprep.mubr.msk.f32.mxu1 (!%p170_p3), %vm2001_vm0, %v1998_v0  ;;  %s2002_s22 = smov (!%p170_p3), 110   ;;  %s2003_s23 = smov (!%p170_p3), 109   ;;  %1973 = vset.pattern.permute.xlu0 (!%p170_p3), %v2008_v5  ;;  %vm719_vm4 = vcmask (!%p170_p3), 900096   ;;  %v230_v19 = vld [vmem:[%s2201_s0] sm:$0xff] (!%p170_p3)  ;;  %vm883_vm5 = vcmask (!%p170_p3), 891904   ;;  %v1834_v27 = vld [vmem:[%s2201_s0 + $0x10] sm:$0xff] (!%p170_p3) }
   0x9   : > { %s2004_s24 = smov (!%p170_p3), 108   ;;  %s2005_s25 = smov (!%p170_p3), 92   ;;  %vm1047_vm6 = vcmask (!%p170_p3), 883712   ;;  %v1837_v35 = vld [vmem:[%s2201_s0 + $0x18] sm:$0xff] (!%p170_p3)  ;;  %v1840_v44 = vld [vmem:[%s2201_s0 + $0x20] sm:$0xff] (!%p170_p3)  ;;  %vm1211_vm7 = vcmask (!%p170_p3), 752640  }
   0xa   : > { %s2006_s26 = smov (!%p170_p3), 91   ;;  %s2007_s27 = smov (!%p170_p3), 90   ;;  %v1843_v51 = vld [vmem:[%s2201_s0 + $0x28] sm:$0xff] (!%p170_p3)  ;;  %v1846_v57 = vld [vmem:[%s2201_s0 + $0x30] sm:$0xff] (!%p170_p3)  ;;  %vm1375_vm8 = vcmask (!%p170_p3), 744448   ;;  %v1849_v61 = vld [vmem:[%s2201_s0 + $0x38] sm:$0xff] (!%p170_p3) }
   0xb   : > { %vm1539_vm9 = vcmask (!%p170_p3), 736256  }
   0xe   : > { %s2210_s12 = smov (!%p213_p4, %s1988_s12), 1 }
   0xf   : > { %s1857_s16 = sshll.u32 %s2210_s12, 5 }
  0x10   : > { %s217_s19 = scalar_lea.vmem %s2203_s2, %s1857_s16 }
  0x11   : > { %v2055_v1 = vld [vmem:[%s217_s19 + $0x8] sm:$0xff]  ;;  %v2057_v2 = vld [vmem:[%s217_s19] sm:$0xff]  ;;  %v2061_v3 = vld [vmem:[%s217_s19 + $0x10] sm:$0xff] }
  0x12   : > { %243 = vrot.lane.b32.xlu0 %v2055_v1, %s1999_s20  ;;  %241 = vrot.lane.b32.xlu1 %v2057_v2, %s1999_s20  ;;  %v234_v4 = vld [vmem:[%s217_s19 + $0x18] sm:$0xff] }
  0x16   : > { %245 = vrot.lane.b32.xlu0 %v2061_v3, %s1999_s20  ;;  %549 = vrot.lane.b32.xlu1 %v2055_v1, %s2000_s21 }
  0x1a   : > { %551 = vrot.lane.b32.xlu0 %v2061_v3, %s2000_s21  ;;  %547 = vrot.lane.b32.xlu1 %v2057_v2, %s2000_s21 }
  0x1e   : > { %713 = vrot.lane.b32.xlu0 %v2055_v1, %s2002_s22  ;;  %715 = vrot.lane.b32.xlu1 %v2061_v3, %s2002_s22 }
  0x22   : > { %711 = vrot.lane.b32.xlu0 %v2057_v2, %s2002_s22  ;;  %247 = vrot.lane.b32.xlu1 %v234_v4, %s1999_s20 }
  0x26   : > { %877 = vrot.lane.b32.xlu0 %v2055_v1, %s2003_s23  ;;  %879 = vrot.lane.b32.xlu1 %v2061_v3, %s2003_s23 }
  0x2a   : > { %875 = vrot.lane.b32.xlu0 %v2057_v2, %s2003_s23  ;;  %553 = vrot.lane.b32.xlu1 %v234_v4, %s2000_s21 }
  0x2e   : > { %1041 = vrot.lane.b32.xlu0 %v2055_v1, %s2004_s24  ;;  %1043 = vrot.lane.b32.xlu1 %v2061_v3, %s2004_s24 }
  0x32   : > { %1039 = vrot.lane.b32.xlu0 %v2057_v2, %s2004_s24  ;;  %717 = vrot.lane.b32.xlu1 %v234_v4, %s2002_s22 }
  0x36   : > { %881 = vrot.lane.b32.xlu0 %v234_v4, %s2003_s23  ;;  %1205 = vrot.lane.b32.xlu1 %v2055_v1, %s2005_s25 }
  0x3a   : > { %1207 = vrot.lane.b32.xlu0 %v2061_v3, %s2005_s25  ;;  %1203 = vrot.lane.b32.xlu1 %v2057_v2, %s2005_s25 }
  0x3e   : > { %1045 = vrot.lane.b32.xlu0 %v234_v4, %s2004_s24  ;;  %1209 = vrot.lane.b32.xlu1 %v234_v4, %s2005_s25  ;;  %s1937_s25 = smul.u32 24, %s2210_s12 }
  0x40   : > { %s226_s28 = scalar_lea.vmem %s2204_s3, %s1937_s25 }
  0x42   : > { %1369 = vrot.lane.b32.xlu0 %v2055_v1, %s2006_s26  ;;  %1371 = vrot.lane.b32.xlu1 %v2061_v3, %s2006_s26 }
  0x46   : > { %1367 = vrot.lane.b32.xlu0 %v2057_v2, %s2006_s26  ;;  %1373 = vrot.lane.b32.xlu1 %v234_v4, %s2006_s26 }
  0x4a   : > { %1533 = vrot.lane.b32.xlu0 %v2055_v1, %s2007_s27  ;;  %1535 = vrot.lane.b32.xlu1 %v2061_v3, %s2007_s27 }
  0x4e   : > { %1537 = vrot.lane.b32.xlu0 %v234_v4, %s2007_s27  ;;  %1531 = vrot.lane.b32.xlu1 %v2057_v2, %s2007_s27 }
  0x52   : > { %1696 = vperm.xlu0 %1973, %v1693_v6   ;;  %v1852_v6 = vld [vmem:[%s2201_s0 + $0x40] sm:$0xff] }
  0x84   : > { %v244_v7 = vpop.permute.xlu0 %243  ;;  %v242_v8 = vpop.permute.xlu1 %241 }
  0x85   : > { %v250_v13 = vsel %vm249_vm1, %v242_v8, %v244_v7 }
  0x88   : > { %v246_v9 = vpop.permute.xlu0 %245  ;;  %v550_v10 = vpop.permute.xlu1 %549 }
  0x89   : > { %v251_v11 = vsel %vm249_vm1, %v244_v7, %v246_v9 }
  0x8a   : > { %260 = vmatprep.subr.mxu0 %v251_v11 }
  0x8b   : > { %261 = vmatpush1.msra.mxu0 %v250_v13 }
  0x8c   : > { %v552_v14 = vpop.permute.xlu0 %551  ;;  %1830 = vmatmul.mubr.msk.f32.vlgmr.msra.gmra.mrb[0].mxu0 %vm256_vm2, %v1829_v12  ;;  %v548_v15 = vpop.permute.xlu1 %547  ;;  %404 = vmatprep.subr.mxu0 %v2055_v1 }
  0x8d   : > { %405 = vmatpush1.msra.mxu0 %v2057_v2  ;;  %v557_v16 = vsel %vm555_vm3, %v550_v10, %v552_v14  ;;  %468 = vmatprep.mubr.f32.mxu0 %v1998_v0  ;;  %v556_v20 = vsel %vm555_vm3, %v548_v15, %v550_v10 }
  0x8e   : > { %565 = vmatprep.subr.mxu0 %v557_v16 }
  0x90   : > { %v714_v17 = vpop.permute.xlu0 %713  ;;  %v716_v18 = vpop.permute.xlu1 %715 }
  0x91   : > { %v721_v21 = vsel %vm719_vm4, %v714_v17, %v716_v18 }
  0x94   : > { %v712_v22 = vpop.permute.xlu0 %711  ;;  %v248_v23 = vpop.permute.xlu1 %247  ;;  %1832 = vmatmul.mubr.msk.f32.vlgmr.msra.gmra.mrb[0].mxu0 %vm256_vm2, %v230_v19 }
  0x95   : > { %566 = vmatpush1.msra.mxu0 %v556_v20  ;;  %v252_v24 = vsel %vm249_vm1, %v246_v9, %v248_v23  ;;  %629 = vmatprep.mubr.f32.mxu0 %v1998_v0  ;;  %v720_v29 = vsel %vm719_vm4, %v712_v22, %v714_v17 }
  0x96   : > { %729 = vmatprep.subr.mxu0 %v721_v21  ;;  %1877 = vmatpush3.msra.mxu1 %v252_v24 }
  0x97   : > { %1879 = vmatmul.mubr.msk.f32.vlgmr.msra.gmra.mrb[0].mxu1 %vm256_vm2, %v1829_v12  ;;  %1881 = vmatprep.subr.mxu1 %v1998_v0 }
  0x98   : > { %v878_v25 = vpop.permute.xlu0 %877  ;;  %v880_v26 = vpop.permute.xlu1 %879  ;;  %1882 = vmatpush3.msra.mxu1 %v2061_v3  ;;  %1883 = vmatprep.mubr.msk.f32.mxu1 %vm2001_vm0, %v1998_v0 }
  0x99   : > { %1886 = vmatprep.subr.mxu1 %v1998_v0  ;;  %v885_v28 = vsel %vm883_vm5, %v878_v25, %v880_v26 }
  0x9b   : > { %1884 = vmatmul.mubr.msk.f32.vlgmr.msra.gmra.mrb[2].mxu1 %vm256_vm2, %v230_v19 }
  0x9c   : > { %v876_v30 = vpop.permute.xlu0 %875  ;;  %v554_v31 = vpop.permute.xlu1 %553  ;;  %1835 = vmatmul.mubr.msk.f32.vlgmr.msra.gmra.mrb[0].mxu0 %vm256_vm2, %v1834_v27  ;;  %1888 = vmatprep.mubr.msk.f32.mxu1 %vm2001_vm0, %v1998_v0 }
  0x9d   : > { %v558_v32 = vsel %vm555_vm3, %v552_v14, %v554_v31  ;;  %730 = vmatpush1.msra.mxu0 %v720_v29  ;;  %793 = vmatprep.mubr.f32.mxu0 %v1998_v0  ;;  %v884_v37 = vsel %vm883_vm5, %v876_v30, %v878_v25 }
  0x9e   : > { %893 = vmatprep.subr.mxu0 %v885_v28  ;;  %1887 = vmatpush3.msra.mxu1 %v558_v32 }
  0x9f   : > { %1891 = vmatprep.subr.mxu1 %v1998_v0  ;;  %1889 = vmatmul.mubr.msk.f32.vlgmr.msra.gmra.mrb[4].mxu1 %vm256_vm2, %v1834_v27 }
  0xa0   : > { %v1042_v33 = vpop.permute.xlu0 %1041  ;;  %v1044_v34 = vpop.permute.xlu1 %1043  ;;  %1893 = vmatprep.mubr.msk.f32.mxu1 %vm2001_vm0, %v1998_v0 }
  0xa1   : > { %v1049_v36 = vsel %vm1047_vm6, %v1042_v33, %v1044_v34 }
  0xa4   : > { %v1040_v38 = vpop.permute.xlu0 %1039  ;;  %v718_v39 = vpop.permute.xlu1 %717  ;;  %1838 = vmatmul.mubr.msk.f32.vlgmr.msra.gmra.mrb[0].mxu0 %vm256_vm2, %v1837_v35 }
  0xa5   : > { %v722_v40 = vsel %vm719_vm4, %v716_v18, %v718_v39  ;;  %894 = vmatpush1.msra.mxu0 %v884_v37  ;;  %957 = vmatprep.mubr.f32.mxu0 %v1998_v0  ;;  %v1048_v45 = vsel %vm1047_vm6, %v1040_v38, %v1042_v33 }
  0xa6   : > { %1057 = vmatprep.subr.mxu0 %v1049_v36  ;;  %1892 = vmatpush3.msra.mxu1 %v722_v40 }
  0xa7   : > { %1896 = vmatprep.subr.mxu1 %v1998_v0  ;;  %1894 = vmatmul.mubr.msk.f32.vlgmr.msra.gmra.mrb[6].mxu1 %vm256_vm2, %v1837_v35 }
  0xa8   : > { %v882_v41 = vpop.permute.xlu0 %881  ;;  %v1206_v42 = vpop.permute.xlu1 %1205  ;;  %1898 = vmatprep.mubr.msk.f32.mxu1 %vm2001_vm0, %v1998_v0 }
  0xa9   : > { %v886_v43 = vsel %vm883_vm5, %v880_v26, %v882_v41 }
  0xaa   : > { %1897 = vmatpush3.msra.mxu1 %v886_v43 }
  0xab   : > { %1899 = vmatmul.mubr.msk.f32.vlgmr.msra.gmra.mrb[8].mxu1 %vm256_vm2, %v1840_v44  ;;  %1901 = vmatprep.subr.mxu1 %v1998_v0 }
  0xac   : > { %v1208_v46 = vpop.permute.xlu0 %1207  ;;  %v1204_v47 = vpop.permute.xlu1 %1203  ;;  %1841 = vmatmul.mubr.msk.f32.vlgmr.msra.gmra.mrb[0].mxu0 %vm256_vm2, %v1840_v44  ;;  %1903 = vmatprep.mubr.msk.f32.mxu1 %vm2001_vm0, %v1998_v0 }
  0xad   : > { %1058 = vmatpush1.msra.mxu0 %v1048_v45  ;;  %v1213_v48 = vsel %vm1211_vm7, %v1206_v42, %v1208_v46  ;;  %1121 = vmatprep.mubr.f32.mxu0 %v1998_v0  ;;  %v1212_v54 = vsel %vm1211_vm7, %v1204_v47, %v1206_v42 }
  0xae   : > { %1221 = vmatprep.subr.mxu0 %v1213_v48 }
  0xb0   : > { %v1046_v49 = vpop.permute.xlu0 %1045  ;;  %v1210_v50 = vpop.permute.xlu1 %1209 }
  0xb1   : > { %v1050_v52 = vsel %vm1047_vm6, %v1044_v34, %v1046_v49  ;;  %v1214_v53 = vsel %vm1211_vm7, %v1208_v46, %v1210_v50 }
  0xb2   : > { %1902 = vmatpush3.msra.mxu1 %v1050_v52 }
  0xb3   : > { %1904 = vmatmul.mubr.msk.f32.vlgmr.msra.gmra.mrb[10].mxu1 %vm256_vm2, %v1843_v51  ;;  %1906 = vmatprep.subr.mxu1 %v1998_v0 }
  0xb4   : > { %v1370_v55 = vpop.permute.xlu0 %1369  ;;  %v1372_v56 = vpop.permute.xlu1 %1371  ;;  %1844 = vmatmul.mubr.msk.f32.vlgmr.msra.gmra.mrb[0].mxu0 %vm256_vm2, %v1843_v51  ;;  %1907 = vmatpush3.msra.mxu1 %v1214_v53 }
  0xb5   : > { %1222 = vmatpush1.msra.mxu0 %v1212_v54  ;;  %1908 = vmatprep.mubr.msk.f32.mxu1 %vm2001_vm0, %v1998_v0  ;;  %v1377_v58 = vsel %vm1375_vm8, %v1370_v55, %v1372_v56 }
  0xb6   : > { %1385 = vmatprep.subr.mxu0 %v1377_v58  ;;  %1911 = vmatprep.subr.mxu1 %v1998_v0 }
  0xb7   : > { %1909 = vmatmul.mubr.msk.f32.vlgmr.msra.gmra.mrb[12].mxu1 %vm256_vm2, %v1846_v57  ;;  %1285 = vmatprep.mubr.f32.mxu0 %v1998_v0 }
  0xb8   : > { %v1368_v59 = vpop.permute.xlu0 %1367  ;;  %v1374_v60 = vpop.permute.xlu1 %1373  ;;  %1913 = vmatprep.mubr.msk.f32.mxu1 %vm2001_vm0, %v1998_v0 }
  0xb9   : > { %v1378_v62 = vsel %vm1375_vm8, %v1372_v56, %v1374_v60  ;;  %v1376_v63 = vsel %vm1375_vm8, %v1368_v59, %v1370_v55 }
  0xba   : > { %1912 = vmatpush3.msra.mxu1 %v1378_v62 }
  0xbb   : > { %1914 = vmatmul.mubr.msk.f32.vlgmr.msra.gmra.mrb[14].mxu1 %vm256_vm2, %v1849_v61  ;;  %1916 = vmatprep.subr.mxu1 %v1998_v0 }
  0xbc   : > { %v1534_v1 = vpop.permute.xlu0 %1533  ;;  %1847 = vmatmul.mubr.msk.f32.vlgmr.msra.gmra.mrb[0].mxu0 %vm256_vm2, %v1846_v57  ;;  %v1536_v2 = vpop.permute.xlu1 %1535  ;;  %1918 = vmatprep.mubr.msk.f32.mxu1 %vm2001_vm0, %v1998_v0 }
  0xbd   : > { %1386 = vmatpush1.msra.mxu0 %v1376_v63  ;;  %v1541_v3 = vsel %vm1539_vm9, %v1534_v1, %v1536_v2  ;;  %1449 = vmatprep.mubr.f32.mxu0 %v1998_v0 }
  0xbe   : > { %1549 = vmatprep.subr.mxu0 %v1541_v3 }
  0xc0   : > { %v1538_v4 = vpop.permute.xlu0 %1537  ;;  %v1532_v5 = vpop.permute.xlu1 %1531 }
  0xc1   : > { %v1542_v7 = vsel %vm1539_vm9, %v1536_v2, %v1538_v4  ;;  %v1540_v8 = vsel %vm1539_vm9, %v1532_v5, %v1534_v1 }
  0xc2   : > { %1917 = vmatpush3.msra.mxu1 %v1542_v7 }
  0xc3   : > { %1919 = vmatmul.mubr.msk.f32.vlgmr.msra.gmra.mrb[16].mxu1 %vm256_vm2, %v1852_v6 }
  0xc4   : > { %1850 = vmatmul.mubr.msk.f32.vlgmr.msra.gmra.mrb[0].mxu0 %vm256_vm2, %v1849_v61 }
  0xc5   : > { %1550 = vmatpush1.msra.mxu0 %v1540_v8  ;;  %1613 = vmatprep.mubr.f32.mxu0 %v1998_v0 }
  0xcc   : > { %1853 = vmatmul.mubr.msk.f32.vlgmr.msra.gmra.mrb[0].mxu0 %vm256_vm2, %v1852_v6 }
  0xd1   : > { %v1697_v32 = vpop.permute.xlu0 %1696 }
 0x16a   : > { %v397_v9 = vpop.f32.mrb[0].mxu1 }
 0x16b   : > { %v1880_v10 = vpop.f32.mrb[1].mxu1 }
 0x16e   : > { %v541_v11 = vpop.f32.mrb[2].mxu1 }
 0x16f   : > { %v542_v12 = vadd.f32 %v541_v11, %v397_v9  ;;  %v1885_v13 = vpop.f32.mrb[3].mxu1 }
 0x172   : > { %v702_v14 = vpop.f32.mrb[4].mxu1 }
 0x173   : > { %v708_v15 = vadd.f32 %v702_v14, %v542_v12  ;;  %v1890_v16 = vpop.f32.mrb[5].mxu1 }
 0x17a   : > { %v866_v17 = vpop.f32.mrb[6].mxu1 }
 0x17b   : > { %v872_v18 = vadd.f32 %v866_v17, %v708_v15  ;;  %v1895_v19 = vpop.f32.mrb[7].mxu1 }
 0x17e   : > { %v1030_v20 = vpop.f32.mrb[8].mxu1 }
 0x17f   : > { %v1036_v21 = vadd.f32 %v1030_v20, %v872_v18  ;;  %v1900_v22 = vpop.f32.mrb[9].mxu1 }
 0x186   : > { %v1194_v23 = vpop.f32.mrb[10].mxu1 }
 0x187   : > { %v1200_v24 = vadd.f32 %v1194_v23, %v1036_v21  ;;  %v1905_v0 = vpop.f32.mrb[11].mxu1 }
 0x18a   : > { %v1358_v25 = vpop.f32.mrb[12].mxu1 }
 0x18b   : > { %v1364_v26 = vadd.f32 %v1358_v25, %v1200_v24  ;;  %v1910_v27 = vpop.f32.mrb[13].mxu1 }
 0x18e   : > { %v1522_v28 = vpop.f32.mrb[14].mxu1 }
 0x18f   : > { %v1528_v29 = vadd.f32 %v1522_v28, %v1364_v26  ;;  %v1915_v30 = vpop.f32.mrb[15].mxu1 }
 0x196   : > { %v1686_v31 = vpop.f32.mrb[16].mxu1 }
 0x197   : > { %v1692_v33 = vadd.f32 %v1686_v31, %v1528_v29  ;;  %v1920_v34 = vpop.f32.mrb[17].mxu1 }
 0x199   : > { %v1701_v35 = vadd.f32 %v1697_v32, %v1692_v33 }
 0x19b   : > { %1704 = vst [vmem:[%s226_s28 + $0x10] sm:$0xff] %v1701_v35 }
 0x19f   : > { %v1615_v36 = vpop.f32.mrb[0].mxu0 }
 0x1a0   : > { %v1699_v37 = vadd.f32 %v1697_v32, %v1615_v36  ;;  %v1617_v38 = vpop.f32.mrb[1].mxu0 }
 0x1a1   : > { %v1700_v39 = vadd.f32 %v1697_v32, %v1617_v38 }
 0x1a2   : > { %1702 = vst [vmem:[%s226_s28] sm:$0xff] %v1699_v37 }
 0x1a3   : > { %1703 = vst [vmem:[%s226_s28 + $0x8] sm:$0xff] %v1700_v39 }
 0x1a4 PF: > { %s13_s14 = sadd.s32 1, %s1996_s14   ;;  %s2205_s12 = smov %s1992_s13 }
 0x1a5   : > { %p10_p5 = scmp.ge.s32.totalorder %s13_s14, 4   ;;  %s2206_s13 = smov %s2208_s15 }
 0x1a7   :  { %12 = sbr.rel (!%p10_p5) target bundleno = 2 (0x2), region = 76 }

// kernel: _lambda_.13
= control target key start
LH: loop header
LB: loop body
LE: loop exit
PB: predicated region body
PF: predicated region fallthrough
CT: control target
= control target key end

     0   :  { %s689_s21 = smov 0   ;;  %s731_s0 = inlined_call_operand.vmem [shape: f32[8,8], index: 0, kind: input, shape index: {}]   ;;  %s732_s1 = inlined_call_operand.vmem [shape: f32[8,1], index: 1, kind: input, shape index: {}]   ;;  %s733_s2 = inlined_call_operand.vmem [shape: f32[8,1], index: 2, kind: input, shape index: {}]   ;;  %s734_s3 = inlined_call_operand.vmem [shape: f32[2,8,256], index: 3, kind: input, shape index: {}]   ;;  %s735_s4 = inlined_call_operand.vmem [shape: f32[2,3,2,8,256], index: 4, kind: input, shape index: {}, may-alias: {4,5}]   ;;  %s736_s5 = inlined_call_operand.vmem [shape: f32[2,3,2,8,256], index: 5, kind: input, shape index: {}, may-alias: {4,5}]   ;;  %s737_s6 = inlined_call_operand.vmem [shape: f32[2,8,256], index: 6, kind: output, shape index: {}]  }
   0x1 LB: > { %s593_s22 = sadd.s32 4294967295, %s649_s21   ;;  %p597_p0 = scmp.ge.s32.totalorder %s649_s21, 1  ;;  %s649_s21 = sphi %s689_s21, %s16_s21  }
   0x2   : > { %p234_p1 = scmp.lt.s32.totalorder %s649_s21, 3 }
   0x4   : > { %p235_p2 = pnand %p597_p0, %p234_p1 }
   0x5   : > { %p276_p3 = scmp.lt.s32.totalorder (!%p235_p2), %s593_s22, 1  ;;  %v651_v0 = vmov (!%p235_p2), 0.0   ;;  %vm652_vm0 = vmmov (!%p235_p2), 0   ;;  %v653_v4 = vmov (!%p235_p2), 0   ;;  %v300_v5 = vld [vmem:[%s731_s0] sm:$0xff] (!%p235_p2)  ;;  %vm304_vm1 = vcmask (!%p235_p2), 64512  }
   0x6   : > { %238 = sbr.rel (%p235_p2) target bundleno = 1018 (0x3fa), region = 44  ;;  %618 = vmatprep.subr.mxu0 (!%p235_p2), %v651_v0  ;;  %623 = vmatprep.subr.mxu1 (!%p235_p2), %v651_v0  ;;  %v468_v16 = vld [vmem:[%s732_s1] sm:$0xff] (!%p235_p2) }
   0x7   : > { %620 = vmatprep.mubr.msk.f32.mxu0 (!%p235_p2), %vm652_vm0, %v651_v0  ;;  %625 = vmatprep.mubr.msk.f32.mxu1 (!%p235_p2), %vm652_vm0, %v651_v0  ;;  %v476_v21 = vld [vmem:[%s733_s2] sm:$0xff] (!%p235_p2) }
   0x8   : > { %639 = vset.pattern.permute.xlu0 (!%p235_p2), %v653_v4  ;;  %640 = vset.pattern.permute.xlu1 (!%p235_p2), %v653_v4 }
   0xd   : > { %s739_s22 = smov (!%p276_p3, %s593_s22), 1 }
   0xe   : > { %s612_s23 = sshll.u32 %s739_s22, 4  ;;  %s600_s9 = smul.u32 96, %s739_s22 }
   0xf   : > { %s280_s26 = scalar_lea.vmem %s734_s3, %s612_s23  ;;  %s297_s18 = scalar_lea.vmem %s737_s6, %s612_s23 }
  0x10   : > { %v298_v1 = vld [vmem:[%s280_s26] sm:$0xff]  ;;  %v299_v2 = vld [vmem:[%s280_s26 + $0x8] sm:$0xff]  ;;  %s549_s12 = scalar_lea.vmem %s735_s4, %s600_s9  ;;  %s553_s15 = scalar_lea.vmem %s736_s5, %s600_s9 }
  0x11   : > { %v301_v3 = vadd.f32 %v299_v2, %v298_v1  ;;  %v606_v24 = vld [vmem:[%s549_s12 + $0x20] sm:$0xff]  ;;  %v607_v25 = vld [vmem:[%s549_s12 + $0x28] sm:$0xff]  ;;  %v608_v35 = vld [vmem:[%s553_s15 + $0x30] sm:$0xff] }
  0x12   : > { %v486_v30 = vadd.f32 1.0, %v606_v24  ;;  %v487_v31 = vadd.f32 1.0, %v607_v25  ;;  %v609_v36 = vld [vmem:[%s553_s15 + $0x38] sm:$0xff] }
  0x13   : > { %302 = vadd.xlane.f32.xlu0 %v301_v3 }
  0xa0   : > { %v303_v6 = vpop.xlane.xlu0 %302 }
  0xa1   : > { %619 = vmatpush3.msra.mxu0 %v303_v6 }
  0xa2   : > { %621 = vmatmul.mubr.msk.f32.vlgmr.msra.gmra.mrb[0].mxu0 %vm304_vm1, %v300_v5 }
 0x175   : > { %v374_v7 = vpop.f32.mrb[0].mxu0 }
 0x176   : > { %380 = vperm.xlu0 %639, %v374_v7   ;;  %v622_v8 = vpop.f32.mrb[1].mxu0 }
 0x1f5   : > { %v381_v9 = vpop.permute.xlu0 %380 }
 0x1f6   : > { %v383_v10 = vsub.f32 %v298_v1, %v381_v9  ;;  %v384_v11 = vsub.f32 %v299_v2, %v381_v9 }
 0x1f8   : > { %v385_v12 = vmul.f32 %v383_v10, %v383_v10  ;;  %v386_v13 = vmul.f32 %v384_v11, %v384_v11 }
 0x1fa   : > { %v387_v14 = vadd.f32 %v386_v13, %v385_v12 }
 0x1fc   : > { %388 = vadd.xlane.f32.xlu1 %v387_v14 }
 0x20d   : > { %471 = vperm.xlu1 %640, %v468_v16  }
 0x289   : > { %v389_v15 = vpop.xlane.xlu1 %388 }
 0x28a   : > { %624 = vmatpush3.msra.mxu1 %v389_v15 }
 0x28b   : > { %626 = vmatmul.mubr.msk.f32.vlgmr.msra.gmra.mrb[0].mxu1 %vm304_vm1, %v300_v5 }
 0x28d   : > { %v472_v22 = vpop.permute.xlu1 %471 }
 0x35e   : > { %v456_v17 = vpop.f32.mrb[0].mxu1 }
 0x35f   : > { %v457_v18 = vadd.f32 1e-05, %v456_v17  ;;  %v627_v19 = vpop.f32.mrb[1].mxu1 }
 0x361   : > { %641 = vrsqrt.f32 %v457_v18 }
 0x36b   : > { %v642_v20 = vpop.eup %641 }
 0x36c   : > { %463 = vperm.xlu1 %640, %v642_v20  }
 0x370   : > { %479 = vperm.xlu1 %640, %v476_v21  }
 0x3eb   : > { %v464_v23 = vpop.permute.xlu1 %463 }
 0x3ec   : > { %v466_v26 = vmul.f32 %v464_v23, %v383_v10  ;;  %v467_v27 = vmul.f32 %v464_v23, %v384_v11 }
 0x3ee   : > { %v474_v28 = vmul.f32 %v472_v22, %v466_v26  ;;  %v475_v29 = vmul.f32 %v472_v22, %v467_v27 }
 0x3ef   : > { %v480_v32 = vpop.permute.xlu1 %479 }
 0x3f0   : > { %v482_v33 = vadd.f32 %v480_v32, %v474_v28  ;;  %v483_v34 = vadd.f32 %v480_v32, %v475_v29 }
 0x3f2   : > { %v488_v37 = vmul.f32 %v486_v30, %v482_v33  ;;  %v489_v38 = vmul.f32 %v487_v31, %v483_v34 }
 0x3f4   : > { %v492_v39 = vadd.f32 %v608_v35, %v488_v37  ;;  %v493_v40 = vadd.f32 %v609_v36, %v489_v38 }
 0x3f6   : > { %vm494_vm2 = vcmp.ge.f32.partialorder %v492_v39, 0.0  ;;  %vm495_vm3 = vcmp.ge.f32.partialorder %v493_v40, 0.0  ;;  %v496_v41 = vmul.f32 0.2, %v492_v39  ;;  %v497_v42 = vmul.f32 0.2, %v493_v40 }
 0x3f8   : > { %v498_v43 = vsel %vm494_vm2, %v492_v39, %v496_v41  ;;  %v499_v44 = vsel %vm495_vm3, %v493_v40, %v497_v42 }
 0x3f9   : > { %500 = vst [vmem:[%s297_s18] sm:$0xff] %v498_v43  ;;  %501 = vst [vmem:[%s297_s18 + $0x8] sm:$0xff] %v499_v44 }
 0x3fa PF: > { %s16_s21 = sadd.s32 1, %s649_s21  }
 0x3fb   : > { %p13_p4 = scmp.ge.s32.totalorder %s16_s21, 4  }
 0x3fd   :  { %15 = sbr.rel (!%p13_p4) target bundleno = 1 (0x1), region = 80 }

// kernel: _lambda_.15
= control target key start
LH: loop header
LB: loop body
LE: loop exit
PB: predicated region body
PF: predicated region fallthrough
CT: control target
= control target key end

     0   :  { %s3688_s15 = smov 0   ;;  %s3690_s16 = smov 0   ;;  %s4024_s0 = inlined_call_operand.vmem [shape: f32[9,8,8], index: 0, kind: input, shape index: {}]   ;;  %s4025_s1 = inlined_call_operand.vmem [shape: f32[9,8,8], index: 1, kind: input, shape index: {}]   ;;  %s4026_s2 = inlined_call_operand.vmem [shape: f32[2,8,512], index: 2, kind: input, shape index: {}]   ;;  %s4027_s3 = inlined_call_operand.vmem [shape: f32[2,8,512], index: 3, kind: input, shape index: {}]   ;;  %s4028_s4 = inlined_call_operand.vmem [shape: f32[2,8,384], index: 4, kind: output, shape index: {}]  }
   0x1   :  { %s3692_s17 = smov 0  }
   0x2 LB: > { %s26_s18 = sadd.s32 1, %s3647_s16  ;;  %p3338_p0 = scmp.ge.s32.totalorder %s3651_s17, 1  ;;  %s3651_s17 = sphi %s3692_s17, %s14_s17   ;;  %s3647_s16 = sphi %s3690_s16, %s4030_s16   ;;  %s3643_s15 = sphi %s3688_s15, %s4029_s15  }
   0x3   : > { %p28_p1 = scmp.ge.s32.totalorder %s26_s18, 2  ;;  %p204_p2 = scmp.lt.s32.totalorder %s3651_s17, 3 }
   0x5   : > { %s4032_s18 = smov (%p28_p1, %s26_s18), 0  ;;  %p205_p3 = pnand %p3338_p0, %p204_p2 }
   0x6   : > { %p255_p4 = scmp.lt.s32.totalorder (!%p205_p3), %s3643_s15, 1  ;;  %v3653_v0 = vmov (!%p205_p3), 0.0   ;;  %vm3654_vm0 = vmmov (!%p205_p3), 0   ;;  %v281_v3 = vld [vmem:[%s4025_s1] sm:$0xff] (!%p205_p3)  ;;  %s3655_s28 = smov (!%p205_p3), 127   ;;  %vm282_vm1 = vcmask (!%p205_p3), 64512  }
   0x7   : > { %208 = sbr.rel (%p205_p3) target bundleno = 475 (0x1db), region = 36  ;;  %3436 = vmatprep.subr.mxu1 (!%p205_p3), %v3653_v0  ;;  %3438 = vmatprep.mubr.msk.f32.mxu1 (!%p205_p3), %vm3654_vm0, %v3653_v0  ;;  %v280_v9 = vld [vmem:[%s4024_s0] sm:$0xff] (!%p205_p3)  ;;  %s3656_s5 = smov (!%p205_p3), 126   ;;  %vm593_vm2 = vcmask (!%p205_p3), 1039360   ;;  %v3348_v17 = vld [vmem:[%s4024_s0 + $0x8] sm:$0xff] (!%p205_p3)  ;;  %vm924_vm3 = vcmask (!%p205_p3), 1031168  }
   0x8   : > { %350 = vmatprep.mubr.f32.mxu0 (!%p205_p3), %v3653_v0  ;;  %s3657_s6 = smov (!%p205_p3), 110   ;;  %s3658_s7 = smov (!%p205_p3), 109   ;;  %v3351_v26 = vld [vmem:[%s4025_s1 + $0x8] sm:$0xff] (!%p205_p3)  ;;  %v3354_v34 = vld [vmem:[%s4024_s0 + $0x10] sm:$0xff] (!%p205_p3)  ;;  %vm1251_vm4 = vcmask (!%p205_p3), 900096   ;;  %v3360_v50 = vld [vmem:[%s4024_s0 + $0x18] sm:$0xff] (!%p205_p3) }
   0x9   : > { %s3659_s8 = smov (!%p205_p3), 108   ;;  %s3660_s9 = smov (!%p205_p3), 92   ;;  %v3357_v42 = vld [vmem:[%s4025_s1 + $0x10] sm:$0xff] (!%p205_p3)  ;;  %v3363_v58 = vld [vmem:[%s4025_s1 + $0x18] sm:$0xff] (!%p205_p3)  ;;  %vm1578_vm5 = vcmask (!%p205_p3), 891904   ;;  %vm1905_vm6 = vcmask (!%p205_p3), 883712  }
   0xa   : > { %s3661_s10 = smov (!%p205_p3), 91   ;;  %s3662_s11 = smov (!%p205_p3), 90   ;;  %vm2232_vm7 = vcmask (!%p205_p3), 752640   ;;  %vm2559_vm8 = vcmask (!%p205_p3), 744448   ;;  %vm2886_vm9 = vcmask (!%p205_p3), 736256  }
   0xe   : > { %s4034_s15 = smov (!%p255_p4, %s3643_s15), 1 }
   0xf   : > { %s3398_s19 = sshll.u32 %s4034_s15, 5  ;;  %s3594_s26 = smul.u32 24, %s4034_s15 }
  0x10   : > { %s259_s22 = scalar_lea.vmem %s4026_s2, %s3398_s19  ;;  %s264_s25 = scalar_lea.vmem %s4027_s3, %s3398_s19 }
  0x11   : > { %v3719_v1 = vld [vmem:[%s259_s22 + $0x8] sm:$0xff]  ;;  %v3721_v2 = vld [vmem:[%s259_s22] sm:$0xff]  ;;  %v3728_v4 = vld [vmem:[%s259_s22 + $0x10] sm:$0xff]  ;;  %s273_s29 = scalar_lea.vmem %s4028_s4, %s3594_s26 }
  0x12   : > { %587 = vrot.lane.b32.xlu0 %v3719_v1, %s3655_s28  ;;  %585 = vrot.lane.b32.xlu1 %v3721_v2, %s3655_s28  ;;  %v3730_v5 = vld [vmem:[%s264_s25 + $0x8] sm:$0xff]  ;;  %v3732_v6 = vld [vmem:[%s259_s22 + $0x18] sm:$0xff] }
  0x13   : > { %v3734_v7 = vld [vmem:[%s264_s25 + $0x10] sm:$0xff]  ;;  %v3736_v8 = vld [vmem:[%s264_s25] sm:$0xff]  ;;  %286 = vmatprep.subr.mxu0 %v3730_v5  ;;  %v3757_v10 = vld [vmem:[%s264_s25 + $0x18] sm:$0xff] }
  0x14   : > { %3437 = vmatpush3.msra.mxu1 %v3734_v7  ;;  %287 = vmatpush1.msra.mxu0 %v3736_v8 }
  0x15   : > { %3439 = vmatmul.mubr.msk.f32.vlgmr.msra.gmra.mrb[0].mxu1 %vm282_vm1, %v281_v3  ;;  %3344 = vmatmul.mubr.msk.f32.vlgmr.msra.gmra.mrb[0].mxu0 %vm282_vm1, %v281_v3  ;;  %v3366_v3 = vld [vmem:[%s4024_s0 + $0x20] sm:$0xff] }
  0x16   : > { %589 = vrot.lane.b32.xlu0 %v3728_v4, %s3655_s28  ;;  %591 = vrot.lane.b32.xlu1 %v3732_v6, %s3655_s28 }
  0x17   : > { %3441 = vmatprep.subr.mxu1 %v3653_v0  ;;  %3443 = vmatprep.mubr.msk.f32.mxu1 %vm3654_vm0, %v3653_v0 }
  0x18   : > { %430 = vmatprep.subr.mxu0 %v3719_v1  ;;  %3442 = vmatpush3.msra.mxu1 %v3728_v4 }
  0x19   : > { %431 = vmatpush1.msra.mxu0 %v3721_v2  ;;  %494 = vmatprep.mubr.f32.mxu0 %v3653_v0 }
  0x1a   : > { %755 = vrot.lane.b32.xlu0 %v3730_v5, %s3655_s28  ;;  %757 = vrot.lane.b32.xlu1 %v3734_v7, %s3655_s28 }
  0x1b   : > { %3446 = vmatprep.subr.mxu1 %v3653_v0 }
  0x1d   : > { %3444 = vmatmul.mubr.msk.f32.vlgmr.msra.gmra.mrb[0].mxu1 %vm282_vm1, %v280_v9  ;;  %3346 = vmatmul.mubr.msk.f32.vlgmr.msra.gmra.mrb[0].mxu0 %vm282_vm1, %v280_v9 }
  0x1e   : > { %753 = vrot.lane.b32.xlu0 %v3736_v8, %s3655_s28  ;;  %759 = vrot.lane.b32.xlu1 %v3757_v10, %s3655_s28 }
  0x1f   : > { %3448 = vmatprep.mubr.msk.f32.mxu1 %vm3654_vm0, %v3653_v0  ;;  %667 = vmatprep.mubr.f32.mxu0 %v3653_v0 }
  0x22   : > { %918 = vrot.lane.b32.xlu0 %v3719_v1, %s3656_s5  ;;  %920 = vrot.lane.b32.xlu1 %v3728_v4, %s3656_s5 }
  0x26   : > { %916 = vrot.lane.b32.xlu0 %v3721_v2, %s3656_s5  ;;  %922 = vrot.lane.b32.xlu1 %v3732_v6, %s3656_s5 }
  0x2a   : > { %1082 = vrot.lane.b32.xlu0 %v3730_v5, %s3656_s5  ;;  %1084 = vrot.lane.b32.xlu1 %v3734_v7, %s3656_s5 }
  0x2e   : > { %1080 = vrot.lane.b32.xlu0 %v3736_v8, %s3656_s5  ;;  %1086 = vrot.lane.b32.xlu1 %v3757_v10, %s3656_s5 }
  0x32   : > { %1245 = vrot.lane.b32.xlu0 %v3719_v1, %s3657_s6  ;;  %1247 = vrot.lane.b32.xlu1 %v3728_v4, %s3657_s6 }
  0x36   : > { %1243 = vrot.lane.b32.xlu0 %v3721_v2, %s3657_s6  ;;  %1249 = vrot.lane.b32.xlu1 %v3732_v6, %s3657_s6 }
  0x3a   : > { %1409 = vrot.lane.b32.xlu0 %v3730_v5, %s3657_s6  ;;  %1411 = vrot.lane.b32.xlu1 %v3734_v7, %s3657_s6 }
  0x3e   : > { %1407 = vrot.lane.b32.xlu0 %v3736_v8, %s3657_s6  ;;  %1413 = vrot.lane.b32.xlu1 %v3757_v10, %s3657_s6 }
  0x42   : > { %1572 = vrot.lane.b32.xlu0 %v3719_v1, %s3658_s7  ;;  %1574 = vrot.lane.b32.xlu1 %v3728_v4, %s3658_s7 }
  0x46   : > { %1570 = vrot.lane.b32.xlu0 %v3721_v2, %s3658_s7  ;;  %1576 = vrot.lane.b32.xlu1 %v3732_v6, %s3658_s7 }
  0x4a   : > { %1736 = vrot.lane.b32.xlu0 %v3730_v5, %s3658_s7  ;;  %1738 = vrot.lane.b32.xlu1 %v3734_v7, %s3658_s7 }
  0x4e   : > { %1734 = vrot.lane.b32.xlu0 %v3736_v8, %s3658_s7  ;;  %1740 = vrot.lane.b32.xlu1 %v3757_v10, %s3658_s7 }
  0x52   : > { %1899 = vrot.lane.b32.xlu0 %v3719_v1, %s3659_s8  ;;  %1901 = vrot.lane.b32.xlu1 %v3728_v4, %s3659_s8 }
  0x56   : > { %1897 = vrot.lane.b32.xlu0 %v3721_v2, %s3659_s8  ;;  %1903 = vrot.lane.b32.xlu1 %v3732_v6, %s3659_s8 }
  0x5a   : > { %2063 = vrot.lane.b32.xlu0 %v3730_v5, %s3659_s8  ;;  %2065 = vrot.lane.b32.xlu1 %v3734_v7, %s3659_s8 }
  0x5e   : > { %2061 = vrot.lane.b32.xlu0 %v3736_v8, %s3659_s8  ;;  %2067 = vrot.lane.b32.xlu1 %v3757_v10, %s3659_s8 }
  0x62   : > { %2226 = vrot.lane.b32.xlu0 %v3719_v1, %s3660_s9  ;;  %2228 = vrot.lane.b32.xlu1 %v3728_v4, %s3660_s9 }
  0x66   : > { %2224 = vrot.lane.b32.xlu0 %v3721_v2, %s3660_s9  ;;  %2230 = vrot.lane.b32.xlu1 %v3732_v6, %s3660_s9 }
  0x6a   : > { %2390 = vrot.lane.b32.xlu0 %v3730_v5, %s3660_s9  ;;  %2392 = vrot.lane.b32.xlu1 %v3734_v7, %s3660_s9 }
  0x6e   : > { %2388 = vrot.lane.b32.xlu0 %v3736_v8, %s3660_s9  ;;  %2394 = vrot.lane.b32.xlu1 %v3757_v10, %s3660_s9 }
  0x72   : > { %2553 = vrot.lane.b32.xlu0 %v3719_v1, %s3661_s10  ;;  %2555 = vrot.lane.b32.xlu1 %v3728_v4, %s3661_s10 }
  0x76   : > { %2551 = vrot.lane.b32.xlu0 %v3721_v2, %s3661_s10  ;;  %2557 = vrot.lane.b32.xlu1 %v3732_v6, %s3661_s10 }
  0x7a   : > { %2717 = vrot.lane.b32.xlu0 %v3730_v5, %s3661_s10  ;;  %2719 = vrot.lane.b32.xlu1 %v3734_v7, %s3661_s10 }
  0x7e   : > { %2715 = vrot.lane.b32.xlu0 %v3736_v8, %s3661_s10  ;;  %2721 = vrot.lane.b32.xlu1 %v3757_v10, %s3661_s10 }
  0x82   : > { %2880 = vrot.lane.b32.xlu0 %v3719_v1, %s3662_s11  ;;  %2882 = vrot.lane.b32.xlu1 %v3728_v4, %s3662_s11 }
  0x84   : > { %v588_v11 = vpop.permute.xlu0 %587  ;;  %v586_v12 = vpop.permute.xlu1 %585 }
  0x85   : > { %v594_v18 = vsel %vm593_vm2, %v586_v12, %v588_v11 }
  0x86   : > { %2878 = vrot.lane.b32.xlu0 %v3721_v2, %s3662_s11  ;;  %2884 = vrot.lane.b32.xlu1 %v3732_v6, %s3662_s11 }
  0x88   : > { %v590_v13 = vpop.permute.xlu0 %589  ;;  %v592_v14 = vpop.permute.xlu1 %591 }
  0x89   : > { %v596_v15 = vsel %vm593_vm2, %v590_v13, %v592_v14  ;;  %v595_v16 = vsel %vm593_vm2, %v588_v11, %v590_v13  ;;  %v3369_v11 = vld [vmem:[%s4025_s1 + $0x20] sm:$0xff] }
  0x8a   : > { %3044 = vrot.lane.b32.xlu0 %v3730_v5, %s3662_s11  ;;  %3046 = vrot.lane.b32.xlu1 %v3734_v7, %s3662_s11 }
  0x8b   : > { %603 = vmatprep.subr.mxu0 %v595_v16  ;;  %3447 = vmatpush3.msra.mxu1 %v596_v15 }
  0x8c   : > { %604 = vmatpush1.msra.mxu0 %v594_v18  ;;  %3449 = vmatmul.mubr.msk.f32.vlgmr.msra.gmra.mrb[0].mxu1 %vm282_vm1, %v3348_v17  ;;  %v756_v19 = vpop.permute.xlu0 %755  ;;  %v758_v20 = vpop.permute.xlu1 %757 }
  0x8d   : > { %3349 = vmatmul.mubr.msk.f32.vlgmr.msra.gmra.mrb[0].mxu0 %vm282_vm1, %v3348_v17  ;;  %v762_v21 = vsel %vm593_vm2, %v756_v19, %v758_v20  ;;  %3451 = vmatprep.subr.mxu1 %v3653_v0 }
  0x8e   : > { %3042 = vrot.lane.b32.xlu0 %v3736_v8, %s3662_s11  ;;  %3048 = vrot.lane.b32.xlu1 %v3757_v10, %s3662_s11 }
  0x8f   : > { %770 = vmatprep.subr.mxu0 %v762_v21  ;;  %3453 = vmatprep.mubr.msk.f32.mxu1 %vm3654_vm0, %v3653_v0 }
  0x90   : > { %v754_v22 = vpop.permute.xlu0 %753  ;;  %v760_v23 = vpop.permute.xlu1 %759  ;;  %834 = vmatprep.mubr.f32.mxu0 %v3653_v0 }
  0x91   : > { %v761_v24 = vsel %vm593_vm2, %v754_v22, %v756_v19  ;;  %v763_v25 = vsel %vm593_vm2, %v758_v20, %v760_v23  ;;  %v3372_v19 = vld [vmem:[%s4024_s0 + $0x28] sm:$0xff] }
  0x92   : > { %771 = vmatpush1.msra.mxu0 %v761_v24  ;;  %3452 = vmatpush3.msra.mxu1 %v763_v25 }
  0x93   : > { %3456 = vmatprep.subr.mxu1 %v3653_v0 }
  0x94   : > { %3454 = vmatmul.mubr.msk.f32.vlgmr.msra.gmra.mrb[0].mxu1 %vm282_vm1, %v3351_v26  ;;  %v919_v27 = vpop.permute.xlu0 %918  ;;  %v921_v28 = vpop.permute.xlu1 %920 }
  0x95   : > { %3352 = vmatmul.mubr.msk.f32.vlgmr.msra.gmra.mrb[0].mxu0 %vm282_vm1, %v3351_v26  ;;  %v926_v29 = vsel %vm924_vm3, %v919_v27, %v921_v28  ;;  %3458 = vmatprep.mubr.msk.f32.mxu1 %vm3654_vm0, %v3653_v0 }
  0x96   : > { %934 = vmatprep.subr.mxu0 %v926_v29  ;;  %998 = vmatprep.mubr.f32.mxu0 %v3653_v0 }
  0x98   : > { %v917_v30 = vpop.permute.xlu0 %916  ;;  %v923_v31 = vpop.permute.xlu1 %922 }
  0x99   : > { %v925_v32 = vsel %vm924_vm3, %v917_v30, %v919_v27  ;;  %v927_v33 = vsel %vm924_vm3, %v921_v28, %v923_v31  ;;  %v3375_v27 = vld [vmem:[%s4025_s1 + $0x28] sm:$0xff] }
  0x9a   : > { %935 = vmatpush1.msra.mxu0 %v925_v32  ;;  %3457 = vmatpush3.msra.mxu1 %v927_v33 }
  0x9b   : > { %3461 = vmatprep.subr.mxu1 %v3653_v0 }
  0x9c   : > { %3459 = vmatmul.mubr.msk.f32.vlgmr.msra.gmra.mrb[0].mxu1 %vm282_vm1, %v3354_v34  ;;  %v1083_v35 = vpop.permute.xlu0 %1082  ;;  %v1085_v36 = vpop.permute.xlu1 %1084 }
  0x9d   : > { %3355 = vmatmul.mubr.msk.f32.vlgmr.msra.gmra.mrb[0].mxu0 %vm282_vm1, %v3354_v34  ;;  %v1089_v37 = vsel %vm924_vm3, %v1083_v35, %v1085_v36  ;;  %3463 = vmatprep.mubr.msk.f32.mxu1 %vm3654_vm0, %v3653_v0 }
  0x9e   : > { %1097 = vmatprep.subr.mxu0 %v1089_v37  ;;  %1161 = vmatprep.mubr.f32.mxu0 %v3653_v0 }
  0xa0   : > { %v1081_v38 = vpop.permute.xlu0 %1080  ;;  %v1087_v39 = vpop.permute.xlu1 %1086 }
  0xa1   : > { %v1088_v40 = vsel %vm924_vm3, %v1081_v38, %v1083_v35  ;;  %v1090_v41 = vsel %vm924_vm3, %v1085_v36, %v1087_v39  ;;  %v3378_v35 = vld [vmem:[%s4024_s0 + $0x30] sm:$0xff] }
  0xa2   : > { %1098 = vmatpush1.msra.mxu0 %v1088_v40  ;;  %3462 = vmatpush3.msra.mxu1 %v1090_v41 }
  0xa3   : > { %3466 = vmatprep.subr.mxu1 %v3653_v0 }
  0xa4   : > { %3464 = vmatmul.mubr.msk.f32.vlgmr.msra.gmra.mrb[0].mxu1 %vm282_vm1, %v3357_v42  ;;  %v1246_v43 = vpop.permute.xlu0 %1245  ;;  %v1248_v44 = vpop.permute.xlu1 %1247 }
  0xa5   : > { %3358 = vmatmul.mubr.msk.f32.vlgmr.msra.gmra.mrb[0].mxu0 %vm282_vm1, %v3357_v42  ;;  %v1253_v45 = vsel %vm1251_vm4, %v1246_v43, %v1248_v44  ;;  %3468 = vmatprep.mubr.msk.f32.mxu1 %vm3654_vm0, %v3653_v0 }
  0xa6   : > { %1261 = vmatprep.subr.mxu0 %v1253_v45  ;;  %1325 = vmatprep.mubr.f32.mxu0 %v3653_v0 }
  0xa8   : > { %v1244_v46 = vpop.permute.xlu0 %1243  ;;  %v1250_v47 = vpop.permute.xlu1 %1249 }
  0xa9   : > { %v1252_v48 = vsel %vm1251_vm4, %v1244_v46, %v1246_v43  ;;  %v1254_v49 = vsel %vm1251_vm4, %v1248_v44, %v1250_v47  ;;  %v3381_v43 = vld [vmem:[%s4025_s1 + $0x30] sm:$0xff] }
  0xaa   : > { %1262 = vmatpush1.msra.mxu0 %v1252_v48  ;;  %3467 = vmatpush3.msra.mxu1 %v1254_v49 }
  0xab   : > { %3471 = vmatprep.subr.mxu1 %v3653_v0 }
  0xac   : > { %3469 = vmatmul.mubr.msk.f32.vlgmr.msra.gmra.mrb[0].mxu1 %vm282_vm1, %v3360_v50  ;;  %v1410_v51 = vpop.permute.xlu0 %1409  ;;  %v1412_v52 = vpop.permute.xlu1 %1411 }
  0xad   : > { %3361 = vmatmul.mubr.msk.f32.vlgmr.msra.gmra.mrb[0].mxu0 %vm282_vm1, %v3360_v50  ;;  %v1416_v53 = vsel %vm1251_vm4, %v1410_v51, %v1412_v52  ;;  %3473 = vmatprep.mubr.msk.f32.mxu1 %vm3654_vm0, %v3653_v0 }
  0xae   : > { %1424 = vmatprep.subr.mxu0 %v1416_v53  ;;  %1488 = vmatprep.mubr.f32.mxu0 %v3653_v0 }
  0xb0   : > { %v1408_v54 = vpop.permute.xlu0 %1407  ;;  %v1414_v55 = vpop.permute.xlu1 %1413 }
  0xb1   : > { %v1415_v56 = vsel %vm1251_vm4, %v1408_v54, %v1410_v51  ;;  %v1417_v57 = vsel %vm1251_vm4, %v1412_v52, %v1414_v55  ;;  %v3384_v51 = vld [vmem:[%s4024_s0 + $0x38] sm:$0xff] }
  0xb2   : > { %1425 = vmatpush1.msra.mxu0 %v1415_v56  ;;  %3472 = vmatpush3.msra.mxu1 %v1417_v57 }
  0xb3   : > { %3476 = vmatprep.subr.mxu1 %v3653_v0 }
  0xb4   : > { %3474 = vmatmul.mubr.msk.f32.vlgmr.msra.gmra.mrb[0].mxu1 %vm282_vm1, %v3363_v58  ;;  %v1573_v59 = vpop.permute.xlu0 %1572  ;;  %v1575_v60 = vpop.permute.xlu1 %1574 }
  0xb5   : > { %3364 = vmatmul.mubr.msk.f32.vlgmr.msra.gmra.mrb[0].mxu0 %vm282_vm1, %v3363_v58  ;;  %v1580_v61 = vsel %vm1578_vm5, %v1573_v59, %v1575_v60  ;;  %3478 = vmatprep.mubr.msk.f32.mxu1 %vm3654_vm0, %v3653_v0 }
  0xb6   : > { %1588 = vmatprep.subr.mxu0 %v1580_v61  ;;  %1652 = vmatprep.mubr.f32.mxu0 %v3653_v0 }
  0xb8   : > { %v1571_v62 = vpop.permute.xlu0 %1570  ;;  %v1577_v63 = vpop.permute.xlu1 %1576 }
  0xb9   : > { %v1579_v1 = vsel %vm1578_vm5, %v1571_v62, %v1573_v59  ;;  %v1581_v2 = vsel %vm1578_vm5, %v1575_v60, %v1577_v63  ;;  %v3387_v59 = vld [vmem:[%s4025_s1 + $0x38] sm:$0xff] }
  0xba   : > { %1589 = vmatpush1.msra.mxu0 %v1579_v1  ;;  %3477 = vmatpush3.msra.mxu1 %v1581_v2 }
  0xbb   : > { %3481 = vmatprep.subr.mxu1 %v3653_v0 }
  0xbc   : > { %3479 = vmatmul.mubr.msk.f32.vlgmr.msra.gmra.mrb[0].mxu1 %vm282_vm1, %v3366_v3  ;;  %v1737_v4 = vpop.permute.xlu0 %1736  ;;  %v1739_v5 = vpop.permute.xlu1 %1738 }
  0xbd   : > { %3367 = vmatmul.mubr.msk.f32.vlgmr.msra.gmra.mrb[0].mxu0 %vm282_vm1, %v3366_v3  ;;  %v1743_v6 = vsel %vm1578_vm5, %v1737_v4, %v1739_v5  ;;  %3483 = vmatprep.mubr.msk.f32.mxu1 %vm3654_vm0, %v3653_v0 }
  0xbe   : > { %1751 = vmatprep.subr.mxu0 %v1743_v6  ;;  %1815 = vmatprep.mubr.f32.mxu0 %v3653_v0 }
  0xc0   : > { %v1735_v7 = vpop.permute.xlu0 %1734  ;;  %v1741_v8 = vpop.permute.xlu1 %1740 }
  0xc1   : > { %v1742_v9 = vsel %vm1578_vm5, %v1735_v7, %v1737_v4  ;;  %v1744_v10 = vsel %vm1578_vm5, %v1739_v5, %v1741_v8  ;;  %v3390_v4 = vld [vmem:[%s4024_s0 + $0x40] sm:$0xff] }
  0xc2   : > { %1752 = vmatpush1.msra.mxu0 %v1742_v9  ;;  %3482 = vmatpush3.msra.mxu1 %v1744_v10 }
  0xc3   : > { %3486 = vmatprep.subr.mxu1 %v3653_v0 }
  0xc4   : > { %3484 = vmatmul.mubr.msk.f32.vlgmr.msra.gmra.mrb[0].mxu1 %vm282_vm1, %v3369_v11  ;;  %v1900_v12 = vpop.permute.xlu0 %1899  ;;  %v1902_v13 = vpop.permute.xlu1 %1901 }
  0xc5   : > { %3370 = vmatmul.mubr.msk.f32.vlgmr.msra.gmra.mrb[0].mxu0 %vm282_vm1, %v3369_v11  ;;  %v1907_v14 = vsel %vm1905_vm6, %v1900_v12, %v1902_v13  ;;  %3488 = vmatprep.mubr.msk.f32.mxu1 %vm3654_vm0, %v3653_v0 }
  0xc6   : > { %1915 = vmatprep.subr.mxu0 %v1907_v14  ;;  %1979 = vmatprep.mubr.f32.mxu0 %v3653_v0 }
  0xc8   : > { %v1898_v15 = vpop.permute.xlu0 %1897  ;;  %v1904_v16 = vpop.permute.xlu1 %1903 }
  0xc9   : > { %v1906_v17 = vsel %vm1905_vm6, %v1898_v15, %v1900_v12  ;;  %v1908_v18 = vsel %vm1905_vm6, %v1902_v13, %v1904_v16  ;;  %v3393_v12 = vld [vmem:[%s4025_s1 + $0x40] sm:$0xff] }
  0xca   : > { %1916 = vmatpush1.msra.mxu0 %v1906_v17  ;;  %3487 = vmatpush3.msra.mxu1 %v1908_v18 }
  0xcb   : > { %3491 = vmatprep.subr.mxu1 %v3653_v0 }
  0xcc   : > { %3489 = vmatmul.mubr.msk.f32.vlgmr.msra.gmra.mrb[0].mxu1 %vm282_vm1, %v3372_v19  ;;  %v2064_v20 = vpop.permute.xlu0 %2063  ;;  %v2066_v21 = vpop.permute.xlu1 %2065 }
  0xcd   : > { %3373 = vmatmul.mubr.msk.f32.vlgmr.msra.gmra.mrb[0].mxu0 %vm282_vm1, %v3372_v19  ;;  %v2070_v22 = vsel %vm1905_vm6, %v2064_v20, %v2066_v21  ;;  %3493 = vmatprep.mubr.msk.f32.mxu1 %vm3654_vm0, %v3653_v0 }
  0xce   : > { %2078 = vmatprep.subr.mxu0 %v2070_v22  ;;  %2142 = vmatprep.mubr.f32.mxu0 %v3653_v0 }
  0xd0   : > { %v2062_v23 = vpop.permute.xlu0 %2061  ;;  %v2068_v24 = vpop.permute.xlu1 %2067 }
  0xd1   : > { %v2069_v25 = vsel %vm1905_vm6, %v2062_v23, %v2064_v20  ;;  %v2071_v26 = vsel %vm1905_vm6, %v2066_v21, %v2068_v24 }
  0xd2   : > { %2079 = vmatpush1.msra.mxu0 %v2069_v25  ;;  %3492 = vmatpush3.msra.mxu1 %v2071_v26 }
  0xd3   : > { %3496 = vmatprep.subr.mxu1 %v3653_v0 }
  0xd4   : > { %3494 = vmatmul.mubr.msk.f32.vlgmr.msra.gmra.mrb[0].mxu1 %vm282_vm1, %v3375_v27  ;;  %v2227_v28 = vpop.permute.xlu0 %2226  ;;  %v2229_v29 = vpop.permute.xlu1 %2228 }
  0xd5   : > { %3376 = vmatmul.mubr.msk.f32.vlgmr.msra.gmra.mrb[0].mxu0 %vm282_vm1, %v3375_v27  ;;  %v2234_v30 = vsel %vm2232_vm7, %v2227_v28, %v2229_v29  ;;  %3498 = vmatprep.mubr.msk.f32.mxu1 %vm3654_vm0, %v3653_v0 }
  0xd6   : > { %2242 = vmatprep.subr.mxu0 %v2234_v30  ;;  %2306 = vmatprep.mubr.f32.mxu0 %v3653_v0 }
  0xd8   : > { %v2225_v31 = vpop.permute.xlu0 %2224  ;;  %v2231_v32 = vpop.permute.xlu1 %2230 }
  0xd9   : > { %v2233_v33 = vsel %vm2232_vm7, %v2225_v31, %v2227_v28  ;;  %v2235_v34 = vsel %vm2232_vm7, %v2229_v29, %v2231_v32 }
  0xda   : > { %2243 = vmatpush1.msra.mxu0 %v2233_v33  ;;  %3497 = vmatpush3.msra.mxu1 %v2235_v34 }
  0xdb   : > { %3501 = vmatprep.subr.mxu1 %v3653_v0 }
  0xdc   : > { %3499 = vmatmul.mubr.msk.f32.vlgmr.msra.gmra.mrb[0].mxu1 %vm282_vm1, %v3378_v35  ;;  %v2391_v36 = vpop.permute.xlu0 %2390  ;;  %v2393_v37 = vpop.permute.xlu1 %2392 }
  0xdd   : > { %3379 = vmatmul.mubr.msk.f32.vlgmr.msra.gmra.mrb[0].mxu0 %vm282_vm1, %v3378_v35  ;;  %v2397_v38 = vsel %vm2232_vm7, %v2391_v36, %v2393_v37  ;;  %3503 = vmatprep.mubr.msk.f32.mxu1 %vm3654_vm0, %v3653_v0 }
  0xde   : > { %2405 = vmatprep.subr.mxu0 %v2397_v38  ;;  %2469 = vmatprep.mubr.f32.mxu0 %v3653_v0 }
  0xe0   : > { %v2389_v39 = vpop.permute.xlu0 %2388  ;;  %v2395_v40 = vpop.permute.xlu1 %2394 }
  0xe1   : > { %v2396_v41 = vsel %vm2232_vm7, %v2389_v39, %v2391_v36  ;;  %v2398_v42 = vsel %vm2232_vm7, %v2393_v37, %v2395_v40 }
  0xe2   : > { %2406 = vmatpush1.msra.mxu0 %v2396_v41  ;;  %3502 = vmatpush3.msra.mxu1 %v2398_v42 }
  0xe3   : > { %3506 = vmatprep.subr.mxu1 %v3653_v0 }
  0xe4   : > { %3504 = vmatmul.mubr.msk.f32.vlgmr.msra.gmra.mrb[0].mxu1 %vm282_vm1, %v3381_v43  ;;  %v2554_v44 = vpop.permute.xlu0 %2553  ;;  %v2556_v45 = vpop.permute.xlu1 %2555 }
  0xe5   : > { %3382 = vmatmul.mubr.msk.f32.vlgmr.msra.gmra.mrb[0].mxu0 %vm282_vm1, %v3381_v43  ;;  %v2561_v46 = vsel %vm2559_vm8, %v2554_v44, %v2556_v45  ;;  %3508 = vmatprep.mubr.msk.f32.mxu1 %vm3654_vm0, %v3653_v0 }
  0xe6   : > { %2569 = vmatprep.subr.mxu0 %v2561_v46  ;;  %2633 = vmatprep.mubr.f32.mxu0 %v3653_v0 }
  0xe8   : > { %v2552_v47 = vpop.permute.xlu0 %2551  ;;  %v2558_v48 = vpop.permute.xlu1 %2557 }
  0xe9   : > { %v2560_v49 = vsel %vm2559_vm8, %v2552_v47, %v2554_v44  ;;  %v2562_v50 = vsel %vm2559_vm8, %v2556_v45, %v2558_v48 }
  0xea   : > { %2570 = vmatpush1.msra.mxu0 %v2560_v49  ;;  %3507 = vmatpush3.msra.mxu1 %v2562_v50 }
  0xeb   : > { %3511 = vmatprep.subr.mxu1 %v3653_v0 }
  0xec   : > { %3509 = vmatmul.mubr.msk.f32.vlgmr.msra.gmra.mrb[0].mxu1 %vm282_vm1, %v3384_v51  ;;  %v2718_v52 = vpop.permute.xlu0 %2717  ;;  %v2720_v53 = vpop.permute.xlu1 %2719 }
  0xed   : > { %3385 = vmatmul.mubr.msk.f32.vlgmr.msra.gmra.mrb[0].mxu0 %vm282_vm1, %v3384_v51  ;;  %v2724_v54 = vsel %vm2559_vm8, %v2718_v52, %v2720_v53  ;;  %3513 = vmatprep.mubr.msk.f32.mxu1 %vm3654_vm0, %v3653_v0 }
  0xee   : > { %2732 = vmatprep.subr.mxu0 %v2724_v54  ;;  %2796 = vmatprep.mubr.f32.mxu0 %v3653_v0 }
  0xf0   : > { %v2716_v55 = vpop.permute.xlu0 %2715  ;;  %v2722_v56 = vpop.permute.xlu1 %2721 }
  0xf1   : > { %v2723_v57 = vsel %vm2559_vm8, %v2716_v55, %v2718_v52  ;;  %v2725_v58 = vsel %vm2559_vm8, %v2720_v53, %v2722_v56 }
  0xf2   : > { %2733 = vmatpush1.msra.mxu0 %v2723_v57  ;;  %3512 = vmatpush3.msra.mxu1 %v2725_v58 }
  0xf3   : > { %3516 = vmatprep.subr.mxu1 %v3653_v0 }
  0xf4   : > { %3514 = vmatmul.mubr.msk.f32.vlgmr.msra.gmra.mrb[0].mxu1 %vm282_vm1, %v3387_v59  ;;  %v2881_v60 = vpop.permute.xlu0 %2880  ;;  %v2883_v61 = vpop.permute.xlu1 %2882 }
  0xf5   : > { %3388 = vmatmul.mubr.msk.f32.vlgmr.msra.gmra.mrb[0].mxu0 %vm282_vm1, %v3387_v59  ;;  %v2888_v62 = vsel %vm2886_vm9, %v2881_v60, %v2883_v61  ;;  %3518 = vmatprep.mubr.msk.f32.mxu1 %vm3654_vm0, %v3653_v0 }
  0xf6   : > { %2896 = vmatprep.subr.mxu0 %v2888_v62  ;;  %2960 = vmatprep.mubr.f32.mxu0 %v3653_v0 }
  0xf8   : > { %v2879_v63 = vpop.permute.xlu0 %2878  ;;  %v2885_v1 = vpop.permute.xlu1 %2884 }
  0xf9   : > { %v2887_v2 = vsel %vm2886_vm9, %v2879_v63, %v2881_v60  ;;  %v2889_v3 = vsel %vm2886_vm9, %v2883_v61, %v2885_v1 }
  0xfa   : > { %2897 = vmatpush1.msra.mxu0 %v2887_v2  ;;  %3517 = vmatpush3.msra.mxu1 %v2889_v3 }
  0xfb   : > { %3521 = vmatprep.subr.mxu1 %v3653_v0 }
  0xfc   : > { %3519 = vmatmul.mubr.msk.f32.vlgmr.msra.gmra.mrb[0].mxu1 %vm282_vm1, %v3390_v4  ;;  %v3045_v5 = vpop.permute.xlu0 %3044  ;;  %v3047_v6 = vpop.permute.xlu1 %3046 }
  0xfd   : > { %3391 = vmatmul.mubr.msk.f32.vlgmr.msra.gmra.mrb[0].mxu0 %vm282_vm1, %v3390_v4  ;;  %v3051_v7 = vsel %vm2886_vm9, %v3045_v5, %v3047_v6  ;;  %3523 = vmatprep.mubr.msk.f32.mxu1 %vm3654_vm0, %v3653_v0 }
  0xfe   : > { %3059 = vmatprep.subr.mxu0 %v3051_v7  ;;  %3123 = vmatprep.mubr.f32.mxu0 %v3653_v0 }
 0x100   : > { %v3043_v8 = vpop.permute.xlu0 %3042  ;;  %v3049_v9 = vpop.permute.xlu1 %3048 }
 0x101   : > { %v3050_v10 = vsel %vm2886_vm9, %v3043_v8, %v3045_v5  ;;  %v3052_v11 = vsel %vm2886_vm9, %v3047_v6, %v3049_v9 }
 0x102   : > { %3060 = vmatpush1.msra.mxu0 %v3050_v10  ;;  %3522 = vmatpush3.msra.mxu1 %v3052_v11 }
 0x104   : > { %3524 = vmatmul.mubr.msk.f32.vlgmr.msra.gmra.mrb[0].mxu1 %vm282_vm1, %v3393_v12 }
 0x105   : > { %3394 = vmatmul.mubr.msk.f32.vlgmr.msra.gmra.mrb[0].mxu0 %vm282_vm1, %v3393_v12 }
 0x1d7   : > { %v3196_v0 = vpop.f32.mrb[0].mxu1 }
 0x1d8   : > { %3205 = vst [vmem:[%s273_s29 + $0x10] sm:$0xff] %v3196_v0  ;;  %v3125_v13 = vpop.f32.mrb[0].mxu0  ;;  %v3525_v14 = vpop.f32.mrb[1].mxu1 }
 0x1d9   : > { %3203 = vst [vmem:[%s273_s29] sm:$0xff] %v3125_v13  ;;  %v3127_v15 = vpop.f32.mrb[1].mxu0 }
 0x1da   : > { %3204 = vst [vmem:[%s273_s29 + $0x8] sm:$0xff] %v3127_v15 }
 0x1db PF: > { %s14_s17 = sadd.s32 1, %s3651_s17   ;;  %s4029_s15 = smov %s3647_s16 }
 0x1dc   : > { %p11_p5 = scmp.ge.s32.totalorder %s14_s17, 4   ;;  %s4030_s16 = smov %s4032_s18 }
 0x1de   :  { %13 = sbr.rel (!%p11_p5) target bundleno = 2 (0x2), region = 91 }

</bundles_post_ra>
